<compile_context>
chip_gen: v7x
topology: tpu7x:2x2x1
jax: 0.10.0
libtpu: 0.0.40
codegen_flags: <defaults>
</compile_context>

<pallas_src>
import numpy as np

import jax
import jax.numpy as jnp
from jax.experimental import pallas as pl
from jax.experimental.pallas import tpu as pltpu


# ---------------------------------------------------------------------------
# Fused forward kernel (one batch row per grid step).
# ---------------------------------------------------------------------------
def _lenet_fused_kernel(xc_ref,            # (1, 4, 8, 96)  input rows split by (row mod 4)
                        m1_ref, b1t_ref,   # (5, 2, 96, 84), (1, 84)
                        m2_ref, b2t_ref,   # (5, 2, 84, 80), (1, 80)
                        w1h_ref, b1f_ref,  # (5, 80, 120),  (1, 120)
                        w2f_ref, b2f_ref,  # (120, 84),     (1, 84)
                        w3f_ref, b3f_ref,  # (84, 10),      (1, 10)
                        out_ref):          # (1, 1, 10)
    f32 = jnp.float32

    # ---- conv1 (5x5, 3->6) + ReLU + 2x2 max pool --------------------------
    # Pooled output row ip = 2*m + s (m=0..6, s=0/1); pool-window offsets
    # (rp, cp); required conv input row = 4*m + t with t = 2*s + rp + di,
    # i.e. row (t // 4) + m of the mod-4 row class (t % 4) -> contiguous
    # static slices only.  Columns are packed as jp*6 + o; M1[di, cp] is the
    # block-Toeplitz matrix for kernel-row offset di / pool column parity cp.
    pool1 = []                                      # pool1[s]: (7, 84)
    for s in (0, 1):
        q = None
        for rp in (0, 1):
            for cp in (0, 1):
                acc = jnp.zeros((7, 84), f32)
                for di in range(5):
                    t = 2 * s + rp + di
                    lhs = xc_ref[0, t % 4, t // 4: t // 4 + 7, :]       # (7, 96)
                    acc = acc + jnp.dot(lhs, m1_ref[di, cp],
                                        preferred_element_type=f32)
                q = acc if q is None else jnp.maximum(q, acc)
        pool1.append(jnp.maximum(q + b1t_ref[...], 0.0))

    # ---- conv2 (5x5, 6->16) + ReLU + 2x2 max pool -------------------------
    # Pooled output row h = 0..4; required conv1-pooled row = 2*h + u with
    # u = rp + di, i.e. row (u // 2) + h of pool1[u % 2].
    q2 = None
    for rp in (0, 1):
        for cp in (0, 1):
            acc = jnp.zeros((5, 80), f32)
            for di in range(5):
                u = rp + di
                lhs = pool1[u % 2][u // 2: u // 2 + 5, :]               # (5, 84)
                acc = acc + jnp.dot(lhs, m2_ref[di, cp],
                                    preferred_element_type=f32)
            q2 = acc if q2 is None else jnp.maximum(q2, acc)
    pool2 = jnp.maximum(q2 + b2t_ref[...], 0.0)      # (5, 80): [h, w*16 + c]

    # ---- fc1 -> ReLU -> fc2 -> ReLU -> fc3 --------------------------------
    # w1h is pre-permuted so this contraction matches torch's x.view(-1, 400)
    # (C, H, W) flattening order.
    h1 = jnp.zeros((1, 120), f32)
    for h in range(5):
        h1 = h1 + jnp.dot(pool2[h: h + 1, :], w1h_ref[h],
                          preferred_element_type=f32)
    h1 = jnp.maximum(h1 + b1f_ref[...], 0.0)
    h2 = jnp.maximum(jnp.dot(h1, w2f_ref[...], preferred_element_type=f32)
                     + b2f_ref[...], 0.0)
    h3 = jnp.dot(h2, w3f_ref[...], preferred_element_type=f32) + b3f_ref[...]
    out_ref[0, :, :] = h3


# ---------------------------------------------------------------------------
# Parameter handling (torch layouts -> kernel-friendly packed layouts, once)
# ---------------------------------------------------------------------------
def init_params(key):
    """Deterministic synthetic parameters in the original torch layouts."""
    ks = jax.random.split(key, 10)
    p = {}
    p["conv1_w"] = jax.random.normal(ks[0], (6, 3, 5, 5), jnp.float32) * 0.1
    p["conv1_b"] = jax.random.normal(ks[1], (6,), jnp.float32) * 0.1
    p["conv2_w"] = jax.random.normal(ks[2], (16, 6, 5, 5), jnp.float32) * 0.1
    p["conv2_b"] = jax.random.normal(ks[3], (16,), jnp.float32) * 0.1
    p["fc1_w"] = jax.random.normal(ks[4], (120, 400), jnp.float32) * 0.05
    p["fc1_b"] = jax.random.normal(ks[5], (120,), jnp.float32) * 0.05
    p["fc2_w"] = jax.random.normal(ks[6], (84, 120), jnp.float32) * 0.05
    p["fc2_b"] = jax.random.normal(ks[7], (84,), jnp.float32) * 0.05
    p["fc3_w"] = jax.random.normal(ks[8], (10, 84), jnp.float32) * 0.05
    p["fc3_b"] = jax.random.normal(ks[9], (10,), jnp.float32) * 0.05
    return p


def _toeplitz_placement(n_in_cols, n_out_cols, k):
    """0/1 tensor P[cp, jin, jp, dj] = 1  iff  jin == 2*jp + cp + dj."""
    p = np.zeros((2, n_in_cols, n_out_cols, k), np.float32)
    for cp in range(2):
        for jp in range(n_out_cols):
            for dj in range(k):
                p[cp, 2 * jp + cp + dj, jp, dj] = 1.0
    return jnp.asarray(p)


def prepare_params(params):
    """One-time packing of torch-layout params into the kernel's layouts."""
    w1, b1 = params["conv1_w"], params["conv1_b"]
    w2, b2 = params["conv2_w"], params["conv2_b"]

    p1 = _toeplitz_placement(32, 14, 5)    # conv1: 32 input cols -> 14 pooled cols
    p2 = _toeplitz_placement(14, 5, 5)     # conv2: 14 input cols -> 5 pooled cols
    # M[di, cp, jin*Cin + c, jp*Cout + o] = w[o, c, di, jin - 2*jp - cp]
    m1 = jnp.einsum("xjpd,ocid->ixjcpo", p1, w1).reshape(5, 2, 32 * 3, 14 * 6)
    m2 = jnp.einsum("xjpd,ocid->ixjcpo", p2, w2).reshape(5, 2, 14 * 6, 5 * 16)

    # fc1 weight regrouped: w1h[h, w*16 + c, n] = fc1_w[n, c*25 + h*5 + w]
    w1h = jnp.transpose(params["fc1_w"].reshape(120, 16, 5, 5),
                        (2, 3, 1, 0)).reshape(5, 80, 120)

    return {
        "m1": m1, "b1t": jnp.tile(b1, 14).reshape(1, 84),
        "m2": m2, "b2t": jnp.tile(b2, 5).reshape(1, 80),
        "w1h": w1h, "b1f": params["fc1_b"].reshape(1, 120),
        "w2f": params["fc2_w"].T, "b2f": params["fc2_b"].reshape(1, 84),
        "w3f": params["fc3_w"].T, "b3f": params["fc3_b"].reshape(1, 10),
    }


def _full_spec(arr):
    """Full-array block, revisited (same block index) at every grid step."""
    nd = arr.ndim
    return pl.BlockSpec(arr.shape, lambda b, _nd=nd: (0,) * _nd)


# ---------------------------------------------------------------------------
# Forward pass
# ---------------------------------------------------------------------------
@jax.jit
def model1_forward(x_nchw, kp):
    """Forward pass of Model1. x_nchw: (B, 3, 32, 32) float32 -> (B, 10)."""
    B = x_nchw.shape[0]
    x = jnp.transpose(x_nchw, (0, 2, 3, 1)).reshape(B, 32, 32 * 3)   # (B, H, W*C)
    # Split rows by (row mod 4) so every conv-row window used in the kernel is
    # a contiguous static slice (no strided in-kernel loads).
    xc = jnp.stack([x[:, r::4, :] for r in range(4)], axis=1)        # (B, 4, 8, 96)

    weights = (kp["m1"], kp["b1t"], kp["m2"], kp["b2t"], kp["w1h"],
               kp["b1f"], kp["w2f"], kp["b2f"], kp["w3f"], kp["b3f"])

    out = pl.pallas_call(
        _lenet_fused_kernel,
        out_shape=jax.ShapeDtypeStruct((B, 1, 10), jnp.float32),
        grid=(B,),
        in_specs=[pl.BlockSpec((1, 4, 8, 96), lambda b: (b, 0, 0, 0))]
                 + [_full_spec(w) for w in weights],
        out_specs=pl.BlockSpec((1, 1, 10), lambda b: (b, 0, 0)),
        compiler_params=pltpu.CompilerParams(
            dimension_semantics=("parallel",)),
    )(xc, *weights)
    return out.reshape(B, 10)


def _reference_forward(x_nchw, params):
    """Pure-XLA reference with the original torch layouts (self-check)."""
    dn = ("NCHW", "OIHW", "NCHW")
    y = jax.lax.conv_general_dilated(x_nchw, params["conv1_w"], (1, 1), "VALID",
                                     dimension_numbers=dn)
    y = jax.nn.relu(y + params["conv1_b"][None, :, None, None])
    y = jax.lax.reduce_window(y, -jnp.inf, jax.lax.max, (1, 1, 2, 2),
                              (1, 1, 2, 2), "VALID")
    y = jax.lax.conv_general_dilated(y, params["conv2_w"], (1, 1), "VALID",
                                     dimension_numbers=dn)
    y = jax.nn.relu(y + params["conv2_b"][None, :, None, None])
    y = jax.lax.reduce_window(y, -jnp.inf, jax.lax.max, (1, 1, 2, 2),
                              (1, 1, 2, 2), "VALID")
    y = y.reshape(y.shape[0], -1)                     # (B, 400) in (C, H, W) order
    y = jax.nn.relu(y @ params["fc1_w"].T + params["fc1_b"])
    y = jax.nn.relu(y @ params["fc2_w"].T + params["fc2_b"])
    return y @ params["fc3_w"].T + params["fc3_b"]


if __name__ == "__main__":
    key = jax.random.PRNGKey(0)
    k_x, k_p = jax.random.split(key)
    # Input must be 32x32 so the 16*5*5 flatten matches (as in the torch model).
    x = jax.random.normal(k_x, (2, 3, 32, 32), jnp.float32)
    params = init_params(k_p)
    kparams = prepare_params(params)      # one-time weight packing, outside the jit
    out = jax.block_until_ready(model1_forward(x, kparams))
    assert out.shape == (2, 10) and out.dtype == jnp.float32
    ref = jax.block_until_ready(_reference_forward(x, params))
    np.testing.assert_allclose(np.asarray(out), np.asarray(ref),
                               rtol=5e-2, atol=5e-2)
    print("KERNEL_OK")
</pallas_src>

<mosaic_0001>
module attributes {stable_mosaic.version = 11 : i64} {
  func.func @_lenet_fused_kernel(%arg0: i32, %arg1: memref<1x4x8x96xf32, #tpu.memory_space<vmem>>, %arg2: memref<5x2x96x84xf32, #tpu.memory_space<vmem>>, %arg3: memref<1x84xf32, #tpu.memory_space<vmem>>, %arg4: memref<5x2x84x80xf32, #tpu.memory_space<vmem>>, %arg5: memref<1x80xf32, #tpu.memory_space<vmem>>, %arg6: memref<5x80x120xf32, #tpu.memory_space<vmem>>, %arg7: memref<1x120xf32, #tpu.memory_space<vmem>>, %arg8: memref<120x84xf32, #tpu.memory_space<vmem>>, %arg9: memref<1x84xf32, #tpu.memory_space<vmem>>, %arg10: memref<84x10xf32, #tpu.memory_space<vmem>>, %arg11: memref<1x10xf32, #tpu.memory_space<vmem>>, %arg12: memref<1x1x10xf32, #tpu.memory_space<vmem>>) attributes {dimension_semantics = [#tpu.dimension_semantics<parallel>], iteration_bounds = array<i64: 2>, scalar_prefetch = 0 : i64, scratch_operands = 0 : i64, tpu.core_type = #tpu.core_type<tc>, window_params = [{transform_indices = @transform_0, window_bounds = array<i64: 1, 4, 8, 96>}, {pipeline_mode = #tpu.pipeline_mode<synchronous>, transform_indices = @transform_1, window_bounds = array<i64: 5, 2, 96, 84>}, {pipeline_mode = #tpu.pipeline_mode<synchronous>, transform_indices = @transform_2, window_bounds = array<i64: 1, 84>}, {pipeline_mode = #tpu.pipeline_mode<synchronous>, transform_indices = @transform_3, window_bounds = array<i64: 5, 2, 84, 80>}, {pipeline_mode = #tpu.pipeline_mode<synchronous>, transform_indices = @transform_4, window_bounds = array<i64: 1, 80>}, {pipeline_mode = #tpu.pipeline_mode<synchronous>, transform_indices = @transform_5, window_bounds = array<i64: 5, 80, 120>}, {pipeline_mode = #tpu.pipeline_mode<synchronous>, transform_indices = @transform_6, window_bounds = array<i64: 1, 120>}, {pipeline_mode = #tpu.pipeline_mode<synchronous>, transform_indices = @transform_7, window_bounds = array<i64: 120, 84>}, {pipeline_mode = #tpu.pipeline_mode<synchronous>, transform_indices = @transform_8, window_bounds = array<i64: 1, 84>}, {pipeline_mode = #tpu.pipeline_mode<synchronous>, transform_indices = @transform_9, window_bounds = array<i64: 84, 10>}, {pipeline_mode = #tpu.pipeline_mode<synchronous>, transform_indices = @transform_10, window_bounds = array<i64: 1, 10>}, {transform_indices = @transform_11, window_bounds = array<i64: 1, 1, 10>}]} {
    %cst = arith.constant 0.000000e+00 : f32
    %0 = vector.broadcast %cst : f32 to vector<7x84xf32>
    %c0 = arith.constant 0 : index
    %c0_0 = arith.constant 0 : index
    %c0_1 = arith.constant 0 : index
    %c0_2 = arith.constant 0 : index
    %1 = vector.load %arg1[%c0, %c0_0, %c0_1, %c0_2] : memref<1x4x8x96xf32, #tpu.memory_space<vmem>>, vector<1x1x7x96xf32>
    %2 = vector.shape_cast %1 : vector<1x1x7x96xf32> to vector<7x96xf32>
    %c0_3 = arith.constant 0 : index
    %c0_4 = arith.constant 0 : index
    %c0_5 = arith.constant 0 : index
    %c0_6 = arith.constant 0 : index
    %3 = vector.load %arg2[%c0_3, %c0_4, %c0_5, %c0_6] : memref<5x2x96x84xf32, #tpu.memory_space<vmem>>, vector<1x1x96x84xf32>
    %4 = vector.shape_cast %3 : vector<1x1x96x84xf32> to vector<96x84xf32>
    %cst_7 = arith.constant dense<0.000000e+00> : vector<7x84xf32>
    %5 = tpu.matmul %2, %4, %cst_7 {dimension_numbers = #tpu.dot_dimension_numbers<[1], [0], [0], [1], [0, 0, 1, 1], [], []>} : vector<7x96xf32>, vector<96x84xf32>, vector<7x84xf32> -> vector<7x84xf32>
    %6 = arith.addf %0, %5 : vector<7x84xf32>
    %c0_8 = arith.constant 0 : index
    %c1 = arith.constant 1 : index
    %c0_9 = arith.constant 0 : index
    %c0_10 = arith.constant 0 : index
    %7 = vector.load %arg1[%c0_8, %c1, %c0_9, %c0_10] : memref<1x4x8x96xf32, #tpu.memory_space<vmem>>, vector<1x1x7x96xf32>
    %8 = vector.shape_cast %7 : vector<1x1x7x96xf32> to vector<7x96xf32>
    %c1_11 = arith.constant 1 : index
    %c0_12 = arith.constant 0 : index
    %c0_13 = arith.constant 0 : index
    %c0_14 = arith.constant 0 : index
    %9 = vector.load %arg2[%c1_11, %c0_12, %c0_13, %c0_14] : memref<5x2x96x84xf32, #tpu.memory_space<vmem>>, vector<1x1x96x84xf32>
    %10 = vector.shape_cast %9 : vector<1x1x96x84xf32> to vector<96x84xf32>
    %cst_15 = arith.constant dense<0.000000e+00> : vector<7x84xf32>
    %11 = tpu.matmul %8, %10, %cst_15 {dimension_numbers = #tpu.dot_dimension_numbers<[1], [0], [0], [1], [0, 0, 1, 1], [], []>} : vector<7x96xf32>, vector<96x84xf32>, vector<7x84xf32> -> vector<7x84xf32>
    %12 = arith.addf %6, %11 : vector<7x84xf32>
    %c0_16 = arith.constant 0 : index
    %c2 = arith.constant 2 : index
    %c0_17 = arith.constant 0 : index
    %c0_18 = arith.constant 0 : index
    %13 = vector.load %arg1[%c0_16, %c2, %c0_17, %c0_18] : memref<1x4x8x96xf32, #tpu.memory_space<vmem>>, vector<1x1x7x96xf32>
    %14 = vector.shape_cast %13 : vector<1x1x7x96xf32> to vector<7x96xf32>
    %c2_19 = arith.constant 2 : index
    %c0_20 = arith.constant 0 : index
    %c0_21 = arith.constant 0 : index
    %c0_22 = arith.constant 0 : index
    %15 = vector.load %arg2[%c2_19, %c0_20, %c0_21, %c0_22] : memref<5x2x96x84xf32, #tpu.memory_space<vmem>>, vector<1x1x96x84xf32>
    %16 = vector.shape_cast %15 : vector<1x1x96x84xf32> to vector<96x84xf32>
    %cst_23 = arith.constant dense<0.000000e+00> : vector<7x84xf32>
    %17 = tpu.matmul %14, %16, %cst_23 {dimension_numbers = #tpu.dot_dimension_numbers<[1], [0], [0], [1], [0, 0, 1, 1], [], []>} : vector<7x96xf32>, vector<96x84xf32>, vector<7x84xf32> -> vector<7x84xf32>
    %18 = arith.addf %12, %17 : vector<7x84xf32>
    %c0_24 = arith.constant 0 : index
    %c3 = arith.constant 3 : index
    %c0_25 = arith.constant 0 : index
    %c0_26 = arith.constant 0 : index
    %19 = vector.load %arg1[%c0_24, %c3, %c0_25, %c0_26] : memref<1x4x8x96xf32, #tpu.memory_space<vmem>>, vector<1x1x7x96xf32>
    %20 = vector.shape_cast %19 : vector<1x1x7x96xf32> to vector<7x96xf32>
    %c3_27 = arith.constant 3 : index
    %c0_28 = arith.constant 0 : index
    %c0_29 = arith.constant 0 : index
    %c0_30 = arith.constant 0 : index
    %21 = vector.load %arg2[%c3_27, %c0_28, %c0_29, %c0_30] : memref<5x2x96x84xf32, #tpu.memory_space<vmem>>, vector<1x1x96x84xf32>
    %22 = vector.shape_cast %21 : vector<1x1x96x84xf32> to vector<96x84xf32>
    %cst_31 = arith.constant dense<0.000000e+00> : vector<7x84xf32>
    %23 = tpu.matmul %20, %22, %cst_31 {dimension_numbers = #tpu.dot_dimension_numbers<[1], [0], [0], [1], [0, 0, 1, 1], [], []>} : vector<7x96xf32>, vector<96x84xf32>, vector<7x84xf32> -> vector<7x84xf32>
    %24 = arith.addf %18, %23 : vector<7x84xf32>
    %c0_32 = arith.constant 0 : index
    %c0_33 = arith.constant 0 : index
    %c1_34 = arith.constant 1 : index
    %c0_35 = arith.constant 0 : index
    %25 = vector.load %arg1[%c0_32, %c0_33, %c1_34, %c0_35] : memref<1x4x8x96xf32, #tpu.memory_space<vmem>>, vector<1x1x7x96xf32>
    %26 = vector.shape_cast %25 : vector<1x1x7x96xf32> to vector<7x96xf32>
    %c4 = arith.constant 4 : index
    %c0_36 = arith.constant 0 : index
    %c0_37 = arith.constant 0 : index
    %c0_38 = arith.constant 0 : index
    %27 = vector.load %arg2[%c4, %c0_36, %c0_37, %c0_38] : memref<5x2x96x84xf32, #tpu.memory_space<vmem>>, vector<1x1x96x84xf32>
    %28 = vector.shape_cast %27 : vector<1x1x96x84xf32> to vector<96x84xf32>
    %cst_39 = arith.constant dense<0.000000e+00> : vector<7x84xf32>
    %29 = tpu.matmul %26, %28, %cst_39 {dimension_numbers = #tpu.dot_dimension_numbers<[1], [0], [0], [1], [0, 0, 1, 1], [], []>} : vector<7x96xf32>, vector<96x84xf32>, vector<7x84xf32> -> vector<7x84xf32>
    %30 = arith.addf %24, %29 : vector<7x84xf32>
    %cst_40 = arith.constant 0.000000e+00 : f32
    %31 = vector.broadcast %cst_40 : f32 to vector<7x84xf32>
    %c0_41 = arith.constant 0 : index
    %c0_42 = arith.constant 0 : index
    %c0_43 = arith.constant 0 : index
    %c0_44 = arith.constant 0 : index
    %32 = vector.load %arg1[%c0_41, %c0_42, %c0_43, %c0_44] : memref<1x4x8x96xf32, #tpu.memory_space<vmem>>, vector<1x1x7x96xf32>
    %33 = vector.shape_cast %32 : vector<1x1x7x96xf32> to vector<7x96xf32>
    %c0_45 = arith.constant 0 : index
    %c1_46 = arith.constant 1 : index
    %c0_47 = arith.constant 0 : index
    %c0_48 = arith.constant 0 : index
    %34 = vector.load %arg2[%c0_45, %c1_46, %c0_47, %c0_48] : memref<5x2x96x84xf32, #tpu.memory_space<vmem>>, vector<1x1x96x84xf32>
    %35 = vector.shape_cast %34 : vector<1x1x96x84xf32> to vector<96x84xf32>
    %cst_49 = arith.constant dense<0.000000e+00> : vector<7x84xf32>
    %36 = tpu.matmul %33, %35, %cst_49 {dimension_numbers = #tpu.dot_dimension_numbers<[1], [0], [0], [1], [0, 0, 1, 1], [], []>} : vector<7x96xf32>, vector<96x84xf32>, vector<7x84xf32> -> vector<7x84xf32>
    %37 = arith.addf %31, %36 : vector<7x84xf32>
    %c0_50 = arith.constant 0 : index
    %c1_51 = arith.constant 1 : index
    %c0_52 = arith.constant 0 : index
    %c0_53 = arith.constant 0 : index
    %38 = vector.load %arg1[%c0_50, %c1_51, %c0_52, %c0_53] : memref<1x4x8x96xf32, #tpu.memory_space<vmem>>, vector<1x1x7x96xf32>
    %39 = vector.shape_cast %38 : vector<1x1x7x96xf32> to vector<7x96xf32>
    %c1_54 = arith.constant 1 : index
    %c1_55 = arith.constant 1 : index
    %c0_56 = arith.constant 0 : index
    %c0_57 = arith.constant 0 : index
    %40 = vector.load %arg2[%c1_54, %c1_55, %c0_56, %c0_57] : memref<5x2x96x84xf32, #tpu.memory_space<vmem>>, vector<1x1x96x84xf32>
    %41 = vector.shape_cast %40 : vector<1x1x96x84xf32> to vector<96x84xf32>
    %cst_58 = arith.constant dense<0.000000e+00> : vector<7x84xf32>
    %42 = tpu.matmul %39, %41, %cst_58 {dimension_numbers = #tpu.dot_dimension_numbers<[1], [0], [0], [1], [0, 0, 1, 1], [], []>} : vector<7x96xf32>, vector<96x84xf32>, vector<7x84xf32> -> vector<7x84xf32>
    %43 = arith.addf %37, %42 : vector<7x84xf32>
    %c0_59 = arith.constant 0 : index
    %c2_60 = arith.constant 2 : index
    %c0_61 = arith.constant 0 : index
    %c0_62 = arith.constant 0 : index
    %44 = vector.load %arg1[%c0_59, %c2_60, %c0_61, %c0_62] : memref<1x4x8x96xf32, #tpu.memory_space<vmem>>, vector<1x1x7x96xf32>
    %45 = vector.shape_cast %44 : vector<1x1x7x96xf32> to vector<7x96xf32>
    %c2_63 = arith.constant 2 : index
    %c1_64 = arith.constant 1 : index
    %c0_65 = arith.constant 0 : index
    %c0_66 = arith.constant 0 : index
    %46 = vector.load %arg2[%c2_63, %c1_64, %c0_65, %c0_66] : memref<5x2x96x84xf32, #tpu.memory_space<vmem>>, vector<1x1x96x84xf32>
    %47 = vector.shape_cast %46 : vector<1x1x96x84xf32> to vector<96x84xf32>
    %cst_67 = arith.constant dense<0.000000e+00> : vector<7x84xf32>
    %48 = tpu.matmul %45, %47, %cst_67 {dimension_numbers = #tpu.dot_dimension_numbers<[1], [0], [0], [1], [0, 0, 1, 1], [], []>} : vector<7x96xf32>, vector<96x84xf32>, vector<7x84xf32> -> vector<7x84xf32>
    %49 = arith.addf %43, %48 : vector<7x84xf32>
    %c0_68 = arith.constant 0 : index
    %c3_69 = arith.constant 3 : index
    %c0_70 = arith.constant 0 : index
    %c0_71 = arith.constant 0 : index
    %50 = vector.load %arg1[%c0_68, %c3_69, %c0_70, %c0_71] : memref<1x4x8x96xf32, #tpu.memory_space<vmem>>, vector<1x1x7x96xf32>
    %51 = vector.shape_cast %50 : vector<1x1x7x96xf32> to vector<7x96xf32>
    %c3_72 = arith.constant 3 : index
    %c1_73 = arith.constant 1 : index
    %c0_74 = arith.constant 0 : index
    %c0_75 = arith.constant 0 : index
    %52 = vector.load %arg2[%c3_72, %c1_73, %c0_74, %c0_75] : memref<5x2x96x84xf32, #tpu.memory_space<vmem>>, vector<1x1x96x84xf32>
    %53 = vector.shape_cast %52 : vector<1x1x96x84xf32> to vector<96x84xf32>
    %cst_76 = arith.constant dense<0.000000e+00> : vector<7x84xf32>
    %54 = tpu.matmul %51, %53, %cst_76 {dimension_numbers = #tpu.dot_dimension_numbers<[1], [0], [0], [1], [0, 0, 1, 1], [], []>} : vector<7x96xf32>, vector<96x84xf32>, vector<7x84xf32> -> vector<7x84xf32>
    %55 = arith.addf %49, %54 : vector<7x84xf32>
    %c0_77 = arith.constant 0 : index
    %c0_78 = arith.constant 0 : index
    %c1_79 = arith.constant 1 : index
    %c0_80 = arith.constant 0 : index
    %56 = vector.load %arg1[%c0_77, %c0_78, %c1_79, %c0_80] : memref<1x4x8x96xf32, #tpu.memory_space<vmem>>, vector<1x1x7x96xf32>
    %57 = vector.shape_cast %56 : vector<1x1x7x96xf32> to vector<7x96xf32>
    %c4_81 = arith.constant 4 : index
    %c1_82 = arith.constant 1 : index
    %c0_83 = arith.constant 0 : index
    %c0_84 = arith.constant 0 : index
    %58 = vector.load %arg2[%c4_81, %c1_82, %c0_83, %c0_84] : memref<5x2x96x84xf32, #tpu.memory_space<vmem>>, vector<1x1x96x84xf32>
    %59 = vector.shape_cast %58 : vector<1x1x96x84xf32> to vector<96x84xf32>
    %cst_85 = arith.constant dense<0.000000e+00> : vector<7x84xf32>
    %60 = tpu.matmul %57, %59, %cst_85 {dimension_numbers = #tpu.dot_dimension_numbers<[1], [0], [0], [1], [0, 0, 1, 1], [], []>} : vector<7x96xf32>, vector<96x84xf32>, vector<7x84xf32> -> vector<7x84xf32>
    %61 = arith.addf %55, %60 : vector<7x84xf32>
    %62 = arith.maximumf %30, %61 : vector<7x84xf32>
    %cst_86 = arith.constant 0.000000e+00 : f32
    %63 = vector.broadcast %cst_86 : f32 to vector<7x84xf32>
    %c0_87 = arith.constant 0 : index
    %c1_88 = arith.constant 1 : index
    %c0_89 = arith.constant 0 : index
    %c0_90 = arith.constant 0 : index
    %64 = vector.load %arg1[%c0_87, %c1_88, %c0_89, %c0_90] : memref<1x4x8x96xf32, #tpu.memory_space<vmem>>, vector<1x1x7x96xf32>
    %65 = vector.shape_cast %64 : vector<1x1x7x96xf32> to vector<7x96xf32>
    %c0_91 = arith.constant 0 : index
    %c0_92 = arith.constant 0 : index
    %c0_93 = arith.constant 0 : index
    %c0_94 = arith.constant 0 : index
    %66 = vector.load %arg2[%c0_91, %c0_92, %c0_93, %c0_94] : memref<5x2x96x84xf32, #tpu.memory_space<vmem>>, vector<1x1x96x84xf32>
    %67 = vector.shape_cast %66 : vector<1x1x96x84xf32> to vector<96x84xf32>
    %cst_95 = arith.constant dense<0.000000e+00> : vector<7x84xf32>
    %68 = tpu.matmul %65, %67, %cst_95 {dimension_numbers = #tpu.dot_dimension_numbers<[1], [0], [0], [1], [0, 0, 1, 1], [], []>} : vector<7x96xf32>, vector<96x84xf32>, vector<7x84xf32> -> vector<7x84xf32>
    %69 = arith.addf %63, %68 : vector<7x84xf32>
    %c0_96 = arith.constant 0 : index
    %c2_97 = arith.constant 2 : index
    %c0_98 = arith.constant 0 : index
    %c0_99 = arith.constant 0 : index
    %70 = vector.load %arg1[%c0_96, %c2_97, %c0_98, %c0_99] : memref<1x4x8x96xf32, #tpu.memory_space<vmem>>, vector<1x1x7x96xf32>
    %71 = vector.shape_cast %70 : vector<1x1x7x96xf32> to vector<7x96xf32>
    %c1_100 = arith.constant 1 : index
    %c0_101 = arith.constant 0 : index
    %c0_102 = arith.constant 0 : index
    %c0_103 = arith.constant 0 : index
    %72 = vector.load %arg2[%c1_100, %c0_101, %c0_102, %c0_103] : memref<5x2x96x84xf32, #tpu.memory_space<vmem>>, vector<1x1x96x84xf32>
    %73 = vector.shape_cast %72 : vector<1x1x96x84xf32> to vector<96x84xf32>
    %cst_104 = arith.constant dense<0.000000e+00> : vector<7x84xf32>
    %74 = tpu.matmul %71, %73, %cst_104 {dimension_numbers = #tpu.dot_dimension_numbers<[1], [0], [0], [1], [0, 0, 1, 1], [], []>} : vector<7x96xf32>, vector<96x84xf32>, vector<7x84xf32> -> vector<7x84xf32>
    %75 = arith.addf %69, %74 : vector<7x84xf32>
    %c0_105 = arith.constant 0 : index
    %c3_106 = arith.constant 3 : index
    %c0_107 = arith.constant 0 : index
    %c0_108 = arith.constant 0 : index
    %76 = vector.load %arg1[%c0_105, %c3_106, %c0_107, %c0_108] : memref<1x4x8x96xf32, #tpu.memory_space<vmem>>, vector<1x1x7x96xf32>
    %77 = vector.shape_cast %76 : vector<1x1x7x96xf32> to vector<7x96xf32>
    %c2_109 = arith.constant 2 : index
    %c0_110 = arith.constant 0 : index
    %c0_111 = arith.constant 0 : index
    %c0_112 = arith.constant 0 : index
    %78 = vector.load %arg2[%c2_109, %c0_110, %c0_111, %c0_112] : memref<5x2x96x84xf32, #tpu.memory_space<vmem>>, vector<1x1x96x84xf32>
    %79 = vector.shape_cast %78 : vector<1x1x96x84xf32> to vector<96x84xf32>
    %cst_113 = arith.constant dense<0.000000e+00> : vector<7x84xf32>
    %80 = tpu.matmul %77, %79, %cst_113 {dimension_numbers = #tpu.dot_dimension_numbers<[1], [0], [0], [1], [0, 0, 1, 1], [], []>} : vector<7x96xf32>, vector<96x84xf32>, vector<7x84xf32> -> vector<7x84xf32>
    %81 = arith.addf %75, %80 : vector<7x84xf32>
    %c0_114 = arith.constant 0 : index
    %c0_115 = arith.constant 0 : index
    %c1_116 = arith.constant 1 : index
    %c0_117 = arith.constant 0 : index
    %82 = vector.load %arg1[%c0_114, %c0_115, %c1_116, %c0_117] : memref<1x4x8x96xf32, #tpu.memory_space<vmem>>, vector<1x1x7x96xf32>
    %83 = vector.shape_cast %82 : vector<1x1x7x96xf32> to vector<7x96xf32>
    %c3_118 = arith.constant 3 : index
    %c0_119 = arith.constant 0 : index
    %c0_120 = arith.constant 0 : index
    %c0_121 = arith.constant 0 : index
    %84 = vector.load %arg2[%c3_118, %c0_119, %c0_120, %c0_121] : memref<5x2x96x84xf32, #tpu.memory_space<vmem>>, vector<1x1x96x84xf32>
    %85 = vector.shape_cast %84 : vector<1x1x96x84xf32> to vector<96x84xf32>
    %cst_122 = arith.constant dense<0.000000e+00> : vector<7x84xf32>
    %86 = tpu.matmul %83, %85, %cst_122 {dimension_numbers = #tpu.dot_dimension_numbers<[1], [0], [0], [1], [0, 0, 1, 1], [], []>} : vector<7x96xf32>, vector<96x84xf32>, vector<7x84xf32> -> vector<7x84xf32>
    %87 = arith.addf %81, %86 : vector<7x84xf32>
    %c0_123 = arith.constant 0 : index
    %c1_124 = arith.constant 1 : index
    %c1_125 = arith.constant 1 : index
    %c0_126 = arith.constant 0 : index
    %88 = vector.load %arg1[%c0_123, %c1_124, %c1_125, %c0_126] : memref<1x4x8x96xf32, #tpu.memory_space<vmem>>, vector<1x1x7x96xf32>
    %89 = vector.shape_cast %88 : vector<1x1x7x96xf32> to vector<7x96xf32>
    %c4_127 = arith.constant 4 : index
    %c0_128 = arith.constant 0 : index
    %c0_129 = arith.constant 0 : index
    %c0_130 = arith.constant 0 : index
    %90 = vector.load %arg2[%c4_127, %c0_128, %c0_129, %c0_130] : memref<5x2x96x84xf32, #tpu.memory_space<vmem>>, vector<1x1x96x84xf32>
    %91 = vector.shape_cast %90 : vector<1x1x96x84xf32> to vector<96x84xf32>
    %cst_131 = arith.constant dense<0.000000e+00> : vector<7x84xf32>
    %92 = tpu.matmul %89, %91, %cst_131 {dimension_numbers = #tpu.dot_dimension_numbers<[1], [0], [0], [1], [0, 0, 1, 1], [], []>} : vector<7x96xf32>, vector<96x84xf32>, vector<7x84xf32> -> vector<7x84xf32>
    %93 = arith.addf %87, %92 : vector<7x84xf32>
    %94 = arith.maximumf %62, %93 : vector<7x84xf32>
    %cst_132 = arith.constant 0.000000e+00 : f32
    %95 = vector.broadcast %cst_132 : f32 to vector<7x84xf32>
    %c0_133 = arith.constant 0 : index
    %c1_134 = arith.constant 1 : index
    %c0_135 = arith.constant 0 : index
    %c0_136 = arith.constant 0 : index
    %96 = vector.load %arg1[%c0_133, %c1_134, %c0_135, %c0_136] : memref<1x4x8x96xf32, #tpu.memory_space<vmem>>, vector<1x1x7x96xf32>
    %97 = vector.shape_cast %96 : vector<1x1x7x96xf32> to vector<7x96xf32>
    %c0_137 = arith.constant 0 : index
    %c1_138 = arith.constant 1 : index
    %c0_139 = arith.constant 0 : index
    %c0_140 = arith.constant 0 : index
    %98 = vector.load %arg2[%c0_137, %c1_138, %c0_139, %c0_140] : memref<5x2x96x84xf32, #tpu.memory_space<vmem>>, vector<1x1x96x84xf32>
    %99 = vector.shape_cast %98 : vector<1x1x96x84xf32> to vector<96x84xf32>
    %cst_141 = arith.constant dense<0.000000e+00> : vector<7x84xf32>
    %100 = tpu.matmul %97, %99, %cst_141 {dimension_numbers = #tpu.dot_dimension_numbers<[1], [0], [0], [1], [0, 0, 1, 1], [], []>} : vector<7x96xf32>, vector<96x84xf32>, vector<7x84xf32> -> vector<7x84xf32>
    %101 = arith.addf %95, %100 : vector<7x84xf32>
    %c0_142 = arith.constant 0 : index
    %c2_143 = arith.constant 2 : index
    %c0_144 = arith.constant 0 : index
    %c0_145 = arith.constant 0 : index
    %102 = vector.load %arg1[%c0_142, %c2_143, %c0_144, %c0_145] : memref<1x4x8x96xf32, #tpu.memory_space<vmem>>, vector<1x1x7x96xf32>
    %103 = vector.shape_cast %102 : vector<1x1x7x96xf32> to vector<7x96xf32>
    %c1_146 = arith.constant 1 : index
    %c1_147 = arith.constant 1 : index
    %c0_148 = arith.constant 0 : index
    %c0_149 = arith.constant 0 : index
    %104 = vector.load %arg2[%c1_146, %c1_147, %c0_148, %c0_149] : memref<5x2x96x84xf32, #tpu.memory_space<vmem>>, vector<1x1x96x84xf32>
    %105 = vector.shape_cast %104 : vector<1x1x96x84xf32> to vector<96x84xf32>
    %cst_150 = arith.constant dense<0.000000e+00> : vector<7x84xf32>
    %106 = tpu.matmul %103, %105, %cst_150 {dimension_numbers = #tpu.dot_dimension_numbers<[1], [0], [0], [1], [0, 0, 1, 1], [], []>} : vector<7x96xf32>, vector<96x84xf32>, vector<7x84xf32> -> vector<7x84xf32>
    %107 = arith.addf %101, %106 : vector<7x84xf32>
    %c0_151 = arith.constant 0 : index
    %c3_152 = arith.constant 3 : index
    %c0_153 = arith.constant 0 : index
    %c0_154 = arith.constant 0 : index
    %108 = vector.load %arg1[%c0_151, %c3_152, %c0_153, %c0_154] : memref<1x4x8x96xf32, #tpu.memory_space<vmem>>, vector<1x1x7x96xf32>
    %109 = vector.shape_cast %108 : vector<1x1x7x96xf32> to vector<7x96xf32>
    %c2_155 = arith.constant 2 : index
    %c1_156 = arith.constant 1 : index
    %c0_157 = arith.constant 0 : index
    %c0_158 = arith.constant 0 : index
    %110 = vector.load %arg2[%c2_155, %c1_156, %c0_157, %c0_158] : memref<5x2x96x84xf32, #tpu.memory_space<vmem>>, vector<1x1x96x84xf32>
    %111 = vector.shape_cast %110 : vector<1x1x96x84xf32> to vector<96x84xf32>
    %cst_159 = arith.constant dense<0.000000e+00> : vector<7x84xf32>
    %112 = tpu.matmul %109, %111, %cst_159 {dimension_numbers = #tpu.dot_dimension_numbers<[1], [0], [0], [1], [0, 0, 1, 1], [], []>} : vector<7x96xf32>, vector<96x84xf32>, vector<7x84xf32> -> vector<7x84xf32>
    %113 = arith.addf %107, %112 : vector<7x84xf32>
    %c0_160 = arith.constant 0 : index
    %c0_161 = arith.constant 0 : index
    %c1_162 = arith.constant 1 : index
    %c0_163 = arith.constant 0 : index
    %114 = vector.load %arg1[%c0_160, %c0_161, %c1_162, %c0_163] : memref<1x4x8x96xf32, #tpu.memory_space<vmem>>, vector<1x1x7x96xf32>
    %115 = vector.shape_cast %114 : vector<1x1x7x96xf32> to vector<7x96xf32>
    %c3_164 = arith.constant 3 : index
    %c1_165 = arith.constant 1 : index
    %c0_166 = arith.constant 0 : index
    %c0_167 = arith.constant 0 : index
    %116 = vector.load %arg2[%c3_164, %c1_165, %c0_166, %c0_167] : memref<5x2x96x84xf32, #tpu.memory_space<vmem>>, vector<1x1x96x84xf32>
    %117 = vector.shape_cast %116 : vector<1x1x96x84xf32> to vector<96x84xf32>
    %cst_168 = arith.constant dense<0.000000e+00> : vector<7x84xf32>
    %118 = tpu.matmul %115, %117, %cst_168 {dimension_numbers = #tpu.dot_dimension_numbers<[1], [0], [0], [1], [0, 0, 1, 1], [], []>} : vector<7x96xf32>, vector<96x84xf32>, vector<7x84xf32> -> vector<7x84xf32>
    %119 = arith.addf %113, %118 : vector<7x84xf32>
    %c0_169 = arith.constant 0 : index
    %c1_170 = arith.constant 1 : index
    %c1_171 = arith.constant 1 : index
    %c0_172 = arith.constant 0 : index
    %120 = vector.load %arg1[%c0_169, %c1_170, %c1_171, %c0_172] : memref<1x4x8x96xf32, #tpu.memory_space<vmem>>, vector<1x1x7x96xf32>
    %121 = vector.shape_cast %120 : vector<1x1x7x96xf32> to vector<7x96xf32>
    %c4_173 = arith.constant 4 : index
    %c1_174 = arith.constant 1 : index
    %c0_175 = arith.constant 0 : index
    %c0_176 = arith.constant 0 : index
    %122 = vector.load %arg2[%c4_173, %c1_174, %c0_175, %c0_176] : memref<5x2x96x84xf32, #tpu.memory_space<vmem>>, vector<1x1x96x84xf32>
    %123 = vector.shape_cast %122 : vector<1x1x96x84xf32> to vector<96x84xf32>
    %cst_177 = arith.constant dense<0.000000e+00> : vector<7x84xf32>
    %124 = tpu.matmul %121, %123, %cst_177 {dimension_numbers = #tpu.dot_dimension_numbers<[1], [0], [0], [1], [0, 0, 1, 1], [], []>} : vector<7x96xf32>, vector<96x84xf32>, vector<7x84xf32> -> vector<7x84xf32>
    %125 = arith.addf %119, %124 : vector<7x84xf32>
    %126 = arith.maximumf %94, %125 : vector<7x84xf32>
    %c0_178 = arith.constant 0 : index
    %c0_179 = arith.constant 0 : index
    %127 = vector.load %arg3[%c0_178, %c0_179] : memref<1x84xf32, #tpu.memory_space<vmem>>, vector<1x84xf32>
    %128 = vector.broadcast %127 : vector<1x84xf32> to vector<7x84xf32>
    %129 = arith.addf %126, %128 : vector<7x84xf32>
    %cst_180 = arith.constant 0.000000e+00 : f32
    %130 = vector.broadcast %cst_180 : f32 to vector<7x84xf32>
    %131 = arith.maximumf %129, %130 : vector<7x84xf32>
    %cst_181 = arith.constant 0.000000e+00 : f32
    %132 = vector.broadcast %cst_181 : f32 to vector<7x84xf32>
    %c0_182 = arith.constant 0 : index
    %c2_183 = arith.constant 2 : index
    %c0_184 = arith.constant 0 : index
    %c0_185 = arith.constant 0 : index
    %133 = vector.load %arg1[%c0_182, %c2_183, %c0_184, %c0_185] : memref<1x4x8x96xf32, #tpu.memory_space<vmem>>, vector<1x1x7x96xf32>
    %134 = vector.shape_cast %133 : vector<1x1x7x96xf32> to vector<7x96xf32>
    %c0_186 = arith.constant 0 : index
    %c0_187 = arith.constant 0 : index
    %c0_188 = arith.constant 0 : index
    %c0_189 = arith.constant 0 : index
    %135 = vector.load %arg2[%c0_186, %c0_187, %c0_188, %c0_189] : memref<5x2x96x84xf32, #tpu.memory_space<vmem>>, vector<1x1x96x84xf32>
    %136 = vector.shape_cast %135 : vector<1x1x96x84xf32> to vector<96x84xf32>
    %cst_190 = arith.constant dense<0.000000e+00> : vector<7x84xf32>
    %137 = tpu.matmul %134, %136, %cst_190 {dimension_numbers = #tpu.dot_dimension_numbers<[1], [0], [0], [1], [0, 0, 1, 1], [], []>} : vector<7x96xf32>, vector<96x84xf32>, vector<7x84xf32> -> vector<7x84xf32>
    %138 = arith.addf %132, %137 : vector<7x84xf32>
    %c0_191 = arith.constant 0 : index
    %c3_192 = arith.constant 3 : index
    %c0_193 = arith.constant 0 : index
    %c0_194 = arith.constant 0 : index
    %139 = vector.load %arg1[%c0_191, %c3_192, %c0_193, %c0_194] : memref<1x4x8x96xf32, #tpu.memory_space<vmem>>, vector<1x1x7x96xf32>
    %140 = vector.shape_cast %139 : vector<1x1x7x96xf32> to vector<7x96xf32>
    %c1_195 = arith.constant 1 : index
    %c0_196 = arith.constant 0 : index
    %c0_197 = arith.constant 0 : index
    %c0_198 = arith.constant 0 : index
    %141 = vector.load %arg2[%c1_195, %c0_196, %c0_197, %c0_198] : memref<5x2x96x84xf32, #tpu.memory_space<vmem>>, vector<1x1x96x84xf32>
    %142 = vector.shape_cast %141 : vector<1x1x96x84xf32> to vector<96x84xf32>
    %cst_199 = arith.constant dense<0.000000e+00> : vector<7x84xf32>
    %143 = tpu.matmul %140, %142, %cst_199 {dimension_numbers = #tpu.dot_dimension_numbers<[1], [0], [0], [1], [0, 0, 1, 1], [], []>} : vector<7x96xf32>, vector<96x84xf32>, vector<7x84xf32> -> vector<7x84xf32>
    %144 = arith.addf %138, %143 : vector<7x84xf32>
    %c0_200 = arith.constant 0 : index
    %c0_201 = arith.constant 0 : index
    %c1_202 = arith.constant 1 : index
    %c0_203 = arith.constant 0 : index
    %145 = vector.load %arg1[%c0_200, %c0_201, %c1_202, %c0_203] : memref<1x4x8x96xf32, #tpu.memory_space<vmem>>, vector<1x1x7x96xf32>
    %146 = vector.shape_cast %145 : vector<1x1x7x96xf32> to vector<7x96xf32>
    %c2_204 = arith.constant 2 : index
    %c0_205 = arith.constant 0 : index
    %c0_206 = arith.constant 0 : index
    %c0_207 = arith.constant 0 : index
    %147 = vector.load %arg2[%c2_204, %c0_205, %c0_206, %c0_207] : memref<5x2x96x84xf32, #tpu.memory_space<vmem>>, vector<1x1x96x84xf32>
    %148 = vector.shape_cast %147 : vector<1x1x96x84xf32> to vector<96x84xf32>
    %cst_208 = arith.constant dense<0.000000e+00> : vector<7x84xf32>
    %149 = tpu.matmul %146, %148, %cst_208 {dimension_numbers = #tpu.dot_dimension_numbers<[1], [0], [0], [1], [0, 0, 1, 1], [], []>} : vector<7x96xf32>, vector<96x84xf32>, vector<7x84xf32> -> vector<7x84xf32>
    %150 = arith.addf %144, %149 : vector<7x84xf32>
    %c0_209 = arith.constant 0 : index
    %c1_210 = arith.constant 1 : index
    %c1_211 = arith.constant 1 : index
    %c0_212 = arith.constant 0 : index
    %151 = vector.load %arg1[%c0_209, %c1_210, %c1_211, %c0_212] : memref<1x4x8x96xf32, #tpu.memory_space<vmem>>, vector<1x1x7x96xf32>
    %152 = vector.shape_cast %151 : vector<1x1x7x96xf32> to vector<7x96xf32>
    %c3_213 = arith.constant 3 : index
    %c0_214 = arith.constant 0 : index
    %c0_215 = arith.constant 0 : index
    %c0_216 = arith.constant 0 : index
    %153 = vector.load %arg2[%c3_213, %c0_214, %c0_215, %c0_216] : memref<5x2x96x84xf32, #tpu.memory_space<vmem>>, vector<1x1x96x84xf32>
    %154 = vector.shape_cast %153 : vector<1x1x96x84xf32> to vector<96x84xf32>
    %cst_217 = arith.constant dense<0.000000e+00> : vector<7x84xf32>
    %155 = tpu.matmul %152, %154, %cst_217 {dimension_numbers = #tpu.dot_dimension_numbers<[1], [0], [0], [1], [0, 0, 1, 1], [], []>} : vector<7x96xf32>, vector<96x84xf32>, vector<7x84xf32> -> vector<7x84xf32>
    %156 = arith.addf %150, %155 : vector<7x84xf32>
    %c0_218 = arith.constant 0 : index
    %c2_219 = arith.constant 2 : index
    %c1_220 = arith.constant 1 : index
    %c0_221 = arith.constant 0 : index
    %157 = vector.load %arg1[%c0_218, %c2_219, %c1_220, %c0_221] : memref<1x4x8x96xf32, #tpu.memory_space<vmem>>, vector<1x1x7x96xf32>
    %158 = vector.shape_cast %157 : vector<1x1x7x96xf32> to vector<7x96xf32>
    %c4_222 = arith.constant 4 : index
    %c0_223 = arith.constant 0 : index
    %c0_224 = arith.constant 0 : index
    %c0_225 = arith.constant 0 : index
    %159 = vector.load %arg2[%c4_222, %c0_223, %c0_224, %c0_225] : memref<5x2x96x84xf32, #tpu.memory_space<vmem>>, vector<1x1x96x84xf32>
    %160 = vector.shape_cast %159 : vector<1x1x96x84xf32> to vector<96x84xf32>
    %cst_226 = arith.constant dense<0.000000e+00> : vector<7x84xf32>
    %161 = tpu.matmul %158, %160, %cst_226 {dimension_numbers = #tpu.dot_dimension_numbers<[1], [0], [0], [1], [0, 0, 1, 1], [], []>} : vector<7x96xf32>, vector<96x84xf32>, vector<7x84xf32> -> vector<7x84xf32>
    %162 = arith.addf %156, %161 : vector<7x84xf32>
    %cst_227 = arith.constant 0.000000e+00 : f32
    %163 = vector.broadcast %cst_227 : f32 to vector<7x84xf32>
    %c0_228 = arith.constant 0 : index
    %c2_229 = arith.constant 2 : index
    %c0_230 = arith.constant 0 : index
    %c0_231 = arith.constant 0 : index
    %164 = vector.load %arg1[%c0_228, %c2_229, %c0_230, %c0_231] : memref<1x4x8x96xf32, #tpu.memory_space<vmem>>, vector<1x1x7x96xf32>
    %165 = vector.shape_cast %164 : vector<1x1x7x96xf32> to vector<7x96xf32>
    %c0_232 = arith.constant 0 : index
    %c1_233 = arith.constant 1 : index
    %c0_234 = arith.constant 0 : index
    %c0_235 = arith.constant 0 : index
    %166 = vector.load %arg2[%c0_232, %c1_233, %c0_234, %c0_235] : memref<5x2x96x84xf32, #tpu.memory_space<vmem>>, vector<1x1x96x84xf32>
    %167 = vector.shape_cast %166 : vector<1x1x96x84xf32> to vector<96x84xf32>
    %cst_236 = arith.constant dense<0.000000e+00> : vector<7x84xf32>
    %168 = tpu.matmul %165, %167, %cst_236 {dimension_numbers = #tpu.dot_dimension_numbers<[1], [0], [0], [1], [0, 0, 1, 1], [], []>} : vector<7x96xf32>, vector<96x84xf32>, vector<7x84xf32> -> vector<7x84xf32>
    %169 = arith.addf %163, %168 : vector<7x84xf32>
    %c0_237 = arith.constant 0 : index
    %c3_238 = arith.constant 3 : index
    %c0_239 = arith.constant 0 : index
    %c0_240 = arith.constant 0 : index
    %170 = vector.load %arg1[%c0_237, %c3_238, %c0_239, %c0_240] : memref<1x4x8x96xf32, #tpu.memory_space<vmem>>, vector<1x1x7x96xf32>
    %171 = vector.shape_cast %170 : vector<1x1x7x96xf32> to vector<7x96xf32>
    %c1_241 = arith.constant 1 : index
    %c1_242 = arith.constant 1 : index
    %c0_243 = arith.constant 0 : index
    %c0_244 = arith.constant 0 : index
    %172 = vector.load %arg2[%c1_241, %c1_242, %c0_243, %c0_244] : memref<5x2x96x84xf32, #tpu.memory_space<vmem>>, vector<1x1x96x84xf32>
    %173 = vector.shape_cast %172 : vector<1x1x96x84xf32> to vector<96x84xf32>
    %cst_245 = arith.constant dense<0.000000e+00> : vector<7x84xf32>
    %174 = tpu.matmul %171, %173, %cst_245 {dimension_numbers = #tpu.dot_dimension_numbers<[1], [0], [0], [1], [0, 0, 1, 1], [], []>} : vector<7x96xf32>, vector<96x84xf32>, vector<7x84xf32> -> vector<7x84xf32>
    %175 = arith.addf %169, %174 : vector<7x84xf32>
    %c0_246 = arith.constant 0 : index
    %c0_247 = arith.constant 0 : index
    %c1_248 = arith.constant 1 : index
    %c0_249 = arith.constant 0 : index
    %176 = vector.load %arg1[%c0_246, %c0_247, %c1_248, %c0_249] : memref<1x4x8x96xf32, #tpu.memory_space<vmem>>, vector<1x1x7x96xf32>
    %177 = vector.shape_cast %176 : vector<1x1x7x96xf32> to vector<7x96xf32>
    %c2_250 = arith.constant 2 : index
    %c1_251 = arith.constant 1 : index
    %c0_252 = arith.constant 0 : index
    %c0_253 = arith.constant 0 : index
    %178 = vector.load %arg2[%c2_250, %c1_251, %c0_252, %c0_253] : memref<5x2x96x84xf32, #tpu.memory_space<vmem>>, vector<1x1x96x84xf32>
    %179 = vector.shape_cast %178 : vector<1x1x96x84xf32> to vector<96x84xf32>
    %cst_254 = arith.constant dense<0.000000e+00> : vector<7x84xf32>
    %180 = tpu.matmul %177, %179, %cst_254 {dimension_numbers = #tpu.dot_dimension_numbers<[1], [0], [0], [1], [0, 0, 1, 1], [], []>} : vector<7x96xf32>, vector<96x84xf32>, vector<7x84xf32> -> vector<7x84xf32>
    %181 = arith.addf %175, %180 : vector<7x84xf32>
    %c0_255 = arith.constant 0 : index
    %c1_256 = arith.constant 1 : index
    %c1_257 = arith.constant 1 : index
    %c0_258 = arith.constant 0 : index
    %182 = vector.load %arg1[%c0_255, %c1_256, %c1_257, %c0_258] : memref<1x4x8x96xf32, #tpu.memory_space<vmem>>, vector<1x1x7x96xf32>
    %183 = vector.shape_cast %182 : vector<1x1x7x96xf32> to vector<7x96xf32>
    %c3_259 = arith.constant 3 : index
    %c1_260 = arith.constant 1 : index
    %c0_261 = arith.constant 0 : index
    %c0_262 = arith.constant 0 : index
    %184 = vector.load %arg2[%c3_259, %c1_260, %c0_261, %c0_262] : memref<5x2x96x84xf32, #tpu.memory_space<vmem>>, vector<1x1x96x84xf32>
    %185 = vector.shape_cast %184 : vector<1x1x96x84xf32> to vector<96x84xf32>
    %cst_263 = arith.constant dense<0.000000e+00> : vector<7x84xf32>
    %186 = tpu.matmul %183, %185, %cst_263 {dimension_numbers = #tpu.dot_dimension_numbers<[1], [0], [0], [1], [0, 0, 1, 1], [], []>} : vector<7x96xf32>, vector<96x84xf32>, vector<7x84xf32> -> vector<7x84xf32>
    %187 = arith.addf %181, %186 : vector<7x84xf32>
    %c0_264 = arith.constant 0 : index
    %c2_265 = arith.constant 2 : index
    %c1_266 = arith.constant 1 : index
    %c0_267 = arith.constant 0 : index
    %188 = vector.load %arg1[%c0_264, %c2_265, %c1_266, %c0_267] : memref<1x4x8x96xf32, #tpu.memory_space<vmem>>, vector<1x1x7x96xf32>
    %189 = vector.shape_cast %188 : vector<1x1x7x96xf32> to vector<7x96xf32>
    %c4_268 = arith.constant 4 : index
    %c1_269 = arith.constant 1 : index
    %c0_270 = arith.constant 0 : index
    %c0_271 = arith.constant 0 : index
    %190 = vector.load %arg2[%c4_268, %c1_269, %c0_270, %c0_271] : memref<5x2x96x84xf32, #tpu.memory_space<vmem>>, vector<1x1x96x84xf32>
    %191 = vector.shape_cast %190 : vector<1x1x96x84xf32> to vector<96x84xf32>
    %cst_272 = arith.constant dense<0.000000e+00> : vector<7x84xf32>
    %192 = tpu.matmul %189, %191, %cst_272 {dimension_numbers = #tpu.dot_dimension_numbers<[1], [0], [0], [1], [0, 0, 1, 1], [], []>} : vector<7x96xf32>, vector<96x84xf32>, vector<7x84xf32> -> vector<7x84xf32>
    %193 = arith.addf %187, %192 : vector<7x84xf32>
    %194 = arith.maximumf %162, %193 : vector<7x84xf32>
    %cst_273 = arith.constant 0.000000e+00 : f32
    %195 = vector.broadcast %cst_273 : f32 to vector<7x84xf32>
    %c0_274 = arith.constant 0 : index
    %c3_275 = arith.constant 3 : index
    %c0_276 = arith.constant 0 : index
    %c0_277 = arith.constant 0 : index
    %196 = vector.load %arg1[%c0_274, %c3_275, %c0_276, %c0_277] : memref<1x4x8x96xf32, #tpu.memory_space<vmem>>, vector<1x1x7x96xf32>
    %197 = vector.shape_cast %196 : vector<1x1x7x96xf32> to vector<7x96xf32>
    %c0_278 = arith.constant 0 : index
    %c0_279 = arith.constant 0 : index
    %c0_280 = arith.constant 0 : index
    %c0_281 = arith.constant 0 : index
    %198 = vector.load %arg2[%c0_278, %c0_279, %c0_280, %c0_281] : memref<5x2x96x84xf32, #tpu.memory_space<vmem>>, vector<1x1x96x84xf32>
    %199 = vector.shape_cast %198 : vector<1x1x96x84xf32> to vector<96x84xf32>
    %cst_282 = arith.constant dense<0.000000e+00> : vector<7x84xf32>
    %200 = tpu.matmul %197, %199, %cst_282 {dimension_numbers = #tpu.dot_dimension_numbers<[1], [0], [0], [1], [0, 0, 1, 1], [], []>} : vector<7x96xf32>, vector<96x84xf32>, vector<7x84xf32> -> vector<7x84xf32>
    %201 = arith.addf %195, %200 : vector<7x84xf32>
    %c0_283 = arith.constant 0 : index
    %c0_284 = arith.constant 0 : index
    %c1_285 = arith.constant 1 : index
    %c0_286 = arith.constant 0 : index
    %202 = vector.load %arg1[%c0_283, %c0_284, %c1_285, %c0_286] : memref<1x4x8x96xf32, #tpu.memory_space<vmem>>, vector<1x1x7x96xf32>
    %203 = vector.shape_cast %202 : vector<1x1x7x96xf32> to vector<7x96xf32>
    %c1_287 = arith.constant 1 : index
    %c0_288 = arith.constant 0 : index
    %c0_289 = arith.constant 0 : index
    %c0_290 = arith.constant 0 : index
    %204 = vector.load %arg2[%c1_287, %c0_288, %c0_289, %c0_290] : memref<5x2x96x84xf32, #tpu.memory_space<vmem>>, vector<1x1x96x84xf32>
    %205 = vector.shape_cast %204 : vector<1x1x96x84xf32> to vector<96x84xf32>
    %cst_291 = arith.constant dense<0.000000e+00> : vector<7x84xf32>
    %206 = tpu.matmul %203, %205, %cst_291 {dimension_numbers = #tpu.dot_dimension_numbers<[1], [0], [0], [1], [0, 0, 1, 1], [], []>} : vector<7x96xf32>, vector<96x84xf32>, vector<7x84xf32> -> vector<7x84xf32>
    %207 = arith.addf %201, %206 : vector<7x84xf32>
    %c0_292 = arith.constant 0 : index
    %c1_293 = arith.constant 1 : index
    %c1_294 = arith.constant 1 : index
    %c0_295 = arith.constant 0 : index
    %208 = vector.load %arg1[%c0_292, %c1_293, %c1_294, %c0_295] : memref<1x4x8x96xf32, #tpu.memory_space<vmem>>, vector<1x1x7x96xf32>
    %209 = vector.shape_cast %208 : vector<1x1x7x96xf32> to vector<7x96xf32>
    %c2_296 = arith.constant 2 : index
    %c0_297 = arith.constant 0 : index
    %c0_298 = arith.constant 0 : index
    %c0_299 = arith.constant 0 : index
    %210 = vector.load %arg2[%c2_296, %c0_297, %c0_298, %c0_299] : memref<5x2x96x84xf32, #tpu.memory_space<vmem>>, vector<1x1x96x84xf32>
    %211 = vector.shape_cast %210 : vector<1x1x96x84xf32> to vector<96x84xf32>
    %cst_300 = arith.constant dense<0.000000e+00> : vector<7x84xf32>
    %212 = tpu.matmul %209, %211, %cst_300 {dimension_numbers = #tpu.dot_dimension_numbers<[1], [0], [0], [1], [0, 0, 1, 1], [], []>} : vector<7x96xf32>, vector<96x84xf32>, vector<7x84xf32> -> vector<7x84xf32>
    %213 = arith.addf %207, %212 : vector<7x84xf32>
    %c0_301 = arith.constant 0 : index
    %c2_302 = arith.constant 2 : index
    %c1_303 = arith.constant 1 : index
    %c0_304 = arith.constant 0 : index
    %214 = vector.load %arg1[%c0_301, %c2_302, %c1_303, %c0_304] : memref<1x4x8x96xf32, #tpu.memory_space<vmem>>, vector<1x1x7x96xf32>
    %215 = vector.shape_cast %214 : vector<1x1x7x96xf32> to vector<7x96xf32>
    %c3_305 = arith.constant 3 : index
    %c0_306 = arith.constant 0 : index
    %c0_307 = arith.constant 0 : index
    %c0_308 = arith.constant 0 : index
    %216 = vector.load %arg2[%c3_305, %c0_306, %c0_307, %c0_308] : memref<5x2x96x84xf32, #tpu.memory_space<vmem>>, vector<1x1x96x84xf32>
    %217 = vector.shape_cast %216 : vector<1x1x96x84xf32> to vector<96x84xf32>
    %cst_309 = arith.constant dense<0.000000e+00> : vector<7x84xf32>
    %218 = tpu.matmul %215, %217, %cst_309 {dimension_numbers = #tpu.dot_dimension_numbers<[1], [0], [0], [1], [0, 0, 1, 1], [], []>} : vector<7x96xf32>, vector<96x84xf32>, vector<7x84xf32> -> vector<7x84xf32>
    %219 = arith.addf %213, %218 : vector<7x84xf32>
    %c0_310 = arith.constant 0 : index
    %c3_311 = arith.constant 3 : index
    %c1_312 = arith.constant 1 : index
    %c0_313 = arith.constant 0 : index
    %220 = vector.load %arg1[%c0_310, %c3_311, %c1_312, %c0_313] : memref<1x4x8x96xf32, #tpu.memory_space<vmem>>, vector<1x1x7x96xf32>
    %221 = vector.shape_cast %220 : vector<1x1x7x96xf32> to vector<7x96xf32>
    %c4_314 = arith.constant 4 : index
    %c0_315 = arith.constant 0 : index
    %c0_316 = arith.constant 0 : index
    %c0_317 = arith.constant 0 : index
    %222 = vector.load %arg2[%c4_314, %c0_315, %c0_316, %c0_317] : memref<5x2x96x84xf32, #tpu.memory_space<vmem>>, vector<1x1x96x84xf32>
    %223 = vector.shape_cast %222 : vector<1x1x96x84xf32> to vector<96x84xf32>
    %cst_318 = arith.constant dense<0.000000e+00> : vector<7x84xf32>
    %224 = tpu.matmul %221, %223, %cst_318 {dimension_numbers = #tpu.dot_dimension_numbers<[1], [0], [0], [1], [0, 0, 1, 1], [], []>} : vector<7x96xf32>, vector<96x84xf32>, vector<7x84xf32> -> vector<7x84xf32>
    %225 = arith.addf %219, %224 : vector<7x84xf32>
    %226 = arith.maximumf %194, %225 : vector<7x84xf32>
    %cst_319 = arith.constant 0.000000e+00 : f32
    %227 = vector.broadcast %cst_319 : f32 to vector<7x84xf32>
    %c0_320 = arith.constant 0 : index
    %c3_321 = arith.constant 3 : index
    %c0_322 = arith.constant 0 : index
    %c0_323 = arith.constant 0 : index
    %228 = vector.load %arg1[%c0_320, %c3_321, %c0_322, %c0_323] : memref<1x4x8x96xf32, #tpu.memory_space<vmem>>, vector<1x1x7x96xf32>
    %229 = vector.shape_cast %228 : vector<1x1x7x96xf32> to vector<7x96xf32>
    %c0_324 = arith.constant 0 : index
    %c1_325 = arith.constant 1 : index
    %c0_326 = arith.constant 0 : index
    %c0_327 = arith.constant 0 : index
    %230 = vector.load %arg2[%c0_324, %c1_325, %c0_326, %c0_327] : memref<5x2x96x84xf32, #tpu.memory_space<vmem>>, vector<1x1x96x84xf32>
    %231 = vector.shape_cast %230 : vector<1x1x96x84xf32> to vector<96x84xf32>
    %cst_328 = arith.constant dense<0.000000e+00> : vector<7x84xf32>
    %232 = tpu.matmul %229, %231, %cst_328 {dimension_numbers = #tpu.dot_dimension_numbers<[1], [0], [0], [1], [0, 0, 1, 1], [], []>} : vector<7x96xf32>, vector<96x84xf32>, vector<7x84xf32> -> vector<7x84xf32>
    %233 = arith.addf %227, %232 : vector<7x84xf32>
    %c0_329 = arith.constant 0 : index
    %c0_330 = arith.constant 0 : index
    %c1_331 = arith.constant 1 : index
    %c0_332 = arith.constant 0 : index
    %234 = vector.load %arg1[%c0_329, %c0_330, %c1_331, %c0_332] : memref<1x4x8x96xf32, #tpu.memory_space<vmem>>, vector<1x1x7x96xf32>
    %235 = vector.shape_cast %234 : vector<1x1x7x96xf32> to vector<7x96xf32>
    %c1_333 = arith.constant 1 : index
    %c1_334 = arith.constant 1 : index
    %c0_335 = arith.constant 0 : index
    %c0_336 = arith.constant 0 : index
    %236 = vector.load %arg2[%c1_333, %c1_334, %c0_335, %c0_336] : memref<5x2x96x84xf32, #tpu.memory_space<vmem>>, vector<1x1x96x84xf32>
    %237 = vector.shape_cast %236 : vector<1x1x96x84xf32> to vector<96x84xf32>
    %cst_337 = arith.constant dense<0.000000e+00> : vector<7x84xf32>
    %238 = tpu.matmul %235, %237, %cst_337 {dimension_numbers = #tpu.dot_dimension_numbers<[1], [0], [0], [1], [0, 0, 1, 1], [], []>} : vector<7x96xf32>, vector<96x84xf32>, vector<7x84xf32> -> vector<7x84xf32>
    %239 = arith.addf %233, %238 : vector<7x84xf32>
    %c0_338 = arith.constant 0 : index
    %c1_339 = arith.constant 1 : index
    %c1_340 = arith.constant 1 : index
    %c0_341 = arith.constant 0 : index
    %240 = vector.load %arg1[%c0_338, %c1_339, %c1_340, %c0_341] : memref<1x4x8x96xf32, #tpu.memory_space<vmem>>, vector<1x1x7x96xf32>
    %241 = vector.shape_cast %240 : vector<1x1x7x96xf32> to vector<7x96xf32>
    %c2_342 = arith.constant 2 : index
    %c1_343 = arith.constant 1 : index
    %c0_344 = arith.constant 0 : index
    %c0_345 = arith.constant 0 : index
    %242 = vector.load %arg2[%c2_342, %c1_343, %c0_344, %c0_345] : memref<5x2x96x84xf32, #tpu.memory_space<vmem>>, vector<1x1x96x84xf32>
    %243 = vector.shape_cast %242 : vector<1x1x96x84xf32> to vector<96x84xf32>
    %cst_346 = arith.constant dense<0.000000e+00> : vector<7x84xf32>
    %244 = tpu.matmul %241, %243, %cst_346 {dimension_numbers = #tpu.dot_dimension_numbers<[1], [0], [0], [1], [0, 0, 1, 1], [], []>} : vector<7x96xf32>, vector<96x84xf32>, vector<7x84xf32> -> vector<7x84xf32>
    %245 = arith.addf %239, %244 : vector<7x84xf32>
    %c0_347 = arith.constant 0 : index
    %c2_348 = arith.constant 2 : index
    %c1_349 = arith.constant 1 : index
    %c0_350 = arith.constant 0 : index
    %246 = vector.load %arg1[%c0_347, %c2_348, %c1_349, %c0_350] : memref<1x4x8x96xf32, #tpu.memory_space<vmem>>, vector<1x1x7x96xf32>
    %247 = vector.shape_cast %246 : vector<1x1x7x96xf32> to vector<7x96xf32>
    %c3_351 = arith.constant 3 : index
    %c1_352 = arith.constant 1 : index
    %c0_353 = arith.constant 0 : index
    %c0_354 = arith.constant 0 : index
    %248 = vector.load %arg2[%c3_351, %c1_352, %c0_353, %c0_354] : memref<5x2x96x84xf32, #tpu.memory_space<vmem>>, vector<1x1x96x84xf32>
    %249 = vector.shape_cast %248 : vector<1x1x96x84xf32> to vector<96x84xf32>
    %cst_355 = arith.constant dense<0.000000e+00> : vector<7x84xf32>
    %250 = tpu.matmul %247, %249, %cst_355 {dimension_numbers = #tpu.dot_dimension_numbers<[1], [0], [0], [1], [0, 0, 1, 1], [], []>} : vector<7x96xf32>, vector<96x84xf32>, vector<7x84xf32> -> vector<7x84xf32>
    %251 = arith.addf %245, %250 : vector<7x84xf32>
    %c0_356 = arith.constant 0 : index
    %c3_357 = arith.constant 3 : index
    %c1_358 = arith.constant 1 : index
    %c0_359 = arith.constant 0 : index
    %252 = vector.load %arg1[%c0_356, %c3_357, %c1_358, %c0_359] : memref<1x4x8x96xf32, #tpu.memory_space<vmem>>, vector<1x1x7x96xf32>
    %253 = vector.shape_cast %252 : vector<1x1x7x96xf32> to vector<7x96xf32>
    %c4_360 = arith.constant 4 : index
    %c1_361 = arith.constant 1 : index
    %c0_362 = arith.constant 0 : index
    %c0_363 = arith.constant 0 : index
    %254 = vector.load %arg2[%c4_360, %c1_361, %c0_362, %c0_363] : memref<5x2x96x84xf32, #tpu.memory_space<vmem>>, vector<1x1x96x84xf32>
    %255 = vector.shape_cast %254 : vector<1x1x96x84xf32> to vector<96x84xf32>
    %cst_364 = arith.constant dense<0.000000e+00> : vector<7x84xf32>
    %256 = tpu.matmul %253, %255, %cst_364 {dimension_numbers = #tpu.dot_dimension_numbers<[1], [0], [0], [1], [0, 0, 1, 1], [], []>} : vector<7x96xf32>, vector<96x84xf32>, vector<7x84xf32> -> vector<7x84xf32>
    %257 = arith.addf %251, %256 : vector<7x84xf32>
    %258 = arith.maximumf %226, %257 : vector<7x84xf32>
    %c0_365 = arith.constant 0 : index
    %c0_366 = arith.constant 0 : index
    %259 = vector.load %arg3[%c0_365, %c0_366] : memref<1x84xf32, #tpu.memory_space<vmem>>, vector<1x84xf32>
    %260 = vector.broadcast %259 : vector<1x84xf32> to vector<7x84xf32>
    %261 = arith.addf %258, %260 : vector<7x84xf32>
    %cst_367 = arith.constant 0.000000e+00 : f32
    %262 = vector.broadcast %cst_367 : f32 to vector<7x84xf32>
    %263 = arith.maximumf %261, %262 : vector<7x84xf32>
    %cst_368 = arith.constant 0.000000e+00 : f32
    %264 = vector.broadcast %cst_368 : f32 to vector<5x80xf32>
    %265 = vector.extract_strided_slice %131 {offsets = [0, 0], sizes = [5, 84], strides = [1, 1]} : vector<7x84xf32> to vector<5x84xf32>
    %c0_369 = arith.constant 0 : index
    %c0_370 = arith.constant 0 : index
    %c0_371 = arith.constant 0 : index
    %c0_372 = arith.constant 0 : index
    %266 = vector.load %arg4[%c0_369, %c0_370, %c0_371, %c0_372] : memref<5x2x84x80xf32, #tpu.memory_space<vmem>>, vector<1x1x84x80xf32>
    %267 = vector.shape_cast %266 : vector<1x1x84x80xf32> to vector<84x80xf32>
    %cst_373 = arith.constant dense<0.000000e+00> : vector<5x80xf32>
    %268 = tpu.matmul %265, %267, %cst_373 {dimension_numbers = #tpu.dot_dimension_numbers<[1], [0], [0], [1], [0, 0, 1, 1], [], []>} : vector<5x84xf32>, vector<84x80xf32>, vector<5x80xf32> -> vector<5x80xf32>
    %269 = arith.addf %264, %268 : vector<5x80xf32>
    %270 = vector.extract_strided_slice %263 {offsets = [0, 0], sizes = [5, 84], strides = [1, 1]} : vector<7x84xf32> to vector<5x84xf32>
    %c1_374 = arith.constant 1 : index
    %c0_375 = arith.constant 0 : index
    %c0_376 = arith.constant 0 : index
    %c0_377 = arith.constant 0 : index
    %271 = vector.load %arg4[%c1_374, %c0_375, %c0_376, %c0_377] : memref<5x2x84x80xf32, #tpu.memory_space<vmem>>, vector<1x1x84x80xf32>
    %272 = vector.shape_cast %271 : vector<1x1x84x80xf32> to vector<84x80xf32>
    %cst_378 = arith.constant dense<0.000000e+00> : vector<5x80xf32>
    %273 = tpu.matmul %270, %272, %cst_378 {dimension_numbers = #tpu.dot_dimension_numbers<[1], [0], [0], [1], [0, 0, 1, 1], [], []>} : vector<5x84xf32>, vector<84x80xf32>, vector<5x80xf32> -> vector<5x80xf32>
    %274 = arith.addf %269, %273 : vector<5x80xf32>
    %275 = vector.extract_strided_slice %131 {offsets = [1, 0], sizes = [5, 84], strides = [1, 1]} : vector<7x84xf32> to vector<5x84xf32>
    %c2_379 = arith.constant 2 : index
    %c0_380 = arith.constant 0 : index
    %c0_381 = arith.constant 0 : index
    %c0_382 = arith.constant 0 : index
    %276 = vector.load %arg4[%c2_379, %c0_380, %c0_381, %c0_382] : memref<5x2x84x80xf32, #tpu.memory_space<vmem>>, vector<1x1x84x80xf32>
    %277 = vector.shape_cast %276 : vector<1x1x84x80xf32> to vector<84x80xf32>
    %cst_383 = arith.constant dense<0.000000e+00> : vector<5x80xf32>
    %278 = tpu.matmul %275, %277, %cst_383 {dimension_numbers = #tpu.dot_dimension_numbers<[1], [0], [0], [1], [0, 0, 1, 1], [], []>} : vector<5x84xf32>, vector<84x80xf32>, vector<5x80xf32> -> vector<5x80xf32>
    %279 = arith.addf %274, %278 : vector<5x80xf32>
    %280 = vector.extract_strided_slice %263 {offsets = [1, 0], sizes = [5, 84], strides = [1, 1]} : vector<7x84xf32> to vector<5x84xf32>
    %c3_384 = arith.constant 3 : index
    %c0_385 = arith.constant 0 : index
    %c0_386 = arith.constant 0 : index
    %c0_387 = arith.constant 0 : index
    %281 = vector.load %arg4[%c3_384, %c0_385, %c0_386, %c0_387] : memref<5x2x84x80xf32, #tpu.memory_space<vmem>>, vector<1x1x84x80xf32>
    %282 = vector.shape_cast %281 : vector<1x1x84x80xf32> to vector<84x80xf32>
    %cst_388 = arith.constant dense<0.000000e+00> : vector<5x80xf32>
    %283 = tpu.matmul %280, %282, %cst_388 {dimension_numbers = #tpu.dot_dimension_numbers<[1], [0], [0], [1], [0, 0, 1, 1], [], []>} : vector<5x84xf32>, vector<84x80xf32>, vector<5x80xf32> -> vector<5x80xf32>
    %284 = arith.addf %279, %283 : vector<5x80xf32>
    %285 = vector.extract_strided_slice %131 {offsets = [2, 0], sizes = [5, 84], strides = [1, 1]} : vector<7x84xf32> to vector<5x84xf32>
    %c4_389 = arith.constant 4 : index
    %c0_390 = arith.constant 0 : index
    %c0_391 = arith.constant 0 : index
    %c0_392 = arith.constant 0 : index
    %286 = vector.load %arg4[%c4_389, %c0_390, %c0_391, %c0_392] : memref<5x2x84x80xf32, #tpu.memory_space<vmem>>, vector<1x1x84x80xf32>
    %287 = vector.shape_cast %286 : vector<1x1x84x80xf32> to vector<84x80xf32>
    %cst_393 = arith.constant dense<0.000000e+00> : vector<5x80xf32>
    %288 = tpu.matmul %285, %287, %cst_393 {dimension_numbers = #tpu.dot_dimension_numbers<[1], [0], [0], [1], [0, 0, 1, 1], [], []>} : vector<5x84xf32>, vector<84x80xf32>, vector<5x80xf32> -> vector<5x80xf32>
    %289 = arith.addf %284, %288 : vector<5x80xf32>
    %cst_394 = arith.constant 0.000000e+00 : f32
    %290 = vector.broadcast %cst_394 : f32 to vector<5x80xf32>
    %291 = vector.extract_strided_slice %131 {offsets = [0, 0], sizes = [5, 84], strides = [1, 1]} : vector<7x84xf32> to vector<5x84xf32>
    %c0_395 = arith.constant 0 : index
    %c1_396 = arith.constant 1 : index
    %c0_397 = arith.constant 0 : index
    %c0_398 = arith.constant 0 : index
    %292 = vector.load %arg4[%c0_395, %c1_396, %c0_397, %c0_398] : memref<5x2x84x80xf32, #tpu.memory_space<vmem>>, vector<1x1x84x80xf32>
    %293 = vector.shape_cast %292 : vector<1x1x84x80xf32> to vector<84x80xf32>
    %cst_399 = arith.constant dense<0.000000e+00> : vector<5x80xf32>
    %294 = tpu.matmul %291, %293, %cst_399 {dimension_numbers = #tpu.dot_dimension_numbers<[1], [0], [0], [1], [0, 0, 1, 1], [], []>} : vector<5x84xf32>, vector<84x80xf32>, vector<5x80xf32> -> vector<5x80xf32>
    %295 = arith.addf %290, %294 : vector<5x80xf32>
    %296 = vector.extract_strided_slice %263 {offsets = [0, 0], sizes = [5, 84], strides = [1, 1]} : vector<7x84xf32> to vector<5x84xf32>
    %c1_400 = arith.constant 1 : index
    %c1_401 = arith.constant 1 : index
    %c0_402 = arith.constant 0 : index
    %c0_403 = arith.constant 0 : index
    %297 = vector.load %arg4[%c1_400, %c1_401, %c0_402, %c0_403] : memref<5x2x84x80xf32, #tpu.memory_space<vmem>>, vector<1x1x84x80xf32>
    %298 = vector.shape_cast %297 : vector<1x1x84x80xf32> to vector<84x80xf32>
    %cst_404 = arith.constant dense<0.000000e+00> : vector<5x80xf32>
    %299 = tpu.matmul %296, %298, %cst_404 {dimension_numbers = #tpu.dot_dimension_numbers<[1], [0], [0], [1], [0, 0, 1, 1], [], []>} : vector<5x84xf32>, vector<84x80xf32>, vector<5x80xf32> -> vector<5x80xf32>
    %300 = arith.addf %295, %299 : vector<5x80xf32>
    %301 = vector.extract_strided_slice %131 {offsets = [1, 0], sizes = [5, 84], strides = [1, 1]} : vector<7x84xf32> to vector<5x84xf32>
    %c2_405 = arith.constant 2 : index
    %c1_406 = arith.constant 1 : index
    %c0_407 = arith.constant 0 : index
    %c0_408 = arith.constant 0 : index
    %302 = vector.load %arg4[%c2_405, %c1_406, %c0_407, %c0_408] : memref<5x2x84x80xf32, #tpu.memory_space<vmem>>, vector<1x1x84x80xf32>
    %303 = vector.shape_cast %302 : vector<1x1x84x80xf32> to vector<84x80xf32>
    %cst_409 = arith.constant dense<0.000000e+00> : vector<5x80xf32>
    %304 = tpu.matmul %301, %303, %cst_409 {dimension_numbers = #tpu.dot_dimension_numbers<[1], [0], [0], [1], [0, 0, 1, 1], [], []>} : vector<5x84xf32>, vector<84x80xf32>, vector<5x80xf32> -> vector<5x80xf32>
    %305 = arith.addf %300, %304 : vector<5x80xf32>
    %306 = vector.extract_strided_slice %263 {offsets = [1, 0], sizes = [5, 84], strides = [1, 1]} : vector<7x84xf32> to vector<5x84xf32>
    %c3_410 = arith.constant 3 : index
    %c1_411 = arith.constant 1 : index
    %c0_412 = arith.constant 0 : index
    %c0_413 = arith.constant 0 : index
    %307 = vector.load %arg4[%c3_410, %c1_411, %c0_412, %c0_413] : memref<5x2x84x80xf32, #tpu.memory_space<vmem>>, vector<1x1x84x80xf32>
    %308 = vector.shape_cast %307 : vector<1x1x84x80xf32> to vector<84x80xf32>
    %cst_414 = arith.constant dense<0.000000e+00> : vector<5x80xf32>
    %309 = tpu.matmul %306, %308, %cst_414 {dimension_numbers = #tpu.dot_dimension_numbers<[1], [0], [0], [1], [0, 0, 1, 1], [], []>} : vector<5x84xf32>, vector<84x80xf32>, vector<5x80xf32> -> vector<5x80xf32>
    %310 = arith.addf %305, %309 : vector<5x80xf32>
    %311 = vector.extract_strided_slice %131 {offsets = [2, 0], sizes = [5, 84], strides = [1, 1]} : vector<7x84xf32> to vector<5x84xf32>
    %c4_415 = arith.constant 4 : index
    %c1_416 = arith.constant 1 : index
    %c0_417 = arith.constant 0 : index
    %c0_418 = arith.constant 0 : index
    %312 = vector.load %arg4[%c4_415, %c1_416, %c0_417, %c0_418] : memref<5x2x84x80xf32, #tpu.memory_space<vmem>>, vector<1x1x84x80xf32>
    %313 = vector.shape_cast %312 : vector<1x1x84x80xf32> to vector<84x80xf32>
    %cst_419 = arith.constant dense<0.000000e+00> : vector<5x80xf32>
    %314 = tpu.matmul %311, %313, %cst_419 {dimension_numbers = #tpu.dot_dimension_numbers<[1], [0], [0], [1], [0, 0, 1, 1], [], []>} : vector<5x84xf32>, vector<84x80xf32>, vector<5x80xf32> -> vector<5x80xf32>
    %315 = arith.addf %310, %314 : vector<5x80xf32>
    %316 = arith.maximumf %289, %315 : vector<5x80xf32>
    %cst_420 = arith.constant 0.000000e+00 : f32
    %317 = vector.broadcast %cst_420 : f32 to vector<5x80xf32>
    %318 = vector.extract_strided_slice %263 {offsets = [0, 0], sizes = [5, 84], strides = [1, 1]} : vector<7x84xf32> to vector<5x84xf32>
    %c0_421 = arith.constant 0 : index
    %c0_422 = arith.constant 0 : index
    %c0_423 = arith.constant 0 : index
    %c0_424 = arith.constant 0 : index
    %319 = vector.load %arg4[%c0_421, %c0_422, %c0_423, %c0_424] : memref<5x2x84x80xf32, #tpu.memory_space<vmem>>, vector<1x1x84x80xf32>
    %320 = vector.shape_cast %319 : vector<1x1x84x80xf32> to vector<84x80xf32>
    %cst_425 = arith.constant dense<0.000000e+00> : vector<5x80xf32>
    %321 = tpu.matmul %318, %320, %cst_425 {dimension_numbers = #tpu.dot_dimension_numbers<[1], [0], [0], [1], [0, 0, 1, 1], [], []>} : vector<5x84xf32>, vector<84x80xf32>, vector<5x80xf32> -> vector<5x80xf32>
    %322 = arith.addf %317, %321 : vector<5x80xf32>
    %323 = vector.extract_strided_slice %131 {offsets = [1, 0], sizes = [5, 84], strides = [1, 1]} : vector<7x84xf32> to vector<5x84xf32>
    %c1_426 = arith.constant 1 : index
    %c0_427 = arith.constant 0 : index
    %c0_428 = arith.constant 0 : index
    %c0_429 = arith.constant 0 : index
    %324 = vector.load %arg4[%c1_426, %c0_427, %c0_428, %c0_429] : memref<5x2x84x80xf32, #tpu.memory_space<vmem>>, vector<1x1x84x80xf32>
    %325 = vector.shape_cast %324 : vector<1x1x84x80xf32> to vector<84x80xf32>
    %cst_430 = arith.constant dense<0.000000e+00> : vector<5x80xf32>
    %326 = tpu.matmul %323, %325, %cst_430 {dimension_numbers = #tpu.dot_dimension_numbers<[1], [0], [0], [1], [0, 0, 1, 1], [], []>} : vector<5x84xf32>, vector<84x80xf32>, vector<5x80xf32> -> vector<5x80xf32>
    %327 = arith.addf %322, %326 : vector<5x80xf32>
    %328 = vector.extract_strided_slice %263 {offsets = [1, 0], sizes = [5, 84], strides = [1, 1]} : vector<7x84xf32> to vector<5x84xf32>
    %c2_431 = arith.constant 2 : index
    %c0_432 = arith.constant 0 : index
    %c0_433 = arith.constant 0 : index
    %c0_434 = arith.constant 0 : index
    %329 = vector.load %arg4[%c2_431, %c0_432, %c0_433, %c0_434] : memref<5x2x84x80xf32, #tpu.memory_space<vmem>>, vector<1x1x84x80xf32>
    %330 = vector.shape_cast %329 : vector<1x1x84x80xf32> to vector<84x80xf32>
    %cst_435 = arith.constant dense<0.000000e+00> : vector<5x80xf32>
    %331 = tpu.matmul %328, %330, %cst_435 {dimension_numbers = #tpu.dot_dimension_numbers<[1], [0], [0], [1], [0, 0, 1, 1], [], []>} : vector<5x84xf32>, vector<84x80xf32>, vector<5x80xf32> -> vector<5x80xf32>
    %332 = arith.addf %327, %331 : vector<5x80xf32>
    %333 = vector.extract_strided_slice %131 {offsets = [2, 0], sizes = [5, 84], strides = [1, 1]} : vector<7x84xf32> to vector<5x84xf32>
    %c3_436 = arith.constant 3 : index
    %c0_437 = arith.constant 0 : index
    %c0_438 = arith.constant 0 : index
    %c0_439 = arith.constant 0 : index
    %334 = vector.load %arg4[%c3_436, %c0_437, %c0_438, %c0_439] : memref<5x2x84x80xf32, #tpu.memory_space<vmem>>, vector<1x1x84x80xf32>
    %335 = vector.shape_cast %334 : vector<1x1x84x80xf32> to vector<84x80xf32>
    %cst_440 = arith.constant dense<0.000000e+00> : vector<5x80xf32>
    %336 = tpu.matmul %333, %335, %cst_440 {dimension_numbers = #tpu.dot_dimension_numbers<[1], [0], [0], [1], [0, 0, 1, 1], [], []>} : vector<5x84xf32>, vector<84x80xf32>, vector<5x80xf32> -> vector<5x80xf32>
    %337 = arith.addf %332, %336 : vector<5x80xf32>
    %338 = vector.extract_strided_slice %263 {offsets = [2, 0], sizes = [5, 84], strides = [1, 1]} : vector<7x84xf32> to vector<5x84xf32>
    %c4_441 = arith.constant 4 : index
    %c0_442 = arith.constant 0 : index
    %c0_443 = arith.constant 0 : index
    %c0_444 = arith.constant 0 : index
    %339 = vector.load %arg4[%c4_441, %c0_442, %c0_443, %c0_444] : memref<5x2x84x80xf32, #tpu.memory_space<vmem>>, vector<1x1x84x80xf32>
    %340 = vector.shape_cast %339 : vector<1x1x84x80xf32> to vector<84x80xf32>
    %cst_445 = arith.constant dense<0.000000e+00> : vector<5x80xf32>
    %341 = tpu.matmul %338, %340, %cst_445 {dimension_numbers = #tpu.dot_dimension_numbers<[1], [0], [0], [1], [0, 0, 1, 1], [], []>} : vector<5x84xf32>, vector<84x80xf32>, vector<5x80xf32> -> vector<5x80xf32>
    %342 = arith.addf %337, %341 : vector<5x80xf32>
    %343 = arith.maximumf %316, %342 : vector<5x80xf32>
    %cst_446 = arith.constant 0.000000e+00 : f32
    %344 = vector.broadcast %cst_446 : f32 to vector<5x80xf32>
    %345 = vector.extract_strided_slice %263 {offsets = [0, 0], sizes = [5, 84], strides = [1, 1]} : vector<7x84xf32> to vector<5x84xf32>
    %c0_447 = arith.constant 0 : index
    %c1_448 = arith.constant 1 : index
    %c0_449 = arith.constant 0 : index
    %c0_450 = arith.constant 0 : index
    %346 = vector.load %arg4[%c0_447, %c1_448, %c0_449, %c0_450] : memref<5x2x84x80xf32, #tpu.memory_space<vmem>>, vector<1x1x84x80xf32>
    %347 = vector.shape_cast %346 : vector<1x1x84x80xf32> to vector<84x80xf32>
    %cst_451 = arith.constant dense<0.000000e+00> : vector<5x80xf32>
    %348 = tpu.matmul %345, %347, %cst_451 {dimension_numbers = #tpu.dot_dimension_numbers<[1], [0], [0], [1], [0, 0, 1, 1], [], []>} : vector<5x84xf32>, vector<84x80xf32>, vector<5x80xf32> -> vector<5x80xf32>
    %349 = arith.addf %344, %348 : vector<5x80xf32>
    %350 = vector.extract_strided_slice %131 {offsets = [1, 0], sizes = [5, 84], strides = [1, 1]} : vector<7x84xf32> to vector<5x84xf32>
    %c1_452 = arith.constant 1 : index
    %c1_453 = arith.constant 1 : index
    %c0_454 = arith.constant 0 : index
    %c0_455 = arith.constant 0 : index
    %351 = vector.load %arg4[%c1_452, %c1_453, %c0_454, %c0_455] : memref<5x2x84x80xf32, #tpu.memory_space<vmem>>, vector<1x1x84x80xf32>
    %352 = vector.shape_cast %351 : vector<1x1x84x80xf32> to vector<84x80xf32>
    %cst_456 = arith.constant dense<0.000000e+00> : vector<5x80xf32>
    %353 = tpu.matmul %350, %352, %cst_456 {dimension_numbers = #tpu.dot_dimension_numbers<[1], [0], [0], [1], [0, 0, 1, 1], [], []>} : vector<5x84xf32>, vector<84x80xf32>, vector<5x80xf32> -> vector<5x80xf32>
    %354 = arith.addf %349, %353 : vector<5x80xf32>
    %355 = vector.extract_strided_slice %263 {offsets = [1, 0], sizes = [5, 84], strides = [1, 1]} : vector<7x84xf32> to vector<5x84xf32>
    %c2_457 = arith.constant 2 : index
    %c1_458 = arith.constant 1 : index
    %c0_459 = arith.constant 0 : index
    %c0_460 = arith.constant 0 : index
    %356 = vector.load %arg4[%c2_457, %c1_458, %c0_459, %c0_460] : memref<5x2x84x80xf32, #tpu.memory_space<vmem>>, vector<1x1x84x80xf32>
    %357 = vector.shape_cast %356 : vector<1x1x84x80xf32> to vector<84x80xf32>
    %cst_461 = arith.constant dense<0.000000e+00> : vector<5x80xf32>
    %358 = tpu.matmul %355, %357, %cst_461 {dimension_numbers = #tpu.dot_dimension_numbers<[1], [0], [0], [1], [0, 0, 1, 1], [], []>} : vector<5x84xf32>, vector<84x80xf32>, vector<5x80xf32> -> vector<5x80xf32>
    %359 = arith.addf %354, %358 : vector<5x80xf32>
    %360 = vector.extract_strided_slice %131 {offsets = [2, 0], sizes = [5, 84], strides = [1, 1]} : vector<7x84xf32> to vector<5x84xf32>
    %c3_462 = arith.constant 3 : index
    %c1_463 = arith.constant 1 : index
    %c0_464 = arith.constant 0 : index
    %c0_465 = arith.constant 0 : index
    %361 = vector.load %arg4[%c3_462, %c1_463, %c0_464, %c0_465] : memref<5x2x84x80xf32, #tpu.memory_space<vmem>>, vector<1x1x84x80xf32>
    %362 = vector.shape_cast %361 : vector<1x1x84x80xf32> to vector<84x80xf32>
    %cst_466 = arith.constant dense<0.000000e+00> : vector<5x80xf32>
    %363 = tpu.matmul %360, %362, %cst_466 {dimension_numbers = #tpu.dot_dimension_numbers<[1], [0], [0], [1], [0, 0, 1, 1], [], []>} : vector<5x84xf32>, vector<84x80xf32>, vector<5x80xf32> -> vector<5x80xf32>
    %364 = arith.addf %359, %363 : vector<5x80xf32>
    %365 = vector.extract_strided_slice %263 {offsets = [2, 0], sizes = [5, 84], strides = [1, 1]} : vector<7x84xf32> to vector<5x84xf32>
    %c4_467 = arith.constant 4 : index
    %c1_468 = arith.constant 1 : index
    %c0_469 = arith.constant 0 : index
    %c0_470 = arith.constant 0 : index
    %366 = vector.load %arg4[%c4_467, %c1_468, %c0_469, %c0_470] : memref<5x2x84x80xf32, #tpu.memory_space<vmem>>, vector<1x1x84x80xf32>
    %367 = vector.shape_cast %366 : vector<1x1x84x80xf32> to vector<84x80xf32>
    %cst_471 = arith.constant dense<0.000000e+00> : vector<5x80xf32>
    %368 = tpu.matmul %365, %367, %cst_471 {dimension_numbers = #tpu.dot_dimension_numbers<[1], [0], [0], [1], [0, 0, 1, 1], [], []>} : vector<5x84xf32>, vector<84x80xf32>, vector<5x80xf32> -> vector<5x80xf32>
    %369 = arith.addf %364, %368 : vector<5x80xf32>
    %370 = arith.maximumf %343, %369 : vector<5x80xf32>
    %c0_472 = arith.constant 0 : index
    %c0_473 = arith.constant 0 : index
    %371 = vector.load %arg5[%c0_472, %c0_473] : memref<1x80xf32, #tpu.memory_space<vmem>>, vector<1x80xf32>
    %372 = vector.broadcast %371 : vector<1x80xf32> to vector<5x80xf32>
    %373 = arith.addf %370, %372 : vector<5x80xf32>
    %cst_474 = arith.constant 0.000000e+00 : f32
    %374 = vector.broadcast %cst_474 : f32 to vector<5x80xf32>
    %375 = arith.maximumf %373, %374 : vector<5x80xf32>
    %cst_475 = arith.constant 0.000000e+00 : f32
    %376 = vector.broadcast %cst_475 : f32 to vector<1x120xf32>
    %377 = vector.extract_strided_slice %375 {offsets = [0, 0], sizes = [1, 80], strides = [1, 1]} : vector<5x80xf32> to vector<1x80xf32>
    %c0_476 = arith.constant 0 : index
    %c0_477 = arith.constant 0 : index
    %c0_478 = arith.constant 0 : index
    %378 = vector.load %arg6[%c0_476, %c0_477, %c0_478] : memref<5x80x120xf32, #tpu.memory_space<vmem>>, vector<1x80x120xf32>
    %379 = vector.shape_cast %378 : vector<1x80x120xf32> to vector<80x120xf32>
    %cst_479 = arith.constant dense<0.000000e+00> : vector<1x120xf32>
    %380 = tpu.matmul %377, %379, %cst_479 {dimension_numbers = #tpu.dot_dimension_numbers<[1], [0], [0], [1], [0, 0, 1, 1], [], []>} : vector<1x80xf32>, vector<80x120xf32>, vector<1x120xf32> -> vector<1x120xf32>
    %381 = arith.addf %376, %380 : vector<1x120xf32>
    %382 = vector.extract_strided_slice %375 {offsets = [1, 0], sizes = [1, 80], strides = [1, 1]} : vector<5x80xf32> to vector<1x80xf32>
    %c1_480 = arith.constant 1 : index
    %c0_481 = arith.constant 0 : index
    %c0_482 = arith.constant 0 : index
    %383 = vector.load %arg6[%c1_480, %c0_481, %c0_482] : memref<5x80x120xf32, #tpu.memory_space<vmem>>, vector<1x80x120xf32>
    %384 = vector.shape_cast %383 : vector<1x80x120xf32> to vector<80x120xf32>
    %cst_483 = arith.constant dense<0.000000e+00> : vector<1x120xf32>
    %385 = tpu.matmul %382, %384, %cst_483 {dimension_numbers = #tpu.dot_dimension_numbers<[1], [0], [0], [1], [0, 0, 1, 1], [], []>} : vector<1x80xf32>, vector<80x120xf32>, vector<1x120xf32> -> vector<1x120xf32>
    %386 = arith.addf %381, %385 : vector<1x120xf32>
    %387 = vector.extract_strided_slice %375 {offsets = [2, 0], sizes = [1, 80], strides = [1, 1]} : vector<5x80xf32> to vector<1x80xf32>
    %c2_484 = arith.constant 2 : index
    %c0_485 = arith.constant 0 : index
    %c0_486 = arith.constant 0 : index
    %388 = vector.load %arg6[%c2_484, %c0_485, %c0_486] : memref<5x80x120xf32, #tpu.memory_space<vmem>>, vector<1x80x120xf32>
    %389 = vector.shape_cast %388 : vector<1x80x120xf32> to vector<80x120xf32>
    %cst_487 = arith.constant dense<0.000000e+00> : vector<1x120xf32>
    %390 = tpu.matmul %387, %389, %cst_487 {dimension_numbers = #tpu.dot_dimension_numbers<[1], [0], [0], [1], [0, 0, 1, 1], [], []>} : vector<1x80xf32>, vector<80x120xf32>, vector<1x120xf32> -> vector<1x120xf32>
    %391 = arith.addf %386, %390 : vector<1x120xf32>
    %392 = vector.extract_strided_slice %375 {offsets = [3, 0], sizes = [1, 80], strides = [1, 1]} : vector<5x80xf32> to vector<1x80xf32>
    %c3_488 = arith.constant 3 : index
    %c0_489 = arith.constant 0 : index
    %c0_490 = arith.constant 0 : index
    %393 = vector.load %arg6[%c3_488, %c0_489, %c0_490] : memref<5x80x120xf32, #tpu.memory_space<vmem>>, vector<1x80x120xf32>
    %394 = vector.shape_cast %393 : vector<1x80x120xf32> to vector<80x120xf32>
    %cst_491 = arith.constant dense<0.000000e+00> : vector<1x120xf32>
    %395 = tpu.matmul %392, %394, %cst_491 {dimension_numbers = #tpu.dot_dimension_numbers<[1], [0], [0], [1], [0, 0, 1, 1], [], []>} : vector<1x80xf32>, vector<80x120xf32>, vector<1x120xf32> -> vector<1x120xf32>
    %396 = arith.addf %391, %395 : vector<1x120xf32>
    %397 = vector.extract_strided_slice %375 {offsets = [4, 0], sizes = [1, 80], strides = [1, 1]} : vector<5x80xf32> to vector<1x80xf32>
    %c4_492 = arith.constant 4 : index
    %c0_493 = arith.constant 0 : index
    %c0_494 = arith.constant 0 : index
    %398 = vector.load %arg6[%c4_492, %c0_493, %c0_494] : memref<5x80x120xf32, #tpu.memory_space<vmem>>, vector<1x80x120xf32>
    %399 = vector.shape_cast %398 : vector<1x80x120xf32> to vector<80x120xf32>
    %cst_495 = arith.constant dense<0.000000e+00> : vector<1x120xf32>
    %400 = tpu.matmul %397, %399, %cst_495 {dimension_numbers = #tpu.dot_dimension_numbers<[1], [0], [0], [1], [0, 0, 1, 1], [], []>} : vector<1x80xf32>, vector<80x120xf32>, vector<1x120xf32> -> vector<1x120xf32>
    %401 = arith.addf %396, %400 : vector<1x120xf32>
    %c0_496 = arith.constant 0 : index
    %c0_497 = arith.constant 0 : index
    %402 = vector.load %arg7[%c0_496, %c0_497] : memref<1x120xf32, #tpu.memory_space<vmem>>, vector<1x120xf32>
    %403 = arith.addf %401, %402 : vector<1x120xf32>
    %cst_498 = arith.constant 0.000000e+00 : f32
    %404 = vector.broadcast %cst_498 : f32 to vector<1x120xf32>
    %405 = arith.maximumf %403, %404 : vector<1x120xf32>
    %c0_499 = arith.constant 0 : index
    %c0_500 = arith.constant 0 : index
    %406 = vector.load %arg8[%c0_499, %c0_500] : memref<120x84xf32, #tpu.memory_space<vmem>>, vector<120x84xf32>
    %cst_501 = arith.constant dense<0.000000e+00> : vector<1x84xf32>
    %407 = tpu.matmul %405, %406, %cst_501 {dimension_numbers = #tpu.dot_dimension_numbers<[1], [0], [0], [1], [0, 0, 1, 1], [], []>} : vector<1x120xf32>, vector<120x84xf32>, vector<1x84xf32> -> vector<1x84xf32>
    %c0_502 = arith.constant 0 : index
    %c0_503 = arith.constant 0 : index
    %408 = vector.load %arg9[%c0_502, %c0_503] : memref<1x84xf32, #tpu.memory_space<vmem>>, vector<1x84xf32>
    %409 = arith.addf %407, %408 : vector<1x84xf32>
    %cst_504 = arith.constant 0.000000e+00 : f32
    %410 = vector.broadcast %cst_504 : f32 to vector<1x84xf32>
    %411 = arith.maximumf %409, %410 : vector<1x84xf32>
    %c0_505 = arith.constant 0 : index
    %c0_506 = arith.constant 0 : index
    %412 = vector.load %arg10[%c0_505, %c0_506] : memref<84x10xf32, #tpu.memory_space<vmem>>, vector<84x10xf32>
    %cst_507 = arith.constant dense<0.000000e+00> : vector<1x10xf32>
    %413 = tpu.matmul %411, %412, %cst_507 {dimension_numbers = #tpu.dot_dimension_numbers<[1], [0], [0], [1], [0, 0, 1, 1], [], []>} : vector<1x84xf32>, vector<84x10xf32>, vector<1x10xf32> -> vector<1x10xf32>
    %c0_508 = arith.constant 0 : index
    %c0_509 = arith.constant 0 : index
    %414 = vector.load %arg11[%c0_508, %c0_509] : memref<1x10xf32, #tpu.memory_space<vmem>>, vector<1x10xf32>
    %415 = arith.addf %413, %414 : vector<1x10xf32>
    %c0_510 = arith.constant 0 : index
    %c0_511 = arith.constant 0 : index
    %c0_512 = arith.constant 0 : index
    %416 = vector.load %arg12[%c0_510, %c0_511, %c0_512] : memref<1x1x10xf32, #tpu.memory_space<vmem>>, vector<1x1x10xf32>
    %417 = vector.shape_cast %416 : vector<1x1x10xf32> to vector<1x10xf32>
    %418 = vector.shape_cast %415 : vector<1x10xf32> to vector<1x1x10xf32>
    tpu.vector_store %arg12[%c0_510, %c0_511, %c0_512], %418 {strides = array<i32>} : memref<1x1x10xf32, #tpu.memory_space<vmem>>, vector<1x1x10xf32>,
    return
  }
  func.func @transform_0(%arg0: i32) -> (i32, i32, i32, i32) {
    %c0_i32 = arith.constant 0 : i32
    %c0_i32_0 = arith.constant 0 : i32
    %c0_i32_1 = arith.constant 0 : i32
    %c0_i32_2 = arith.constant 0 : i32
    return %arg0, %c0_i32, %c0_i32_0, %c0_i32_1 : i32, i32, i32, i32
  }
  func.func @transform_1(%arg0: i32) -> (i32, i32, i32, i32) {
    %c0_i32 = arith.constant 0 : i32
    %c0_i32_0 = arith.constant 0 : i32
    %c0_i32_1 = arith.constant 0 : i32
    %c0_i32_2 = arith.constant 0 : i32
    %c0_i32_3 = arith.constant 0 : i32
    return %c0_i32, %c0_i32_0, %c0_i32_1, %c0_i32_2 : i32, i32, i32, i32
  }
  func.func @transform_2(%arg0: i32) -> (i32, i32) {
    %c0_i32 = arith.constant 0 : i32
    %c0_i32_0 = arith.constant 0 : i32
    %c0_i32_1 = arith.constant 0 : i32
    return %c0_i32, %c0_i32_0 : i32, i32
  }
  func.func @transform_3(%arg0: i32) -> (i32, i32, i32, i32) {
    %c0_i32 = arith.constant 0 : i32
    %c0_i32_0 = arith.constant 0 : i32
    %c0_i32_1 = arith.constant 0 : i32
    %c0_i32_2 = arith.constant 0 : i32
    %c0_i32_3 = arith.constant 0 : i32
    return %c0_i32, %c0_i32_0, %c0_i32_1, %c0_i32_2 : i32, i32, i32, i32
  }
  func.func @transform_4(%arg0: i32) -> (i32, i32) {
    %c0_i32 = arith.constant 0 : i32
    %c0_i32_0 = arith.constant 0 : i32
    %c0_i32_1 = arith.constant 0 : i32
    return %c0_i32, %c0_i32_0 : i32, i32
  }
  func.func @transform_5(%arg0: i32) -> (i32, i32, i32) {
    %c0_i32 = arith.constant 0 : i32
    %c0_i32_0 = arith.constant 0 : i32
    %c0_i32_1 = arith.constant 0 : i32
    %c0_i32_2 = arith.constant 0 : i32
    return %c0_i32, %c0_i32_0, %c0_i32_1 : i32, i32, i32
  }
  func.func @transform_6(%arg0: i32) -> (i32, i32) {
    %c0_i32 = arith.constant 0 : i32
    %c0_i32_0 = arith.constant 0 : i32
    %c0_i32_1 = arith.constant 0 : i32
    return %c0_i32, %c0_i32_0 : i32, i32
  }
  func.func @transform_7(%arg0: i32) -> (i32, i32) {
    %c0_i32 = arith.constant 0 : i32
    %c0_i32_0 = arith.constant 0 : i32
    %c0_i32_1 = arith.constant 0 : i32
    return %c0_i32, %c0_i32_0 : i32, i32
  }
  func.func @transform_8(%arg0: i32) -> (i32, i32) {
    %c0_i32 = arith.constant 0 : i32
    %c0_i32_0 = arith.constant 0 : i32
    %c0_i32_1 = arith.constant 0 : i32
    return %c0_i32, %c0_i32_0 : i32, i32
  }
  func.func @transform_9(%arg0: i32) -> (i32, i32) {
    %c0_i32 = arith.constant 0 : i32
    %c0_i32_0 = arith.constant 0 : i32
    %c0_i32_1 = arith.constant 0 : i32
    return %c0_i32, %c0_i32_0 : i32, i32
  }
  func.func @transform_10(%arg0: i32) -> (i32, i32) {
    %c0_i32 = arith.constant 0 : i32
    %c0_i32_0 = arith.constant 0 : i32
    %c0_i32_1 = arith.constant 0 : i32
    return %c0_i32, %c0_i32_0 : i32, i32
  }
  func.func @transform_11(%arg0: i32) -> (i32, i32, i32) {
    %c0_i32 = arith.constant 0 : i32
    %c0_i32_0 = arith.constant 0 : i32
    %c0_i32_1 = arith.constant 0 : i32
    return %arg0, %c0_i32, %c0_i32_0 : i32, i32, i32
  }
}

</mosaic_0001>

<bundles_post_ra>
// kernel: model1_forward.1
= control target key start
LH: loop header
LB: loop body
LE: loop exit
PB: predicated region body
PF: predicated region fallthrough
CT: control target
= control target key end

     0   :  { %16 = vsyncpa [#allocation3], 0  ;;  %s12372_s0 = inlined_call_operand.vmem [shape: f32[2,4,8,96], index: 0, kind: input, shape index: {}]   ;;  %s12373_s1 = inlined_call_operand.vmem [shape: f32[5,2,96,84], index: 1, kind: input, shape index: {}]   ;;  %s12374_s2 = inlined_call_operand.vmem [shape: f32[1,84], index: 2, kind: input, shape index: {}]   ;;  %s12375_s3 = inlined_call_operand.vmem [shape: f32[5,2,84,80], index: 3, kind: input, shape index: {}]   ;;  %s12376_s4 = inlined_call_operand.vmem [shape: f32[1,80], index: 4, kind: input, shape index: {}]   ;;  %s12377_s5 = inlined_call_operand.vmem [shape: f32[5,80,120], index: 5, kind: input, shape index: {}]   ;;  %s12378_s6 = inlined_call_operand.vmem [shape: f32[1,120], index: 6, kind: input, shape index: {}]   ;;  %s12379_s7 = inlined_call_operand.vmem [shape: f32[120,84], index: 7, kind: input, shape index: {}]   ;;  %s12380_s8 = inlined_call_operand.vmem [shape: f32[1,84], index: 8, kind: input, shape index: {}]   ;;  %s12381_s9 = inlined_call_operand.vmem [shape: f32[84,10], index: 9, kind: input, shape index: {}]   ;;  %s12382_s10 = inlined_call_operand.vmem [shape: f32[1,10], index: 10, kind: input, shape index: {}]   ;;  %s12383_s11 = inlined_call_operand.hbm [shape: f32[2,1,10], index: 11, kind: output, shape index: {}]  }
   0x1   :  { %18 = vsyncpa [#allocation3 + $0x1], 0  ;;  %s10004_s17 = smov 0   ;;  %s10006_s18 = smov 0  }
   0x2   :  { %s10008_s19 = smov 0   ;;  %s10010_s20 = smov 0  }
   0x3 LB: > { %12406 = sst [smem:[#allocation5_spill]] %s9934_s19  ;;  %s10025_s21 = sadd.s32 4294967295, %s9938_s20   ;;  %s9938_s20 = sphi %s10010_s20, %s12446_s20   ;;  %s9934_s19 = sphi %s10008_s19, %s12443_s19   ;;  %s9930_s18 = sphi %s10006_s18, %s12445_s18   ;;  %s9926_s17 = sphi %s10004_s17, %s12444_s17  }
   0x4   : > { %s5658_s22 = sadd.s32 4294967294, %s9938_s20   ;;  %s10029_s23 = sadd.s32 1, %s9938_s20  }
   0x5   : > { %s267_s24 = sadd.s32 1, %s9934_s19  ;;  %s264_s25 = ssub.s32 %s9938_s20, %s10029_s23 }
   0x6   : > { %p277_p0 = scmp.ne.s32.totalorder %s9934_s19, %s9930_s18  ;;  %p265_p1 = scmp.eq.s32.totalorder %s264_s25, 0 }
   0x7   : > { %p278_p2 = scmp.eq.s32.totalorder %s10025_s21, 1  ;;  %p283_p3 = scmp.ne.s32.totalorder %s9930_s18, %s9926_s17 }
   0x8   : > { %p284_p4 = scmp.eq.s32.totalorder %s5658_s22, 1  ;;  %p5661_p7 = scmp.ge.s32.totalorder %s9938_s20, 1 }
   0x9   : > { %s10040_s26 = scalar_select %p265_p1, %s9934_s19, %s267_s24  }
   0xa   : > { %p10042_p5 = por %p278_p2, %p277_p0  ;;  %p10046_p6 = por %p284_p4, %p283_p3 }
   0xb   : > { %12407 = sst [smem:[#allocation6_spill]] %s10040_s26  ;;  %p340_p8 = scmp.lt.s32.totalorder %s9938_s20, 3 }
   0xd   : > { %p341_p9 = pnand %p5661_p7, %p340_p8 }
   0xf   : > { %344 = sbr.rel (%p341_p9) target bundleno = 1854 (0x73e), region = 64 }
  0x16   : > { %v5665_v0 = vld [vmem:[%s12373_s1 + $0xc0] sm:$0xff]  ;;  %v5666_v1 = vld [vmem:[%s12373_s1 + $0xc8] sm:$0xff]  ;;  %v9940_v3 = vmov 0.0|0.0   ;;  %v5667_v6 = vld [vmem:[%s12373_s1 + $0xd0] sm:$0xff]  ;;  %vm9941_vm0 = vmmov 0   ;;  %v12387_v11 = vmov 0.0  }
  0x17   : > { %v5732_v2 = vld [vmem:[%s12373_s1 + $0x120] sm:$0xff]  ;;  %8607 = vmatprep.subr.bf16.mxu0 %v9940_v3  ;;  %8697 = vmatprep.subr.bf16.mxu1 %v9940_v3  ;;  %v10063_v4 = vpack.c.bf16 %v5666_v1, %v5665_v0  ;;  %v5733_v5 = vld [vmem:[%s12373_s1 + $0x128] sm:$0xff]  ;;  %v5668_v7 = vld [vmem:[%s12373_s1 + $0xd8] sm:$0xff]  ;;  %p379_p10 = scmp.lt.s32.totalorder %s10025_s21, 1  ;;  %vm412_vm1 = vcmask 785408   ;;  %vm3417_vm2 = vcmask 1043456  }
  0x18   : > { %v10074_v8 = vpack.c.bf16 %v5733_v5, %v5732_v2  ;;  %v5734_v9 = vld [vmem:[%s12373_s1 + $0x130] sm:$0xff]  ;;  %v5735_v10 = vld [vmem:[%s12373_s1 + $0x138] sm:$0xff]  ;;  %6878 = vmatprep.mubr.msk.f32.mxu0 %vm9941_vm0, %v12387_v11  ;;  %7013 = vmatprep.mubr.msk.f32.mxu1 %vm9941_vm0, %v12387_v11  ;;  %v10087_v12 = vpack.c.bf16 %v5668_v7, %v5667_v6  ;;  %v5669_v14 = vld [vmem:[%s12373_s1 + $0xe0] sm:$0xff]  ;;  %vm3413_vm3 = vcmask 687104   ;;  %vm5006_vm4 = vcmask 654336   ;;  %s377_s14 = sand.u32 1, %s9930_s18  }
  0x19   : > { %8609 = vmatpush3.bf16.msra.mxu0 %v10063_v4  ;;  %v10091_v13 = vpack.c.bf16 %v5735_v10, %v5734_v9  ;;  %v5670_v15 = vld [vmem:[%s12373_s1 + $0xe8] sm:$0xff]  ;;  %v5736_v16 = vld [vmem:[%s12373_s1 + $0x140] sm:$0xff]  ;;  %v5671_v20 = vld [vmem:[%s12373_s1 + $0xf0] sm:$0xff]  ;;  %s380_s29 = scalar_select %p379_p10, %s10025_s21, 1  ;;  %vm5425_vm5 = vcmask 982016   ;;  %vm5588_vm6 = vcmask 73728  }
  0x1a   : > { %8699 = vmatpush3.bf16.msra.mxu1 %v10074_v8  ;;  %8610 = vmatprep.subr.bf16.mxu0 %v9940_v3  ;;  %v5737_v17 = vld [vmem:[%s12373_s1 + $0x148] sm:$0xff]  ;;  %v10107_v18 = vpack.c.bf16 %v5670_v15, %v5669_v14  ;;  %v5672_v21 = vld [vmem:[%s12373_s1 + $0xf8] sm:$0xff]  ;;  %v5738_v22 = vld [vmem:[%s12373_s1 + $0x150] sm:$0xff]  ;;  %s6007_s16 = sshll.u32 %s10025_s21, 4  ;;  %s378_s22 = scalar_lea.vmem [#allocation2], %s377_s14 }
  0x1b   : > { %8700 = vmatprep.subr.bf16.mxu1 %v9940_v3  ;;  %v10111_v19 = vpack.c.bf16 %v5737_v17, %v5736_v16  ;;  %v5739_v23 = vld [vmem:[%s12373_s1 + $0x158] sm:$0xff]  ;;  %v10128_v24 = vpack.c.bf16 %v5672_v21, %v5671_v20  ;;  %v5673_v26 = vld [vmem:[%s12373_s1 + $0x100] sm:$0xff]  ;;  %v5674_v27 = vld [vmem:[%s12373_s1 + $0x108] sm:$0xff]  ;;  %s6010_s25 = sshll.u32 %s380_s29, 5  ;;  %s12330_s30 = scalar_lea.hbm %s12383_s11, %s6007_s16 }
  0x1c   : > { %v10132_v25 = vpack.c.bf16 %v5739_v23, %v5738_v22  ;;  %v5740_v28 = vld [vmem:[%s12373_s1 + $0x160] sm:$0xff]  ;;  %v5741_v29 = vld [vmem:[%s12373_s1 + $0x168] sm:$0xff]  ;;  %v10149_v30 = vpack.c.bf16 %v5674_v27, %v5673_v26  ;;  %v5675_v32 = vld [vmem:[%s12373_s1 + $0x110] sm:$0xff]  ;;  %s10178_s13 = scalar_lea.vmem %s12372_s0, %s6010_s25  ;;  %s5591_s12 = scalar_lea.sflag [#allocation3], %s377_s14 }
  0x1d   : > { %8612 = vmatpush3.bf16.msra.mxu0 %v10087_v12  ;;  %v10153_v31 = vpack.c.bf16 %v5741_v29, %v5740_v28  ;;  %v5676_v33 = vld [vmem:[%s12373_s1 + $0x118] sm:$0xff]  ;;  %v5742_v34 = vld [vmem:[%s12373_s1 + $0x170] sm:$0xff]  ;;  %v385_v38 = vld [vmem:[%s12373_s1] sm:$0xff]  ;;  %s9943_s21 = smov [#allocation2]  }
  0x1e   : > { %8702 = vmatpush3.bf16.msra.mxu1 %v10091_v13  ;;  %8613 = vmatprep.subr.bf16.mxu0 %v9940_v3  ;;  %v5743_v35 = vld [vmem:[%s12373_s1 + $0x178] sm:$0xff]  ;;  %v10169_v36 = vpack.c.bf16 %v5676_v33, %v5675_v32  ;;  %v386_v39 = vld [vmem:[%s12373_s1 + $0x8] sm:$0xff]  ;;  %v5720_v40 = vld [vmem:[%s12373_s1 + $0x60] sm:$0xff]  ;;  %s9880_s26 = sshll.u32 %s9943_s21, 4  ;;  %s9881_s26 = int_to_ptr.vmem [resolvable:$false] %s9880_s26 }
  0x1f   : > { %8703 = vmatprep.subr.bf16.mxu1 %v9940_v3  ;;  %v10173_v37 = vpack.c.bf16 %v5743_v35, %v5742_v34  ;;  %v5721_v41 = vld [vmem:[%s12373_s1 + $0x68] sm:$0xff]  ;;  %v10197_v43 = vpack.c.bf16 %v386_v39, %v385_v38  ;;  %v387_v45 = vld [vmem:[%s12373_s1 + $0x10] sm:$0xff]  ;;  %v388_v46 = vld [vmem:[%s12373_s1 + $0x18] sm:$0xff]  ;;  %s9882_s15 = scalar_lea.vmem %s9881_s26, 32 }
  0x20   : > { %v10195_v42 = vld [vmem:[%s10178_s13 + $0x8] sm:$0x7f]  ;;  %v10201_v44 = vpack.c.bf16 %v5721_v41, %v5720_v40  ;;  %v5722_v47 = vld [vmem:[%s12373_s1 + $0x70] sm:$0xff]  ;;  %v5723_v48 = vld [vmem:[%s12373_s1 + $0x78] sm:$0xff]  ;;  %v10221_v49 = vpack.c.bf16 %v388_v46, %v387_v45 }
  0x21   : > { %8615 = vmatpush3.bf16.msra.mxu0 %v10107_v18  ;;  %v10225_v50 = vpack.c.bf16 %v5723_v48, %v5722_v47  ;;  %v389_v51 = vld [vmem:[%s12373_s1 + $0x20] sm:$0xff]  ;;  %v390_v52 = vld [vmem:[%s12373_s1 + $0x28] sm:$0xff]  ;;  %v391_v57 = vld [vmem:[%s12373_s1 + $0x30] sm:$0xff] }
  0x22   : > { %8705 = vmatpush3.bf16.msra.mxu1 %v10111_v19  ;;  %8616 = vmatprep.subr.bf16.mxu0 %v9940_v3  ;;  %v5724_v53 = vld [vmem:[%s12373_s1 + $0x80] sm:$0xff]  ;;  %v5725_v54 = vld [vmem:[%s12373_s1 + $0x88] sm:$0xff]  ;;  %v10245_v55 = vpack.c.bf16 %v390_v52, %v389_v51  ;;  %v392_v58 = vld [vmem:[%s12373_s1 + $0x38] sm:$0xff] }
  0x23   : > { %8706 = vmatprep.subr.bf16.mxu1 %v9940_v3  ;;  %v10249_v56 = vpack.c.bf16 %v5725_v54, %v5724_v53  ;;  %v5726_v59 = vld [vmem:[%s12373_s1 + $0x90] sm:$0xff]  ;;  %v5727_v60 = vld [vmem:[%s12373_s1 + $0x98] sm:$0xff]  ;;  %v10265_v61 = vpack.c.bf16 %v392_v58, %v391_v57  ;;  %v393_v63 = vld [vmem:[%s12373_s1 + $0x40] sm:$0xff] }
  0x24   : > { %v10269_v62 = vpack.c.bf16 %v5727_v60, %v5726_v59  ;;  %v394_v0 = vld [vmem:[%s12373_s1 + $0x48] sm:$0xff]  ;;  %v5728_v1 = vld [vmem:[%s12373_s1 + $0xa0] sm:$0xff]  ;;  %v395_v7 = vld [vmem:[%s12373_s1 + $0x50] sm:$0xff] }
  0x25   : > { %8618 = vmatpush3.bf16.msra.mxu0 %v10128_v24  ;;  %v5729_v2 = vld [vmem:[%s12373_s1 + $0xa8] sm:$0xff]  ;;  %v10285_v5 = vpack.c.bf16 %v394_v0, %v393_v63  ;;  %v396_v9 = vld [vmem:[%s12373_s1 + $0x58] sm:$0xff]  ;;  %v5730_v10 = vld [vmem:[%s12373_s1 + $0xb0] sm:$0xff] }
  0x26   : > { %8708 = vmatpush3.bf16.msra.mxu1 %v10132_v25  ;;  %8619 = vmatprep.subr.bf16.mxu0 %v9940_v3  ;;  %v10289_v6 = vpack.c.bf16 %v5729_v2, %v5728_v1  ;;  %v5731_v14 = vld [vmem:[%s12373_s1 + $0xb8] sm:$0xff]  ;;  %v10305_v15 = vpack.c.bf16 %v396_v9, %v395_v7  ;;  %v5680_v17 = vld [vmem:[%s12373_s1 + $0x180] sm:$0xff]  ;;  %v5681_v20 = vld [vmem:[%s12373_s1 + $0x188] sm:$0xff] }
  0x27   : > { %8709 = vmatprep.subr.bf16.mxu1 %v9940_v3  ;;  %v10309_v16 = vpack.c.bf16 %v5731_v14, %v5730_v10  ;;  %v5746_v21 = vld [vmem:[%s12373_s1 + $0x1e0] sm:$0xff]  ;;  %v5747_v22 = vld [vmem:[%s12373_s1 + $0x1e8] sm:$0xff]  ;;  %v10326_v26 = vpack.c.bf16 %v5681_v20, %v5680_v17  ;;  %v5682_v28 = vld [vmem:[%s12373_s1 + $0x190] sm:$0xff] }
  0x28   : > { %v384_v23 = vld [vmem:[%s10178_s13] sm:$0x7f]  ;;  %v10330_v27 = vpack.c.bf16 %v5747_v22, %v5746_v21  ;;  %v5683_v29 = vld [vmem:[%s12373_s1 + $0x198] sm:$0xff]  ;;  %v5748_v32 = vld [vmem:[%s12373_s1 + $0x1f0] sm:$0xff] }
  0x29   : > { %8621 = vmatpush3.bf16.msra.mxu0 %v10149_v30  ;;  %v5749_v33 = vld [vmem:[%s12373_s1 + $0x1f8] sm:$0xff]  ;;  %v10348_v34 = vpack.c.bf16 %v5683_v29, %v5682_v28  ;;  %v5684_v38 = vld [vmem:[%s12373_s1 + $0x1a0] sm:$0xff]  ;;  %v5685_v39 = vld [vmem:[%s12373_s1 + $0x1a8] sm:$0xff] }
  0x2a   : > { %8711 = vmatpush3.bf16.msra.mxu1 %v10153_v31  ;;  %8622 = vmatprep.subr.bf16.mxu0 %v9940_v3  ;;  %v10352_v35 = vpack.c.bf16 %v5749_v33, %v5748_v32  ;;  %v5750_v40 = vld [vmem:[%s12373_s1 + $0x200] sm:$0xff]  ;;  %v5751_v41 = vld [vmem:[%s12373_s1 + $0x208] sm:$0xff]  ;;  %v10372_v45 = vpack.c.bf16 %v5685_v39, %v5684_v38  ;;  %v5686_v47 = vld [vmem:[%s12373_s1 + $0x1b0] sm:$0xff] }
  0x2b   : > { %8712 = vmatprep.subr.bf16.mxu1 %v9940_v3  ;;  %v10376_v46 = vpack.c.bf16 %v5751_v41, %v5750_v40  ;;  %v5687_v48 = vld [vmem:[%s12373_s1 + $0x1b8] sm:$0xff]  ;;  %v5752_v51 = vld [vmem:[%s12373_s1 + $0x210] sm:$0xff]  ;;  %v5688_v57 = vld [vmem:[%s12373_s1 + $0x1c0] sm:$0xff] }
  0x2c   : > { %v5753_v52 = vld [vmem:[%s12373_s1 + $0x218] sm:$0xff]  ;;  %v10392_v53 = vpack.c.bf16 %v5687_v48, %v5686_v47  ;;  %v5689_v58 = vld [vmem:[%s12373_s1 + $0x1c8] sm:$0xff]  ;;  %v5754_v59 = vld [vmem:[%s12373_s1 + $0x220] sm:$0xff] }
  0x2d   : > { %8624 = vmatpush3.bf16.msra.mxu0 %v10169_v36  ;;  %v10396_v54 = vpack.c.bf16 %v5753_v52, %v5752_v51  ;;  %v5755_v60 = vld [vmem:[%s12373_s1 + $0x228] sm:$0xff]  ;;  %v10412_v63 = vpack.c.bf16 %v5689_v58, %v5688_v57  ;;  %v5690_v1 = vld [vmem:[%s12373_s1 + $0x1d0] sm:$0xff]  ;;  %v5691_v2 = vld [vmem:[%s12373_s1 + $0x1d8] sm:$0xff] }
  0x2e   : > { %8714 = vmatpush3.bf16.msra.mxu1 %v10173_v37  ;;  %8625 = vmatprep.subr.bf16.mxu0 %v9940_v3  ;;  %v10416_v0 = vpack.c.bf16 %v5755_v60, %v5754_v59  ;;  %v5756_v7 = vld [vmem:[%s12373_s1 + $0x230] sm:$0xff]  ;;  %v5757_v9 = vld [vmem:[%s12373_s1 + $0x238] sm:$0xff]  ;;  %v10432_v10 = vpack.c.bf16 %v5691_v2, %v5690_v1  ;;  %v5694_v17 = vld [vmem:[%s12373_s1 + $0x240] sm:$0xff] }
  0x2f   : > { %8715 = vmatprep.subr.bf16.mxu1 %v9940_v3  ;;  %v10436_v14 = vpack.c.bf16 %v5757_v9, %v5756_v7  ;;  %v5695_v20 = vld [vmem:[%s12373_s1 + $0x248] sm:$0xff]  ;;  %v5759_v21 = vld [vmem:[%s12373_s1 + $0x2a0] sm:$0xff]  ;;  %v5696_v32 = vld [vmem:[%s12373_s1 + $0x250] sm:$0xff] }
  0x30   : > { %6879 = vmatmul.mubr.msk.f32.vlgmr.msra.gmra.mrb[0].mxu0 %vm412_vm1, %v10195_v42  ;;  %v5760_v22 = vld [vmem:[%s12373_s1 + $0x2a8] sm:$0xff]  ;;  %v10455_v28 = vpack.c.bf16 %v5695_v20, %v5694_v17  ;;  %v5697_v33 = vld [vmem:[%s12373_s1 + $0x258] sm:$0xff]  ;;  %v5761_v38 = vld [vmem:[%s12373_s1 + $0x2b0] sm:$0xff] }
  0x31   : > { %8627 = vmatpush3.bf16.msra.mxu0 %v10197_v43  ;;  %7014 = vmatmul.mubr.msk.f32.vlgmr.msra.gmra.mrb[0].mxu1 %vm412_vm1, %v10195_v42  ;;  %v10459_v29 = vpack.c.bf16 %v5760_v22, %v5759_v21  ;;  %v5762_v39 = vld [vmem:[%s12373_s1 + $0x2b8] sm:$0xff]  ;;  %v10479_v40 = vpack.c.bf16 %v5697_v33, %v5696_v32  ;;  %v5698_v47 = vld [vmem:[%s12373_s1 + $0x260] sm:$0xff]  ;;  %v5699_v48 = vld [vmem:[%s12373_s1 + $0x268] sm:$0xff] }
  0x32   : > { %8717 = vmatpush3.bf16.msra.mxu1 %v10201_v44  ;;  %8628 = vmatprep.subr.bf16.mxu0 %v9940_v3  ;;  %v10483_v41 = vpack.c.bf16 %v5762_v39, %v5761_v38  ;;  %v5763_v51 = vld [vmem:[%s12373_s1 + $0x2c0] sm:$0xff]  ;;  %v5764_v52 = vld [vmem:[%s12373_s1 + $0x2c8] sm:$0xff]  ;;  %v10503_v57 = vpack.c.bf16 %v5699_v48, %v5698_v47  ;;  %v5700_v59 = vld [vmem:[%s12373_s1 + $0x270] sm:$0xff] }
  0x33   : > { %8718 = vmatprep.subr.bf16.mxu1 %v9940_v3  ;;  %6905 = vmatprep.mubr.msk.f32.mxu0 %vm9941_vm0, %v12387_v11  ;;  %v10507_v58 = vpack.c.bf16 %v5764_v52, %v5763_v51  ;;  %v5701_v60 = vld [vmem:[%s12373_s1 + $0x278] sm:$0xff]  ;;  %v5765_v1 = vld [vmem:[%s12373_s1 + $0x2d0] sm:$0xff]  ;;  %v5702_v17 = vld [vmem:[%s12373_s1 + $0x280] sm:$0xff] }
  0x34   : > { %7040 = vmatprep.mubr.msk.f32.mxu1 %vm9941_vm0, %v12387_v11  ;;  %12410 = vst [vmem:[#allocation7_spill] sm:$0xff] %v10503_v57  ;;  %v5766_v2 = vld [vmem:[%s12373_s1 + $0x2d8] sm:$0xff]  ;;  %v10523_v7 = vpack.c.bf16 %v5701_v60, %v5700_v59  ;;  %v5703_v20 = vld [vmem:[%s12373_s1 + $0x288] sm:$0xff]  ;;  %v5767_v21 = vld [vmem:[%s12373_s1 + $0x2e0] sm:$0xff] }
  0x35   : > { %8630 = vmatpush3.bf16.msra.mxu0 %v10221_v49  ;;  %12411 = vst [vmem:[#allocation8_spill] sm:$0xff] %v10507_v58  ;;  %v10527_v9 = vpack.c.bf16 %v5766_v2, %v5765_v1  ;;  %v5768_v22 = vld [vmem:[%s12373_s1 + $0x2e8] sm:$0xff]  ;;  %v10543_v32 = vpack.c.bf16 %v5703_v20, %v5702_v17  ;;  %v5704_v38 = vld [vmem:[%s12373_s1 + $0x290] sm:$0xff]  ;;  %v5705_v39 = vld [vmem:[%s12373_s1 + $0x298] sm:$0xff] }
  0x36   : > { %8720 = vmatpush3.bf16.msra.mxu1 %v10225_v50  ;;  %8631 = vmatprep.subr.bf16.mxu0 %v9940_v3  ;;  %12412 = vst [vmem:[#allocation9_spill] sm:$0xff] %v10523_v7  ;;  %v10547_v33 = vpack.c.bf16 %v5768_v22, %v5767_v21  ;;  %v5769_v47 = vld [vmem:[%s12373_s1 + $0x2f0] sm:$0xff]  ;;  %v5770_v48 = vld [vmem:[%s12373_s1 + $0x2f8] sm:$0xff]  ;;  %v10563_v51 = vpack.c.bf16 %v5705_v39, %v5704_v38  ;;  %v5707_v59 = vld [vmem:[%s12373_s1 + $0x300] sm:$0xff] }
  0x37   : > { %8721 = vmatprep.subr.bf16.mxu1 %v9940_v3  ;;  %12413 = vst [vmem:[#allocation10_spill] sm:$0xff] %v10527_v9  ;;  %v10567_v52 = vpack.c.bf16 %v5770_v48, %v5769_v47  ;;  %v5708_v60 = vld [vmem:[%s12373_s1 + $0x308] sm:$0xff]  ;;  %v5772_v1 = vld [vmem:[%s12373_s1 + $0x360] sm:$0xff]  ;;  %v10584_v17 = vld [vmem:[%s10178_s13 + $0x18] sm:$0x7f] }
  0x38   : > { %v5773_v2 = vld [vmem:[%s12373_s1 + $0x368] sm:$0xff]  ;;  %v10586_v20 = vpack.c.bf16 %v5708_v60, %v5707_v59  ;;  %v5709_v22 = vld [vmem:[%s12373_s1 + $0x310] sm:$0xff]  ;;  %v5710_v38 = vld [vmem:[%s12373_s1 + $0x318] sm:$0xff] }
  0x39   : > { %8633 = vmatpush3.bf16.msra.mxu0 %v10245_v55  ;;  %v10590_v21 = vpack.c.bf16 %v5773_v2, %v5772_v1  ;;  %v5774_v39 = vld [vmem:[%s12373_s1 + $0x370] sm:$0xff]  ;;  %v5775_v47 = vld [vmem:[%s12373_s1 + $0x378] sm:$0xff]  ;;  %v10610_v48 = vpack.c.bf16 %v5710_v38, %v5709_v22  ;;  %v5711_v60 = vld [vmem:[%s12373_s1 + $0x320] sm:$0xff] }
  0x3a   : > { %8723 = vmatpush3.bf16.msra.mxu1 %v10249_v56  ;;  %8634 = vmatprep.subr.bf16.mxu0 %v9940_v3  ;;  %v10614_v59 = vpack.c.bf16 %v5775_v47, %v5774_v39  ;;  %v5712_v1 = vld [vmem:[%s12373_s1 + $0x328] sm:$0xff]  ;;  %v5776_v2 = vld [vmem:[%s12373_s1 + $0x380] sm:$0xff]  ;;  %v5713_v47 = vld [vmem:[%s12373_s1 + $0x330] sm:$0xff] }
  0x3b   : > { %8724 = vmatprep.subr.bf16.mxu1 %v9940_v3  ;;  %12414 = vst [vmem:[#allocation11_spill] sm:$0xff] %v10590_v21  ;;  %v5777_v22 = vld [vmem:[%s12373_s1 + $0x388] sm:$0xff]  ;;  %v10634_v38 = vpack.c.bf16 %v5712_v1, %v5711_v60  ;;  %v5778_v60 = vld [vmem:[%s12373_s1 + $0x390] sm:$0xff]  ;;  %v5779_v1 = vld [vmem:[%s12373_s1 + $0x398] sm:$0xff] }
  0x3c   : > { %12415 = vst [vmem:[#allocation12_spill] sm:$0xff] %v10614_v59  ;;  %v10638_v39 = vpack.c.bf16 %v5777_v22, %v5776_v2  ;;  %v10658_v22 = vpack.c.bf16 %v5779_v1, %v5778_v60 }
  0x3d   : > { %8636 = vmatpush3.bf16.msra.mxu0 %v10265_v61  ;;  %12416 = vst [vmem:[#allocation13_spill] sm:$0xff] %v10634_v38 }
  0x3e   : > { %8726 = vmatpush3.bf16.msra.mxu1 %v10269_v62  ;;  %8637 = vmatprep.subr.bf16.mxu0 %v9940_v3  ;;  %12417 = vst [vmem:[#allocation14_spill] sm:$0xff] %v10638_v39  ;;  %12418 = vst [vmem:[#allocation15_spill] sm:$0xff] %v10658_v22 }
  0x3f   : > { %8727 = vmatprep.subr.bf16.mxu1 %v9940_v3 }
  0x41   : > { %8639 = vmatpush3.bf16.msra.mxu0 %v10285_v5 }
  0x42   : > { %8729 = vmatpush3.bf16.msra.mxu1 %v10289_v6  ;;  %8640 = vmatprep.subr.bf16.mxu0 %v9940_v3 }
  0x43   : > { %8730 = vmatprep.subr.bf16.mxu1 %v9940_v3 }
  0x45   : > { %8642 = vmatpush3.bf16.msra.mxu0 %v10305_v15 }
  0x46   : > { %8732 = vmatpush3.bf16.msra.mxu1 %v10309_v16  ;;  %8643 = vmatprep.subr.bf16.mxu0 %v9940_v3 }
  0x47   : > { %8733 = vmatprep.subr.bf16.mxu1 %v9940_v3 }
  0x48   : > { %6906 = vmatmul.mubr.msk.f32.vlgmr.msra.gmra.mrb[0].mxu0 %vm412_vm1, %v384_v23 }
  0x49   : > { %8645 = vmatpush3.bf16.msra.mxu0 %v10326_v26  ;;  %7041 = vmatmul.mubr.msk.f32.vlgmr.msra.gmra.mrb[0].mxu1 %vm412_vm1, %v384_v23  ;;  %v10453_v23 = vld [vmem:[%s10178_s13 + $0x10] sm:$0x7f] }
  0x4a   : > { %8735 = vmatpush3.bf16.msra.mxu1 %v10330_v27  ;;  %8646 = vmatprep.subr.bf16.mxu0 %v9940_v3 }
  0x4b   : > { %8736 = vmatprep.subr.bf16.mxu1 %v9940_v3  ;;  %6932 = vmatprep.mubr.msk.f32.mxu0 %vm9941_vm0, %v12387_v11 }
  0x4c   : > { %7067 = vmatprep.mubr.msk.f32.mxu1 %vm9941_vm0, %v12387_v11 }
  0x4d   : > { %8648 = vmatpush3.bf16.msra.mxu0 %v10348_v34 }
  0x4e   : > { %8738 = vmatpush3.bf16.msra.mxu1 %v10352_v35  ;;  %8649 = vmatprep.subr.bf16.mxu0 %v9940_v3 }
  0x4f   : > { %8739 = vmatprep.subr.bf16.mxu1 %v9940_v3 }
  0x51   : > { %8651 = vmatpush3.bf16.msra.mxu0 %v10372_v45 }
  0x52   : > { %8741 = vmatpush3.bf16.msra.mxu1 %v10376_v46  ;;  %8652 = vmatprep.subr.bf16.mxu0 %v9940_v3 }
  0x53   : > { %8742 = vmatprep.subr.bf16.mxu1 %v9940_v3 }
  0x55   : > { %8654 = vmatpush3.bf16.msra.mxu0 %v10392_v53 }
  0x56   : > { %8744 = vmatpush3.bf16.msra.mxu1 %v10396_v54  ;;  %8655 = vmatprep.subr.bf16.mxu0 %v9940_v3 }
  0x57   : > { %8745 = vmatprep.subr.bf16.mxu1 %v9940_v3 }
  0x59   : > { %8657 = vmatpush3.bf16.msra.mxu0 %v10412_v63 }
  0x5a   : > { %8747 = vmatpush3.bf16.msra.mxu1 %v10416_v0  ;;  %8658 = vmatprep.subr.bf16.mxu0 %v9940_v3 }
  0x5b   : > { %8748 = vmatprep.subr.bf16.mxu1 %v9940_v3 }
  0x5d   : > { %8660 = vmatpush3.bf16.msra.mxu0 %v10432_v10 }
  0x5e   : > { %8750 = vmatpush3.bf16.msra.mxu1 %v10436_v14  ;;  %8661 = vmatprep.subr.bf16.mxu0 %v9940_v3 }
  0x5f   : > { %8751 = vmatprep.subr.bf16.mxu1 %v9940_v3 }
  0x60   : > { %6933 = vmatmul.mubr.msk.f32.vlgmr.msra.gmra.mrb[0].mxu0 %vm412_vm1, %v10453_v23 }
  0x61   : > { %8663 = vmatpush3.bf16.msra.mxu0 %v10455_v28  ;;  %7068 = vmatmul.mubr.msk.f32.vlgmr.msra.gmra.mrb[0].mxu1 %vm412_vm1, %v10453_v23 }
  0x62   : > { %8753 = vmatpush3.bf16.msra.mxu1 %v10459_v29  ;;  %8664 = vmatprep.subr.bf16.mxu0 %v9940_v3 }
  0x63   : > { %8754 = vmatprep.subr.bf16.mxu1 %v9940_v3  ;;  %6959 = vmatprep.mubr.msk.f32.mxu0 %vm9941_vm0, %v12387_v11 }
  0x64   : > { %7094 = vmatprep.mubr.msk.f32.mxu1 %vm9941_vm0, %v12387_v11 }
  0x65   : > { %8666 = vmatpush3.bf16.msra.mxu0 %v10479_v40 }
  0x66   : > { %8756 = vmatpush3.bf16.msra.mxu1 %v10483_v41  ;;  %8667 = vmatprep.subr.bf16.mxu0 %v9940_v3 }
  0x67   : > { %8757 = vmatprep.subr.bf16.mxu1 %v9940_v3 }
  0x69   : > { %8669 = vmatpush3.bf16.msra.mxu0 %v10503_v57 }
  0x6a   : > { %8759 = vmatpush3.bf16.msra.mxu1 %v10507_v58  ;;  %8670 = vmatprep.subr.bf16.mxu0 %v9940_v3 }
  0x6b   : > { %8760 = vmatprep.subr.bf16.mxu1 %v9940_v3 }
  0x6d   : > { %8672 = vmatpush3.bf16.msra.mxu0 %v10523_v7 }
  0x6e   : > { %8762 = vmatpush3.bf16.msra.mxu1 %v10527_v9  ;;  %8673 = vmatprep.subr.bf16.mxu0 %v9940_v3 }
  0x6f   : > { %8763 = vmatprep.subr.bf16.mxu1 %v9940_v3 }
  0x71   : > { %8675 = vmatpush3.bf16.msra.mxu0 %v10543_v32 }
  0x72   : > { %8765 = vmatpush3.bf16.msra.mxu1 %v10547_v33  ;;  %8676 = vmatprep.subr.bf16.mxu0 %v9940_v3 }
  0x73   : > { %8766 = vmatprep.subr.bf16.mxu1 %v9940_v3 }
  0x75   : > { %8678 = vmatpush3.bf16.msra.mxu0 %v10563_v51 }
  0x76   : > { %8768 = vmatpush3.bf16.msra.mxu1 %v10567_v52  ;;  %8679 = vmatprep.subr.bf16.mxu0 %v9940_v3 }
  0x77   : > { %8769 = vmatprep.subr.bf16.mxu1 %v9940_v3 }
  0x78   : > { %6960 = vmatmul.mubr.msk.f32.vlgmr.msra.gmra.mrb[0].mxu0 %vm412_vm1, %v10584_v17 }
  0x79   : > { %8681 = vmatpush3.bf16.msra.mxu0 %v10586_v20  ;;  %7095 = vmatmul.mubr.msk.f32.vlgmr.msra.gmra.mrb[0].mxu1 %vm412_vm1, %v10584_v17 }
  0x7a   : > { %8771 = vmatpush3.bf16.msra.mxu1 %v10590_v21  ;;  %8682 = vmatprep.subr.bf16.mxu0 %v9940_v3  ;;  %v5714_v21 = vld [vmem:[%s12373_s1 + $0x338] sm:$0xff] }
  0x7b   : > { %8772 = vmatprep.subr.bf16.mxu1 %v9940_v3  ;;  %6986 = vmatprep.mubr.msk.f32.mxu0 %vm9941_vm0, %v12387_v11  ;;  %v10654_v2 = vpack.c.bf16 %v5714_v21, %v5713_v47  ;;  %v5780_v21 = vld [vmem:[%s12373_s1 + $0x3a0] sm:$0xff]  ;;  %v5781_v47 = vld [vmem:[%s12373_s1 + $0x3a8] sm:$0xff] }
  0x7c   : > { %7121 = vmatprep.mubr.msk.f32.mxu1 %vm9941_vm0, %v12387_v11  ;;  %v5715_v11 = vld [vmem:[%s12373_s1 + $0x340] sm:$0xff]  ;;  %v10678_v1 = vpack.c.bf16 %v5781_v47, %v5780_v21 }
  0x7d   : > { %8684 = vmatpush3.bf16.msra.mxu0 %v10610_v48 }
  0x7e   : > { %8774 = vmatpush3.bf16.msra.mxu1 %v10614_v59  ;;  %8685 = vmatprep.subr.bf16.mxu0 %v9940_v3  ;;  %v5716_v59 = vld [vmem:[%s12373_s1 + $0x348] sm:$0xff] }
  0x7f   : > { %8775 = vmatprep.subr.bf16.mxu1 %v9940_v3  ;;  %v10674_v60 = vpack.c.bf16 %v5716_v59, %v5715_v11  ;;  %v5782_v11 = vld [vmem:[%s12373_s1 + $0x3b0] sm:$0xff]  ;;  %v5783_v59 = vld [vmem:[%s12373_s1 + $0x3b8] sm:$0xff] }
  0x80   : > { %v10698_v47 = vpack.c.bf16 %v5783_v59, %v5782_v11  ;;  %v12422_v11 = vld [vmem:[#allocation13_spill] sm:$0xff]  ;;  %v12423_v59 = vld [vmem:[#allocation14_spill] sm:$0xff] }
  0x81   : > { %8687 = vmatpush3.bf16.msra.mxu0 %v10634_v38  ;;  %v5718_v38 = vld [vmem:[%s12373_s1 + $0x358] sm:$0xff] }
  0x82   : > { %8777 = vmatpush3.bf16.msra.mxu1 %v10638_v39  ;;  %8688 = vmatprep.subr.bf16.mxu0 %v9940_v3  ;;  %v5717_v39 = vld [vmem:[%s12373_s1 + $0x350] sm:$0xff] }
  0x83   : > { %8778 = vmatprep.subr.bf16.mxu1 %v9940_v3  ;;  %v10694_v21 = vpack.c.bf16 %v5718_v38, %v5717_v39  ;;  %v12419_v38 = vmov 0.0   ;;  %v12421_v39 = vld [vmem:[#allocation12_spill] sm:$0xff] }
  0x85   : > { %8690 = vmatpush3.bf16.msra.mxu0 %v10654_v2 }
  0x86   : > { %8780 = vmatpush3.bf16.msra.mxu1 %v10658_v22  ;;  %8691 = vmatprep.subr.bf16.mxu0 %v9940_v3  ;;  %v10703_v22 = vld [vmem:[%s10178_s13 + $0x1] sm:$0x7f] }
  0x87   : > { %8781 = vmatprep.subr.bf16.mxu1 %v9940_v3 }
  0x89   : > { %8693 = vmatpush3.bf16.msra.mxu0 %v10674_v60 }
  0x8a   : > { %8783 = vmatpush3.bf16.msra.mxu1 %v10678_v1  ;;  %8694 = vmatprep.subr.bf16.mxu0 %v9940_v3 }
  0x8b   : > { %8784 = vmatprep.subr.bf16.mxu1 %v9940_v3 }
  0x8d   : > { %8696 = vmatpush3.bf16.msra.mxu0 %v10694_v21 }
  0x8e   : > { %8786 = vmatpush3.bf16.msra.mxu1 %v10698_v47  ;;  %8787 = vmatprep.subr.bf16.mxu0 %v9940_v3 }
  0x8f   : > { %8877 = vmatprep.subr.bf16.mxu1 %v9940_v3 }
  0x90   : > { %6987 = vmatmul.mubr.msk.f32.vlgmr.msra.gmra.mrb[0].mxu0 %vm412_vm1, %v10703_v22 }
  0x91   : > { %7122 = vmatmul.mubr.msk.f32.vlgmr.msra.gmra.mrb[0].mxu1 %vm412_vm1, %v10703_v22  ;;  %8789 = vmatpush3.bf16.msra.mxu0 %v10063_v4 }
  0x92   : > { %8879 = vmatpush3.bf16.msra.mxu1 %v10074_v8  ;;  %8790 = vmatprep.subr.bf16.mxu0 %v9940_v3 }
  0x93   : > { %8880 = vmatprep.subr.bf16.mxu1 %v9940_v3  ;;  %7148 = vmatprep.mubr.msk.f32.mxu0 %vm9941_vm0, %v12419_v38 }
  0x94   : > { %7283 = vmatprep.mubr.msk.f32.mxu1 %vm9941_vm0, %v12419_v38 }
  0x95   : > { %8792 = vmatpush3.bf16.msra.mxu0 %v10087_v12 }
  0x96   : > { %8882 = vmatpush3.bf16.msra.mxu1 %v10091_v13  ;;  %8793 = vmatprep.subr.bf16.mxu0 %v9940_v3 }
  0x97   : > { %8883 = vmatprep.subr.bf16.mxu1 %v9940_v3 }
  0x99   : > { %8795 = vmatpush3.bf16.msra.mxu0 %v10107_v18 }
  0x9a   : > { %8885 = vmatpush3.bf16.msra.mxu1 %v10111_v19  ;;  %8796 = vmatprep.subr.bf16.mxu0 %v9940_v3 }
  0x9b   : > { %8886 = vmatprep.subr.bf16.mxu1 %v9940_v3 }
  0x9d   : > { %8798 = vmatpush3.bf16.msra.mxu0 %v10128_v24 }
  0x9e   : > { %8888 = vmatpush3.bf16.msra.mxu1 %v10132_v25  ;;  %8799 = vmatprep.subr.bf16.mxu0 %v9940_v3 }
  0x9f   : > { %8889 = vmatprep.subr.bf16.mxu1 %v9940_v3 }
  0xa1   : > { %8801 = vmatpush3.bf16.msra.mxu0 %v10149_v30 }
  0xa2   : > { %8891 = vmatpush3.bf16.msra.mxu1 %v10153_v31  ;;  %8802 = vmatprep.subr.bf16.mxu0 %v9940_v3 }
  0xa3   : > { %8892 = vmatprep.subr.bf16.mxu1 %v9940_v3 }
  0xa5   : > { %8804 = vmatpush3.bf16.msra.mxu0 %v10169_v36 }
  0xa6   : > { %8894 = vmatpush3.bf16.msra.mxu1 %v10173_v37  ;;  %8805 = vmatprep.subr.bf16.mxu0 %v9940_v3 }
  0xa7   : > { %8895 = vmatprep.subr.bf16.mxu1 %v9940_v3 }
  0xa8   : > { %7149 = vmatmul.mubr.msk.f32.vlgmr.msra.gmra.mrb[2].mxu0 %vm412_vm1, %v10453_v23 }
  0xa9   : > { %8807 = vmatpush3.bf16.msra.mxu0 %v10197_v43  ;;  %7284 = vmatmul.mubr.msk.f32.vlgmr.msra.gmra.mrb[2].mxu1 %vm412_vm1, %v10453_v23 }
  0xaa   : > { %8897 = vmatpush3.bf16.msra.mxu1 %v10201_v44  ;;  %8808 = vmatprep.subr.bf16.mxu0 %v9940_v3 }
  0xab   : > { %8898 = vmatprep.subr.bf16.mxu1 %v9940_v3  ;;  %7175 = vmatprep.mubr.msk.f32.mxu0 %vm9941_vm0, %v12419_v38 }
  0xac   : > { %7310 = vmatprep.mubr.msk.f32.mxu1 %vm9941_vm0, %v12419_v38 }
  0xad   : > { %8810 = vmatpush3.bf16.msra.mxu0 %v10221_v49 }
  0xae   : > { %8900 = vmatpush3.bf16.msra.mxu1 %v10225_v50  ;;  %8811 = vmatprep.subr.bf16.mxu0 %v9940_v3 }
  0xaf   : > { %8901 = vmatprep.subr.bf16.mxu1 %v9940_v3 }
  0xb1   : > { %8813 = vmatpush3.bf16.msra.mxu0 %v10245_v55 }
  0xb2   : > { %8903 = vmatpush3.bf16.msra.mxu1 %v10249_v56  ;;  %8814 = vmatprep.subr.bf16.mxu0 %v9940_v3 }
  0xb3   : > { %8904 = vmatprep.subr.bf16.mxu1 %v9940_v3 }
  0xb5   : > { %8816 = vmatpush3.bf16.msra.mxu0 %v10265_v61 }
  0xb6   : > { %8906 = vmatpush3.bf16.msra.mxu1 %v10269_v62  ;;  %8817 = vmatprep.subr.bf16.mxu0 %v9940_v3 }
  0xb7   : > { %8907 = vmatprep.subr.bf16.mxu1 %v9940_v3 }
  0xb9   : > { %8819 = vmatpush3.bf16.msra.mxu0 %v10285_v5 }
  0xba   : > { %8909 = vmatpush3.bf16.msra.mxu1 %v10289_v6  ;;  %8820 = vmatprep.subr.bf16.mxu0 %v9940_v3 }
  0xbb   : > { %8910 = vmatprep.subr.bf16.mxu1 %v9940_v3 }
  0xbd   : > { %8822 = vmatpush3.bf16.msra.mxu0 %v10305_v15 }
  0xbe   : > { %8912 = vmatpush3.bf16.msra.mxu1 %v10309_v16  ;;  %8823 = vmatprep.subr.bf16.mxu0 %v9940_v3 }
  0xbf   : > { %8913 = vmatprep.subr.bf16.mxu1 %v9940_v3 }
  0xc0   : > { %7176 = vmatmul.mubr.msk.f32.vlgmr.msra.gmra.mrb[2].mxu0 %vm412_vm1, %v10195_v42 }
  0xc1   : > { %8825 = vmatpush3.bf16.msra.mxu0 %v10326_v26  ;;  %7311 = vmatmul.mubr.msk.f32.vlgmr.msra.gmra.mrb[2].mxu1 %vm412_vm1, %v10195_v42  ;;  %v12420_v42 = vld [vmem:[#allocation11_spill] sm:$0xff] }
  0xc2   : > { %8915 = vmatpush3.bf16.msra.mxu1 %v10330_v27  ;;  %8826 = vmatprep.subr.bf16.mxu0 %v9940_v3 }
  0xc3   : > { %8916 = vmatprep.subr.bf16.mxu1 %v9940_v3  ;;  %7202 = vmatprep.mubr.msk.f32.mxu0 %vm9941_vm0, %v12419_v38 }
  0xc4   : > { %7337 = vmatprep.mubr.msk.f32.mxu1 %vm9941_vm0, %v12419_v38 }
  0xc5   : > { %8828 = vmatpush3.bf16.msra.mxu0 %v10348_v34 }
  0xc6   : > { %8918 = vmatpush3.bf16.msra.mxu1 %v10352_v35  ;;  %8829 = vmatprep.subr.bf16.mxu0 %v9940_v3 }
  0xc7   : > { %8919 = vmatprep.subr.bf16.mxu1 %v9940_v3 }
  0xc9   : > { %8831 = vmatpush3.bf16.msra.mxu0 %v10372_v45 }
  0xca   : > { %8921 = vmatpush3.bf16.msra.mxu1 %v10376_v46  ;;  %8832 = vmatprep.subr.bf16.mxu0 %v9940_v3 }
  0xcb   : > { %8922 = vmatprep.subr.bf16.mxu1 %v9940_v3 }
  0xcd   : > { %8834 = vmatpush3.bf16.msra.mxu0 %v10392_v53 }
  0xce   : > { %8924 = vmatpush3.bf16.msra.mxu1 %v10396_v54  ;;  %8835 = vmatprep.subr.bf16.mxu0 %v9940_v3 }
  0xcf   : > { %8925 = vmatprep.subr.bf16.mxu1 %v9940_v3 }
  0xd1   : > { %8837 = vmatpush3.bf16.msra.mxu0 %v10412_v63 }
  0xd2   : > { %8927 = vmatpush3.bf16.msra.mxu1 %v10416_v0  ;;  %8838 = vmatprep.subr.bf16.mxu0 %v9940_v3 }
  0xd3   : > { %8928 = vmatprep.subr.bf16.mxu1 %v9940_v3 }
  0xd5   : > { %8840 = vmatpush3.bf16.msra.mxu0 %v10432_v10 }
  0xd6   : > { %8930 = vmatpush3.bf16.msra.mxu1 %v10436_v14  ;;  %8841 = vmatprep.subr.bf16.mxu0 %v9940_v3 }
  0xd7   : > { %8931 = vmatprep.subr.bf16.mxu1 %v9940_v3 }
  0xd8   : > { %7203 = vmatmul.mubr.msk.f32.vlgmr.msra.gmra.mrb[2].mxu0 %vm412_vm1, %v10584_v17 }
  0xd9   : > { %8843 = vmatpush3.bf16.msra.mxu0 %v10455_v28  ;;  %7338 = vmatmul.mubr.msk.f32.vlgmr.msra.gmra.mrb[2].mxu1 %vm412_vm1, %v10584_v17 }
  0xda   : > { %8933 = vmatpush3.bf16.msra.mxu1 %v10459_v29  ;;  %8844 = vmatprep.subr.bf16.mxu0 %v9940_v3 }
  0xdb   : > { %8934 = vmatprep.subr.bf16.mxu1 %v9940_v3  ;;  %7229 = vmatprep.mubr.msk.f32.mxu0 %vm9941_vm0, %v12419_v38 }
  0xdc   : > { %7364 = vmatprep.mubr.msk.f32.mxu1 %vm9941_vm0, %v12419_v38 }
  0xdd   : > { %8846 = vmatpush3.bf16.msra.mxu0 %v10479_v40 }
  0xde   : > { %8936 = vmatpush3.bf16.msra.mxu1 %v10483_v41  ;;  %8847 = vmatprep.subr.bf16.mxu0 %v9940_v3 }
  0xdf   : > { %8937 = vmatprep.subr.bf16.mxu1 %v9940_v3 }
  0xe1   : > { %8849 = vmatpush3.bf16.msra.mxu0 %v10503_v57 }
  0xe2   : > { %8939 = vmatpush3.bf16.msra.mxu1 %v10507_v58  ;;  %8850 = vmatprep.subr.bf16.mxu0 %v9940_v3 }
  0xe3   : > { %8940 = vmatprep.subr.bf16.mxu1 %v9940_v3 }
  0xe5   : > { %8852 = vmatpush3.bf16.msra.mxu0 %v10523_v7 }
  0xe6   : > { %8942 = vmatpush3.bf16.msra.mxu1 %v10527_v9  ;;  %8853 = vmatprep.subr.bf16.mxu0 %v9940_v3 }
  0xe7   : > { %8943 = vmatprep.subr.bf16.mxu1 %v9940_v3 }
  0xe9   : > { %8855 = vmatpush3.bf16.msra.mxu0 %v10543_v32 }
  0xea   : > { %8945 = vmatpush3.bf16.msra.mxu1 %v10547_v33  ;;  %8856 = vmatprep.subr.bf16.mxu0 %v9940_v3 }
  0xeb   : > { %8946 = vmatprep.subr.bf16.mxu1 %v9940_v3 }
  0xed   : > { %8858 = vmatpush3.bf16.msra.mxu0 %v10563_v51 }
  0xee   : > { %8948 = vmatpush3.bf16.msra.mxu1 %v10567_v52  ;;  %8859 = vmatprep.subr.bf16.mxu0 %v9940_v3 }
  0xef   : > { %8949 = vmatprep.subr.bf16.mxu1 %v9940_v3 }
  0xf0   : > { %7230 = vmatmul.mubr.msk.f32.vlgmr.msra.gmra.mrb[2].mxu0 %vm412_vm1, %v10703_v22 }
  0xf1   : > { %8861 = vmatpush3.bf16.msra.mxu0 %v10586_v20  ;;  %7365 = vmatmul.mubr.msk.f32.vlgmr.msra.gmra.mrb[2].mxu1 %vm412_vm1, %v10703_v22 }
  0xf2   : > { %8951 = vmatpush3.bf16.msra.mxu1 %v12420_v42  ;;  %8862 = vmatprep.subr.bf16.mxu0 %v9940_v3  ;;  %v12424_v42 = vld [vmem:[#allocation15_spill] sm:$0xff] }
  0xf3   : > { %8952 = vmatprep.subr.bf16.mxu1 %v9940_v3  ;;  %7256 = vmatprep.mubr.msk.f32.mxu0 %vm9941_vm0, %v12419_v38 }
  0xf4   : > { %7391 = vmatprep.mubr.msk.f32.mxu1 %vm9941_vm0, %v12419_v38 }
  0xf5   : > { %8864 = vmatpush3.bf16.msra.mxu0 %v10610_v48 }
  0xf6   : > { %8954 = vmatpush3.bf16.msra.mxu1 %v12421_v39  ;;  %8865 = vmatprep.subr.bf16.mxu0 %v9940_v3 }
  0xf7   : > { %8955 = vmatprep.subr.bf16.mxu1 %v9940_v3 }
  0xf9   : > { %8867 = vmatpush3.bf16.msra.mxu0 %v12422_v11 }
  0xfa   : > { %8957 = vmatpush3.bf16.msra.mxu1 %v12423_v59  ;;  %8868 = vmatprep.subr.bf16.mxu0 %v9940_v3  ;;  %v10866_v59 = vld [vmem:[%s10178_s13 + $0x9] sm:$0x7f] }
  0xfb   : > { %8958 = vmatprep.subr.bf16.mxu1 %v9940_v3 }
  0xfd   : > { %8870 = vmatpush3.bf16.msra.mxu0 %v10654_v2 }
  0xfe   : > { %8960 = vmatpush3.bf16.msra.mxu1 %v12424_v42  ;;  %8871 = vmatprep.subr.bf16.mxu0 %v9940_v3 }
  0xff   : > { %8961 = vmatprep.subr.bf16.mxu1 %v9940_v3 }
 0x101   : > { %8873 = vmatpush3.bf16.msra.mxu0 %v10674_v60 }
 0x102   : > { %8963 = vmatpush3.bf16.msra.mxu1 %v10678_v1  ;;  %8874 = vmatprep.subr.bf16.mxu0 %v9940_v3 }
 0x103   : > { %8964 = vmatprep.subr.bf16.mxu1 %v9940_v3 }
 0x105   : > { %8876 = vmatpush3.bf16.msra.mxu0 %v10694_v21 }
 0x106   : > { %8966 = vmatpush3.bf16.msra.mxu1 %v10698_v47  ;;  %8967 = vmatprep.subr.bf16.mxu0 %v9940_v3 }
 0x107   : > { %9057 = vmatprep.subr.bf16.mxu1 %v9940_v3 }
 0x108   : > { %7257 = vmatmul.mubr.msk.f32.vlgmr.msra.gmra.mrb[2].mxu0 %vm412_vm1, %v10866_v59 }
 0x109   : > { %7392 = vmatmul.mubr.msk.f32.vlgmr.msra.gmra.mrb[2].mxu1 %vm412_vm1, %v10866_v59  ;;  %8969 = vmatpush3.bf16.msra.mxu0 %v10063_v4 }
 0x10a   : > { %9059 = vmatpush3.bf16.msra.mxu1 %v10074_v8  ;;  %8970 = vmatprep.subr.bf16.mxu0 %v9940_v3 }
 0x10b   : > { %9060 = vmatprep.subr.bf16.mxu1 %v9940_v3  ;;  %7418 = vmatprep.mubr.msk.f32.mxu0 %vm9941_vm0, %v12419_v38 }
 0x10c   : > { %7553 = vmatprep.mubr.msk.f32.mxu1 %vm9941_vm0, %v12419_v38 }
 0x10d   : > { %8972 = vmatpush3.bf16.msra.mxu0 %v10087_v12 }
 0x10e   : > { %9062 = vmatpush3.bf16.msra.mxu1 %v10091_v13  ;;  %8973 = vmatprep.subr.bf16.mxu0 %v9940_v3 }
 0x10f   : > { %9063 = vmatprep.subr.bf16.mxu1 %v9940_v3 }
 0x111   : > { %8975 = vmatpush3.bf16.msra.mxu0 %v10107_v18 }
 0x112   : > { %9065 = vmatpush3.bf16.msra.mxu1 %v10111_v19  ;;  %8976 = vmatprep.subr.bf16.mxu0 %v9940_v3 }
 0x113   : > { %9066 = vmatprep.subr.bf16.mxu1 %v9940_v3 }
 0x115   : > { %8978 = vmatpush3.bf16.msra.mxu0 %v10128_v24 }
 0x116   : > { %9068 = vmatpush3.bf16.msra.mxu1 %v10132_v25  ;;  %8979 = vmatprep.subr.bf16.mxu0 %v9940_v3 }
 0x117   : > { %9069 = vmatprep.subr.bf16.mxu1 %v9940_v3 }
 0x119   : > { %8981 = vmatpush3.bf16.msra.mxu0 %v10149_v30 }
 0x11a   : > { %9071 = vmatpush3.bf16.msra.mxu1 %v10153_v31  ;;  %8982 = vmatprep.subr.bf16.mxu0 %v9940_v3 }
 0x11b   : > { %9072 = vmatprep.subr.bf16.mxu1 %v9940_v3 }
 0x11d   : > { %8984 = vmatpush3.bf16.msra.mxu0 %v10169_v36 }
 0x11e   : > { %9074 = vmatpush3.bf16.msra.mxu1 %v10173_v37  ;;  %8985 = vmatprep.subr.bf16.mxu0 %v9940_v3 }
 0x11f   : > { %9075 = vmatprep.subr.bf16.mxu1 %v9940_v3 }
 0x120   : > { %7419 = vmatmul.mubr.msk.f32.vlgmr.msra.gmra.mrb[4].mxu0 %vm412_vm1, %v10584_v17 }
 0x121   : > { %8987 = vmatpush3.bf16.msra.mxu0 %v10197_v43  ;;  %7554 = vmatmul.mubr.msk.f32.vlgmr.msra.gmra.mrb[4].mxu1 %vm412_vm1, %v10584_v17 }
 0x122   : > { %9077 = vmatpush3.bf16.msra.mxu1 %v10201_v44  ;;  %8988 = vmatprep.subr.bf16.mxu0 %v9940_v3 }
 0x123   : > { %9078 = vmatprep.subr.bf16.mxu1 %v9940_v3  ;;  %7445 = vmatprep.mubr.msk.f32.mxu0 %vm9941_vm0, %v12419_v38 }
 0x124   : > { %7580 = vmatprep.mubr.msk.f32.mxu1 %vm9941_vm0, %v12419_v38 }
 0x125   : > { %8990 = vmatpush3.bf16.msra.mxu0 %v10221_v49 }
 0x126   : > { %9080 = vmatpush3.bf16.msra.mxu1 %v10225_v50  ;;  %8991 = vmatprep.subr.bf16.mxu0 %v9940_v3 }
 0x127   : > { %9081 = vmatprep.subr.bf16.mxu1 %v9940_v3 }
 0x129   : > { %8993 = vmatpush3.bf16.msra.mxu0 %v10245_v55 }
 0x12a   : > { %9083 = vmatpush3.bf16.msra.mxu1 %v10249_v56  ;;  %8994 = vmatprep.subr.bf16.mxu0 %v9940_v3 }
 0x12b   : > { %9084 = vmatprep.subr.bf16.mxu1 %v9940_v3 }
 0x12d   : > { %8996 = vmatpush3.bf16.msra.mxu0 %v10265_v61 }
 0x12e   : > { %9086 = vmatpush3.bf16.msra.mxu1 %v10269_v62  ;;  %8997 = vmatprep.subr.bf16.mxu0 %v9940_v3 }
 0x12f   : > { %9087 = vmatprep.subr.bf16.mxu1 %v9940_v3 }
 0x131   : > { %8999 = vmatpush3.bf16.msra.mxu0 %v10285_v5 }
 0x132   : > { %9089 = vmatpush3.bf16.msra.mxu1 %v10289_v6  ;;  %9000 = vmatprep.subr.bf16.mxu0 %v9940_v3 }
 0x133   : > { %9090 = vmatprep.subr.bf16.mxu1 %v9940_v3 }
 0x135   : > { %9002 = vmatpush3.bf16.msra.mxu0 %v10305_v15 }
 0x136   : > { %9092 = vmatpush3.bf16.msra.mxu1 %v10309_v16  ;;  %9003 = vmatprep.subr.bf16.mxu0 %v9940_v3 }
 0x137   : > { %9093 = vmatprep.subr.bf16.mxu1 %v9940_v3 }
 0x138   : > { %7446 = vmatmul.mubr.msk.f32.vlgmr.msra.gmra.mrb[4].mxu0 %vm412_vm1, %v10453_v23 }
 0x139   : > { %9005 = vmatpush3.bf16.msra.mxu0 %v10326_v26  ;;  %7581 = vmatmul.mubr.msk.f32.vlgmr.msra.gmra.mrb[4].mxu1 %vm412_vm1, %v10453_v23 }
 0x13a   : > { %9095 = vmatpush3.bf16.msra.mxu1 %v10330_v27  ;;  %9006 = vmatprep.subr.bf16.mxu0 %v9940_v3 }
 0x13b   : > { %9096 = vmatprep.subr.bf16.mxu1 %v9940_v3  ;;  %7472 = vmatprep.mubr.msk.f32.mxu0 %vm9941_vm0, %v12419_v38 }
 0x13c   : > { %7607 = vmatprep.mubr.msk.f32.mxu1 %vm9941_vm0, %v12419_v38 }
 0x13d   : > { %9008 = vmatpush3.bf16.msra.mxu0 %v10348_v34 }
 0x13e   : > { %9098 = vmatpush3.bf16.msra.mxu1 %v10352_v35  ;;  %9009 = vmatprep.subr.bf16.mxu0 %v9940_v3 }
 0x13f   : > { %9099 = vmatprep.subr.bf16.mxu1 %v9940_v3 }
 0x141   : > { %9011 = vmatpush3.bf16.msra.mxu0 %v10372_v45 }
 0x142   : > { %9101 = vmatpush3.bf16.msra.mxu1 %v10376_v46  ;;  %9012 = vmatprep.subr.bf16.mxu0 %v9940_v3 }
 0x143   : > { %9102 = vmatprep.subr.bf16.mxu1 %v9940_v3 }
 0x145   : > { %9014 = vmatpush3.bf16.msra.mxu0 %v10392_v53 }
 0x146   : > { %9104 = vmatpush3.bf16.msra.mxu1 %v10396_v54  ;;  %9015 = vmatprep.subr.bf16.mxu0 %v9940_v3 }
 0x147   : > { %9105 = vmatprep.subr.bf16.mxu1 %v9940_v3 }
 0x149   : > { %9017 = vmatpush3.bf16.msra.mxu0 %v10412_v63 }
 0x14a   : > { %9107 = vmatpush3.bf16.msra.mxu1 %v10416_v0  ;;  %9018 = vmatprep.subr.bf16.mxu0 %v9940_v3 }
 0x14b   : > { %9108 = vmatprep.subr.bf16.mxu1 %v9940_v3 }
 0x14d   : > { %9020 = vmatpush3.bf16.msra.mxu0 %v10432_v10 }
 0x14e   : > { %9110 = vmatpush3.bf16.msra.mxu1 %v10436_v14  ;;  %9021 = vmatprep.subr.bf16.mxu0 %v9940_v3 }
 0x14f   : > { %9111 = vmatprep.subr.bf16.mxu1 %v9940_v3 }
 0x150   : > { %7473 = vmatmul.mubr.msk.f32.vlgmr.msra.gmra.mrb[4].mxu0 %vm412_vm1, %v10703_v22 }
 0x151   : > { %9023 = vmatpush3.bf16.msra.mxu0 %v10455_v28  ;;  %7608 = vmatmul.mubr.msk.f32.vlgmr.msra.gmra.mrb[4].mxu1 %vm412_vm1, %v10703_v22 }
 0x152   : > { %9113 = vmatpush3.bf16.msra.mxu1 %v10459_v29  ;;  %9024 = vmatprep.subr.bf16.mxu0 %v9940_v3 }
 0x153   : > { %9114 = vmatprep.subr.bf16.mxu1 %v9940_v3  ;;  %7499 = vmatprep.mubr.msk.f32.mxu0 %vm9941_vm0, %v12419_v38 }
 0x154   : > { %7634 = vmatprep.mubr.msk.f32.mxu1 %vm9941_vm0, %v12419_v38 }
 0x155   : > { %9026 = vmatpush3.bf16.msra.mxu0 %v10479_v40 }
 0x156   : > { %9116 = vmatpush3.bf16.msra.mxu1 %v10483_v41  ;;  %9027 = vmatprep.subr.bf16.mxu0 %v9940_v3 }
 0x157   : > { %9117 = vmatprep.subr.bf16.mxu1 %v9940_v3 }
 0x159   : > { %9029 = vmatpush3.bf16.msra.mxu0 %v10503_v57 }
 0x15a   : > { %9119 = vmatpush3.bf16.msra.mxu1 %v10507_v58  ;;  %9030 = vmatprep.subr.bf16.mxu0 %v9940_v3 }
 0x15b   : > { %9120 = vmatprep.subr.bf16.mxu1 %v9940_v3 }
 0x15d   : > { %9032 = vmatpush3.bf16.msra.mxu0 %v10523_v7 }
 0x15e   : > { %9122 = vmatpush3.bf16.msra.mxu1 %v10527_v9  ;;  %9033 = vmatprep.subr.bf16.mxu0 %v9940_v3  ;;  %v11035_v9 = vld [vmem:[%s10178_s13 + $0x11] sm:$0x7f] }
 0x15f   : > { %9123 = vmatprep.subr.bf16.mxu1 %v9940_v3 }
 0x161   : > { %9035 = vmatpush3.bf16.msra.mxu0 %v10543_v32 }
 0x162   : > { %9125 = vmatpush3.bf16.msra.mxu1 %v10547_v33  ;;  %9036 = vmatprep.subr.bf16.mxu0 %v9940_v3 }
 0x163   : > { %v10994_v23 = vpop.f32.mrb[0].mxu0  ;;  %9126 = vmatprep.subr.bf16.mxu1 %v9940_v3 }
 0x164   : > { %v10997_v58 = vpop.f32.mrb[0].mxu1  ;;  %v6988_v57 = vpop.f32.mrb[1].mxu0 }
 0x165   : > { %v7123_v7 = vpop.f32.mrb[1].mxu1  ;;  %9038 = vmatpush3.bf16.msra.mxu0 %v10563_v51  ;;  %v12425_v57 = vld [vmem:[#allocation11_spill] sm:$0xff] }
 0x166   : > { %9128 = vmatpush3.bf16.msra.mxu1 %v10567_v52  ;;  %9039 = vmatprep.subr.bf16.mxu0 %v9940_v3  ;;  %v12426_v7 = vld [vmem:[#allocation14_spill] sm:$0xff] }
 0x167   : > { %9129 = vmatprep.subr.bf16.mxu1 %v9940_v3 }
 0x168   : > { %7500 = vmatmul.mubr.msk.f32.vlgmr.msra.gmra.mrb[4].mxu0 %vm412_vm1, %v10866_v59 }
 0x169   : > { %9041 = vmatpush3.bf16.msra.mxu0 %v10586_v20  ;;  %7635 = vmatmul.mubr.msk.f32.vlgmr.msra.gmra.mrb[4].mxu1 %vm412_vm1, %v10866_v59 }
 0x16a   : > { %9131 = vmatpush3.bf16.msra.mxu1 %v12425_v57  ;;  %9042 = vmatprep.subr.bf16.mxu0 %v9940_v3 }
 0x16b   : > { %9132 = vmatprep.subr.bf16.mxu1 %v9940_v3  ;;  %7526 = vmatprep.mubr.msk.f32.mxu0 %vm9941_vm0, %v12419_v38 }
 0x16c   : > { %7661 = vmatprep.mubr.msk.f32.mxu1 %vm9941_vm0, %v12419_v38 }
 0x16d   : > { %9044 = vmatpush3.bf16.msra.mxu0 %v10610_v48 }
 0x16e   : > { %9134 = vmatpush3.bf16.msra.mxu1 %v12421_v39  ;;  %9045 = vmatprep.subr.bf16.mxu0 %v9940_v3 }
 0x16f   : > { %9135 = vmatprep.subr.bf16.mxu1 %v9940_v3 }
 0x171   : > { %9047 = vmatpush3.bf16.msra.mxu0 %v12422_v11 }
 0x172   : > { %9137 = vmatpush3.bf16.msra.mxu1 %v12426_v7  ;;  %9048 = vmatprep.subr.bf16.mxu0 %v9940_v3 }
 0x173   : > { %9138 = vmatprep.subr.bf16.mxu1 %v9940_v3 }
 0x175   : > { %9050 = vmatpush3.bf16.msra.mxu0 %v10654_v2 }
 0x176   : > { %9140 = vmatpush3.bf16.msra.mxu1 %v12424_v42  ;;  %9051 = vmatprep.subr.bf16.mxu0 %v9940_v3 }
 0x177   : > { %9141 = vmatprep.subr.bf16.mxu1 %v9940_v3 }
 0x179   : > { %9053 = vmatpush3.bf16.msra.mxu0 %v10674_v60 }
 0x17a   : > { %9143 = vmatpush3.bf16.msra.mxu1 %v10678_v1  ;;  %9054 = vmatprep.subr.bf16.mxu0 %v9940_v3 }
 0x17b   : > { %9144 = vmatprep.subr.bf16.mxu1 %v9940_v3 }
 0x17d   : > { %9056 = vmatpush3.bf16.msra.mxu0 %v10694_v21 }
 0x17e   : > { %9146 = vmatpush3.bf16.msra.mxu1 %v10698_v47  ;;  %9147 = vmatprep.subr.bf16.mxu0 %v9940_v3 }
 0x17f   : > { %9237 = vmatprep.subr.bf16.mxu1 %v9940_v3 }
 0x180   : > { %7527 = vmatmul.mubr.msk.f32.vlgmr.msra.gmra.mrb[4].mxu0 %vm412_vm1, %v11035_v9 }
 0x181   : > { %7662 = vmatmul.mubr.msk.f32.vlgmr.msra.gmra.mrb[4].mxu1 %vm412_vm1, %v11035_v9  ;;  %9149 = vmatpush3.bf16.msra.mxu0 %v10063_v4  ;;  %v12427_v4 = vld [vmem:[#allocation7_spill] sm:$0xff] }
 0x182   : > { %9239 = vmatpush3.bf16.msra.mxu1 %v10074_v8  ;;  %9150 = vmatprep.subr.bf16.mxu0 %v9940_v3  ;;  %v12428_v8 = vld [vmem:[#allocation8_spill] sm:$0xff] }
 0x183   : > { %9240 = vmatprep.subr.bf16.mxu1 %v9940_v3  ;;  %7688 = vmatprep.mubr.msk.f32.mxu0 %vm9941_vm0, %v12419_v38 }
 0x184   : > { %7823 = vmatprep.mubr.msk.f32.mxu1 %vm9941_vm0, %v12419_v38 }
 0x185   : > { %9152 = vmatpush3.bf16.msra.mxu0 %v10087_v12  ;;  %v12429_v12 = vld [vmem:[#allocation9_spill] sm:$0xff] }
 0x186   : > { %9242 = vmatpush3.bf16.msra.mxu1 %v10091_v13  ;;  %9153 = vmatprep.subr.bf16.mxu0 %v9940_v3  ;;  %v12430_v13 = vld [vmem:[#allocation10_spill] sm:$0xff] }
 0x187   : > { %9243 = vmatprep.subr.bf16.mxu1 %v9940_v3 }
 0x189   : > { %9155 = vmatpush3.bf16.msra.mxu0 %v10107_v18 }
 0x18a   : > { %9245 = vmatpush3.bf16.msra.mxu1 %v10111_v19  ;;  %9156 = vmatprep.subr.bf16.mxu0 %v9940_v3  ;;  %v12431_v19 = vmax.f32 %v10994_v23, %v10997_v58  ;;  %v5893_v58 = vld [vmem:[%s12375_s3 + $0x150] sm:$0xff]  ;;  %v5796_v23 = vld [vmem:[%s12374_s2] ss:$0 sm:$0xff] }
 0x18b   : > { %9246 = vmatprep.subr.bf16.mxu1 %v9940_v3 }
 0x18d   : > { %9158 = vmatpush3.bf16.msra.mxu0 %v10128_v24 }
 0x18e   : > { %9248 = vmatpush3.bf16.msra.mxu1 %v10132_v25  ;;  %9159 = vmatprep.subr.bf16.mxu0 %v9940_v3 }
 0x18f   : > { %9249 = vmatprep.subr.bf16.mxu1 %v9940_v3 }
 0x191   : > { %9161 = vmatpush3.bf16.msra.mxu0 %v10149_v30 }
 0x192   : > { %9251 = vmatpush3.bf16.msra.mxu1 %v10153_v31  ;;  %9162 = vmatprep.subr.bf16.mxu0 %v9940_v3 }
 0x193   : > { %9252 = vmatprep.subr.bf16.mxu1 %v9940_v3 }
 0x195   : > { %9164 = vmatpush3.bf16.msra.mxu0 %v10169_v36 }
 0x196   : > { %9254 = vmatpush3.bf16.msra.mxu1 %v10173_v37  ;;  %9165 = vmatprep.subr.bf16.mxu0 %v9940_v3  ;;  %v5819_v37 = vld [vmem:[%s12375_s3 + $0xb0] sm:$0xff] }
 0x197   : > { %9255 = vmatprep.subr.bf16.mxu1 %v9940_v3 }
 0x198   : > { %7689 = vmatmul.mubr.msk.f32.vlgmr.msra.gmra.mrb[6].mxu0 %vm412_vm1, %v10703_v22 }
 0x199   : > { %9167 = vmatpush3.bf16.msra.mxu0 %v10197_v43  ;;  %7824 = vmatmul.mubr.msk.f32.vlgmr.msra.gmra.mrb[6].mxu1 %vm412_vm1, %v10703_v22  ;;  %v5820_v43 = vld [vmem:[%s12375_s3 + $0xb8] sm:$0xff] }
 0x19a   : > { %9257 = vmatpush3.bf16.msra.mxu1 %v10201_v44  ;;  %9168 = vmatprep.subr.bf16.mxu0 %v9940_v3  ;;  %v5884_v44 = vld [vmem:[%s12375_s3 + $0x108] sm:$0xff] }
 0x19b   : > { %9258 = vmatprep.subr.bf16.mxu1 %v9940_v3  ;;  %7715 = vmatprep.mubr.msk.f32.mxu0 %vm9941_vm0, %v12419_v38 }
 0x19c   : > { %7850 = vmatprep.mubr.msk.f32.mxu1 %vm9941_vm0, %v12419_v38 }
 0x19d   : > { %9170 = vmatpush3.bf16.msra.mxu0 %v10221_v49  ;;  %v5885_v49 = vld [vmem:[%s12375_s3 + $0x110] sm:$0xff] }
 0x19e   : > { %9260 = vmatpush3.bf16.msra.mxu1 %v10225_v50  ;;  %9171 = vmatprep.subr.bf16.mxu0 %v9940_v3  ;;  %v5812_v50 = vld [vmem:[%s10178_s13 + $0x19] sm:$0x7f]  ;;  %s5603_s13 = sshll.u32 %s378_s22, 4  ;;  %s12332_s13 = int_to_ptr.vmem [resolvable:$true] %s5603_s13 }
 0x19f   : > { %9261 = vmatprep.subr.bf16.mxu1 %v9940_v3  ;;  %s9876_s19 = scalar_lea.vmem %s12332_s13, 16  ;;  %p9883_p0 = scmp.lt.s32.totalorder %s12332_s13, %s9881_s26 }
 0x1a0   : > { %p9877_p11 = scmp.ne.s32.totalorder %s12332_s13, %s9876_s19  ;;  %p9884_p1 = scmp.lt.s32.totalorder %s9882_s15, %s9876_s19 }
 0x1a1   : > { %9173 = vmatpush3.bf16.msra.mxu0 %v10245_v55  ;;  %v11219_v55 = vpack.c.bf16 %v5820_v43, %v5819_v37  ;;  %v3394_v37 = vld [vmem:[%s12375_s3 + $0x20] sm:$0xff]  ;;  %v3395_v43 = vld [vmem:[%s12375_s3 + $0x28] sm:$0xff] }
 0x1a2   : > { %9263 = vmatpush3.bf16.msra.mxu1 %v10249_v56  ;;  %9174 = vmatprep.subr.bf16.mxu0 %v9940_v3  ;;  %v11223_v56 = vpack.c.bf16 %v5885_v49, %v5884_v44  ;;  %v5877_v44 = vld [vmem:[%s12375_s3 + $0x78] sm:$0xff]  ;;  %v5878_v49 = vld [vmem:[%s12375_s3 + $0x80] sm:$0xff]  ;;  %p9878_p12 = pnand %p9877_p11, %p10042_p5  ;;  %p9885_p2 = por %p9884_p1, %p9883_p0 }
 0x1a3   : > { %9264 = vmatprep.subr.bf16.mxu1 %v9940_v3 }
 0x1a4   : > { %p9879_p13 = pneg %p9878_p12 }
 0x1a5   : > { %9176 = vmatpush3.bf16.msra.mxu0 %v10265_v61  ;;  %v5821_v61 = vld [vmem:[%s12375_s3 + $0xc0] sm:$0xff] }
 0x1a6   : > { %9266 = vmatpush3.bf16.msra.mxu1 %v10269_v62  ;;  %9177 = vmatprep.subr.bf16.mxu0 %v9940_v3  ;;  %v5822_v62 = vld [vmem:[%s12375_s3 + $0xc8] sm:$0xff]  ;;  %p9886_p3 = pnand %p9885_p2, %p9879_p13 }
 0x1a7   : > { %9267 = vmatprep.subr.bf16.mxu1 %v9940_v3 }
 0x1a9   : > { %9179 = vmatpush3.bf16.msra.mxu0 %v10285_v5  ;;  %v5886_v5 = vld [vmem:[%s12375_s3 + $0x118] sm:$0xff] }
 0x1aa   : > { %9269 = vmatpush3.bf16.msra.mxu1 %v10289_v6  ;;  %9180 = vmatprep.subr.bf16.mxu0 %v9940_v3  ;;  %v5887_v6 = vld [vmem:[%s12375_s3 + $0x120] sm:$0xff] }
 0x1ab   : > { %9270 = vmatprep.subr.bf16.mxu1 %v9940_v3 }
 0x1ad   : > { %9182 = vmatpush3.bf16.msra.mxu0 %v10305_v15  ;;  %v11241_v15 = vpack.c.bf16 %v5822_v62, %v5821_v61  ;;  %v11397_v61 = vpack.c.bf16 %v5878_v49, %v5877_v44  ;;  %v3396_v62 = vld [vmem:[%s12375_s3 + $0x30] sm:$0xff]  ;;  %v5843_v44 = vld [vmem:[%s12375_s3 + $0x1a8] sm:$0xff]  ;;  %v5907_v49 = vld [vmem:[%s12375_s3 + $0x1f8] sm:$0xff] }
 0x1ae   : > { %9272 = vmatpush3.bf16.msra.mxu1 %v10309_v16  ;;  %9183 = vmatprep.subr.bf16.mxu0 %v9940_v3  ;;  %v11245_v16 = vpack.c.bf16 %v5887_v6, %v5886_v5  ;;  %v3397_v5 = vld [vmem:[%s12375_s3 + $0x38] sm:$0xff]  ;;  %v5879_v6 = vld [vmem:[%s12375_s3 + $0x88] sm:$0xff] }
 0x1af   : > { %9273 = vmatprep.subr.bf16.mxu1 %v9940_v3 }
 0x1b0   : > { %7716 = vmatmul.mubr.msk.f32.vlgmr.msra.gmra.mrb[6].mxu0 %vm412_vm1, %v10584_v17 }
 0x1b1   : > { %9185 = vmatpush3.bf16.msra.mxu0 %v10326_v26  ;;  %7851 = vmatmul.mubr.msk.f32.vlgmr.msra.gmra.mrb[6].mxu1 %vm412_vm1, %v10584_v17  ;;  %v5823_v26 = vld [vmem:[%s12375_s3 + $0xd0] sm:$0xff] }
 0x1b2   : > { %9275 = vmatpush3.bf16.msra.mxu1 %v10330_v27  ;;  %9186 = vmatprep.subr.bf16.mxu0 %v9940_v3  ;;  %v5824_v27 = vld [vmem:[%s12375_s3 + $0xd8] sm:$0xff] }
 0x1b3   : > { %9276 = vmatprep.subr.bf16.mxu1 %v9940_v3  ;;  %7742 = vmatprep.mubr.msk.f32.mxu0 %vm9941_vm0, %v12419_v38 }
 0x1b4   : > { %7877 = vmatprep.mubr.msk.f32.mxu1 %vm9941_vm0, %v12419_v38 }
 0x1b5   : > { %9188 = vmatpush3.bf16.msra.mxu0 %v10348_v34  ;;  %v5888_v34 = vld [vmem:[%s12375_s3 + $0x128] sm:$0xff] }
 0x1b6   : > { %9278 = vmatpush3.bf16.msra.mxu1 %v10352_v35  ;;  %9189 = vmatprep.subr.bf16.mxu0 %v9940_v3  ;;  %v5889_v35 = vld [vmem:[%s12375_s3 + $0x130] sm:$0xff] }
 0x1b7   : > { %9279 = vmatprep.subr.bf16.mxu1 %v9940_v3 }
 0x1b9   : > { %9191 = vmatpush3.bf16.msra.mxu0 %v10372_v45  ;;  %v11265_v45 = vpack.c.bf16 %v5824_v27, %v5823_v26  ;;  %v5880_v26 = vld [vmem:[%s12375_s3 + $0x90] sm:$0xff]  ;;  %v11415_v27 = vpack.c.bf16 %v3397_v5, %v3396_v62  ;;  %v5908_v62 = vld [vmem:[%s12375_s3 + $0x200] sm:$0xff] }
 0x1ba   : > { %9281 = vmatpush3.bf16.msra.mxu1 %v10376_v46  ;;  %9192 = vmatprep.subr.bf16.mxu0 %v9940_v3  ;;  %v11269_v46 = vpack.c.bf16 %v5889_v35, %v5888_v34  ;;  %v11417_v34 = vpack.c.bf16 %v5880_v26, %v5879_v6  ;;  %v3398_v35 = vld [vmem:[%s12375_s3 + $0x40] sm:$0xff]  ;;  %v11566_v6 = vpack.c.bf16 %v5908_v62, %v5907_v49  ;;  %v5847_v26 = vld [vmem:[%s12375_s3 + $0x210] sm:$0xff] }
 0x1bb   : > { %9282 = vmatprep.subr.bf16.mxu1 %v9940_v3  ;;  %v5919_v49 = vld [vmem:[%s12375_s3 + $0x2a0] sm:$0xff] }
 0x1bd   : > { %9194 = vmatpush3.bf16.msra.mxu0 %v10392_v53  ;;  %v5825_v53 = vld [vmem:[%s12375_s3 + $0xe0] sm:$0xff] }
 0x1be   : > { %9284 = vmatpush3.bf16.msra.mxu1 %v10396_v54  ;;  %9195 = vmatprep.subr.bf16.mxu0 %v9940_v3  ;;  %v5826_v54 = vld [vmem:[%s12375_s3 + $0xe8] sm:$0xff] }
 0x1bf   : > { %9285 = vmatprep.subr.bf16.mxu1 %v9940_v3 }
 0x1c1   : > { %9197 = vmatpush3.bf16.msra.mxu0 %v10412_v63  ;;  %v5890_v63 = vld [vmem:[%s12375_s3 + $0x138] sm:$0xff] }
 0x1c2   : > { %9287 = vmatpush3.bf16.msra.mxu1 %v10416_v0  ;;  %9198 = vmatprep.subr.bf16.mxu0 %v9940_v3  ;;  %v5891_v0 = vld [vmem:[%s12375_s3 + $0x140] sm:$0xff] }
 0x1c3   : > { %9288 = vmatprep.subr.bf16.mxu1 %v9940_v3 }
 0x1c5   : > { %9200 = vmatpush3.bf16.msra.mxu0 %v10432_v10  ;;  %v11285_v10 = vpack.c.bf16 %v5826_v54, %v5825_v53  ;;  %v3399_v53 = vld [vmem:[%s12375_s3 + $0x48] sm:$0xff]  ;;  %v5881_v54 = vld [vmem:[%s12375_s3 + $0x98] sm:$0xff] }
 0x1c6   : > { %9290 = vmatpush3.bf16.msra.mxu1 %v10436_v14  ;;  %9201 = vmatprep.subr.bf16.mxu0 %v9940_v3  ;;  %v11289_v14 = vpack.c.bf16 %v5891_v0, %v5890_v63  ;;  %v5882_v63 = vld [vmem:[%s12375_s3 + $0xa0] sm:$0xff]  ;;  %v11435_v0 = vpack.c.bf16 %v3399_v53, %v3398_v35  ;;  %v5848_v35 = vld [vmem:[%s12375_s3 + $0x218] sm:$0xff]  ;;  %v5912_v53 = vld [vmem:[%s12375_s3 + $0x268] sm:$0xff] }
 0x1c7   : > { %9291 = vmatprep.subr.bf16.mxu1 %v9940_v3 }
 0x1c8   : > { %7743 = vmatmul.mubr.msk.f32.vlgmr.msra.gmra.mrb[6].mxu0 %vm412_vm1, %v10866_v59 }
 0x1c9   : > { %9203 = vmatpush3.bf16.msra.mxu0 %v10455_v28  ;;  %7878 = vmatmul.mubr.msk.f32.vlgmr.msra.gmra.mrb[6].mxu1 %vm412_vm1, %v10866_v59  ;;  %v5827_v28 = vld [vmem:[%s12375_s3 + $0xf0] sm:$0xff]  ;;  %v5874_v59 = vld [vmem:[%s12375_s3 + $0x60] sm:$0xff] }
 0x1ca   : > { %9293 = vmatpush3.bf16.msra.mxu1 %v10459_v29  ;;  %9204 = vmatprep.subr.bf16.mxu0 %v9940_v3  ;;  %v5828_v29 = vld [vmem:[%s12375_s3 + $0xf8] sm:$0xff] }
 0x1cb   : > { %9294 = vmatprep.subr.bf16.mxu1 %v9940_v3  ;;  %7769 = vmatprep.mubr.msk.f32.mxu0 %vm9941_vm0, %v12419_v38 }
 0x1cc   : > { %7904 = vmatprep.mubr.msk.f32.mxu1 %vm9941_vm0, %v12419_v38 }
 0x1cd   : > { %9206 = vmatpush3.bf16.msra.mxu0 %v10479_v40  ;;  %v5892_v40 = vld [vmem:[%s12375_s3 + $0x148] sm:$0xff] }
 0x1ce   : > { %9296 = vmatpush3.bf16.msra.mxu1 %v10483_v41  ;;  %9207 = vmatprep.subr.bf16.mxu0 %v9940_v3  ;;  %v11305_v41 = vpack.c.bf16 %v5828_v29, %v5827_v28  ;;  %v11437_v28 = vpack.c.bf16 %v5882_v63, %v5881_v54  ;;  %v5913_v54 = vld [vmem:[%s12375_s3 + $0x270] sm:$0xff] }
 0x1cf   : > { %9297 = vmatprep.subr.bf16.mxu1 %v9940_v3  ;;  %v11589_v63 = vld [vmem:[%s12375_s3 + $0x1b0] sm:$0xf] }
 0x1d1   : > { %9209 = vmatpush3.bf16.msra.mxu0 %v12427_v4 }
 0x1d2   : > { %9299 = vmatpush3.bf16.msra.mxu1 %v12428_v8  ;;  %9210 = vmatprep.subr.bf16.mxu0 %v9940_v3  ;;  %v3392_v8 = vld [vmem:[%s12375_s3 + $0x10] sm:$0xff] }
 0x1d3   : > { %9300 = vmatprep.subr.bf16.mxu1 %v9940_v3 }
 0x1d5   : > { %9212 = vmatpush3.bf16.msra.mxu0 %v12429_v12 }
 0x1d6   : > { %9302 = vmatpush3.bf16.msra.mxu1 %v12430_v13  ;;  %9213 = vmatprep.subr.bf16.mxu0 %v9940_v3  ;;  %v3393_v13 = vld [vmem:[%s12375_s3 + $0x18] sm:$0xff] }
 0x1d7   : > { %9303 = vmatprep.subr.bf16.mxu1 %v9940_v3 }
 0x1d9   : > { %9215 = vmatpush3.bf16.msra.mxu0 %v10543_v32  ;;  %v11319_v32 = vld [vmem:[%s12375_s3 + $0x100] sm:$0xf] }
 0x1da   : > { %9305 = vmatpush3.bf16.msra.mxu1 %v10547_v33  ;;  %9216 = vmatprep.subr.bf16.mxu0 %v9940_v3  ;;  %v11324_v33 = vld [vmem:[%s12375_s3 + $0x158] sm:$0xf] }
 0x1db   : > { %v1596_v18 = vpop.f32.mrb[2].mxu0  ;;  %9306 = vmatprep.subr.bf16.mxu1 %v9940_v3 }
 0x1dc   : > { %v11167_v24 = vmax.f32 %v12431_v19, %v1596_v18  ;;  %v11169_v25 = vpop.f32.mrb[2].mxu1  ;;  %v7258_v30 = vpop.f32.mrb[3].mxu0  ;;  %v5875_v18 = vld [vmem:[%s12375_s3 + $0x68] sm:$0xff]  ;;  %v5876_v19 = vld [vmem:[%s12375_s3 + $0x70] sm:$0xff] }
 0x1dd   : > { %v7393_v31 = vpop.f32.mrb[3].mxu1  ;;  %9218 = vmatpush3.bf16.msra.mxu0 %v10563_v51  ;;  %v11371_v30 = vpack.c.bf16 %v3393_v13, %v3392_v8  ;;  %v5841_v8 = vld [vmem:[%s12375_s3 + $0x198] sm:$0xff]  ;;  %v5905_v13 = vld [vmem:[%s12375_s3 + $0x1e8] sm:$0xff] }
 0x1de   : > { %v1955_v36 = vmax.f32 %v11167_v24, %v11169_v25  ;;  %9308 = vmatpush3.bf16.msra.mxu1 %v10567_v52  ;;  %9219 = vmatprep.subr.bf16.mxu0 %v9940_v3  ;;  %v11373_v31 = vpack.c.bf16 %v5876_v19, %v5875_v18  ;;  %v5900_v24 = vld [vmem:[%s12375_s3 + $0x1c0] sm:$0xff]  ;;  %v11463_v25 = vld [vmem:[%s12375_s3 + $0x50] sm:$0xf] }
 0x1df   : > { %9309 = vmatprep.subr.bf16.mxu1 %v9940_v3  ;;  %v5906_v18 = vld [vmem:[%s12375_s3 + $0x1f0] sm:$0xff] }
 0x1e0   : > { %7770 = vmatmul.mubr.msk.f32.vlgmr.msra.gmra.mrb[6].mxu0 %vm412_vm1, %v11035_v9  ;;  %v1963_v29 = vadd.f32 %v5796_v23, %v1955_v36  ;;  %v11468_v36 = vld [vmem:[%s12375_s3 + $0xa8] sm:$0xf] }
 0x1e1   : > { %9221 = vmatpush3.bf16.msra.mxu0 %v10586_v20  ;;  %7905 = vmatmul.mubr.msk.f32.vlgmr.msra.gmra.mrb[6].mxu1 %vm412_vm1, %v11035_v9  ;;  %v11310_v9 = vpack.c.bf16 %v5893_v58, %v5892_v40  ;;  %v5834_v40 = vld [vmem:[%s12375_s3 + $0x160] sm:$0xff]  ;;  %v5835_v58 = vld [vmem:[%s12375_s3 + $0x168] sm:$0xff] }
 0x1e2   : > { %9311 = vmatpush3.bf16.msra.mxu1 %v12425_v57  ;;  %9222 = vmatprep.subr.bf16.mxu0 %v9940_v3 }
 0x1e3   : > { %9312 = vmatprep.subr.bf16.mxu1 %v9940_v3  ;;  %7796 = vmatprep.mubr.msk.f32.mxu0 %vm9941_vm0, %v12419_v38 }
 0x1e4   : > { %7931 = vmatprep.mubr.msk.f32.mxu1 %vm9941_vm0, %v12419_v38 }
 0x1e5   : > { %9224 = vmatpush3.bf16.msra.mxu0 %v10610_v48 }
 0x1e6   : > { %9314 = vmatpush3.bf16.msra.mxu1 %v12421_v39  ;;  %9225 = vmatprep.subr.bf16.mxu0 %v9940_v3  ;;  %v3391_v39 = vld [vmem:[%s12375_s3 + $0x8] sm:$0xff] }
 0x1e7   : > { %9315 = vmatprep.subr.bf16.mxu1 %v9940_v3 }
 0x1e9   : > { %9227 = vmatpush3.bf16.msra.mxu0 %v12422_v11  ;;  %v5873_v11 = vld [vmem:[%s12375_s3 + $0x58] sm:$0xff] }
 0x1ea   : > { %9317 = vmatpush3.bf16.msra.mxu1 %v12426_v7  ;;  %9228 = vmatprep.subr.bf16.mxu0 %v9940_v3  ;;  %v11349_v4 = vpack.c.bf16 %v5874_v59, %v5873_v11  ;;  %v5904_v11 = vld [vmem:[%s12375_s3 + $0x1e0] sm:$0xff] }
 0x1eb   : > { %9318 = vmatprep.subr.bf16.mxu1 %v9940_v3 }
 0x1ed   : > { %9230 = vmatpush3.bf16.msra.mxu0 %v10654_v2 }
 0x1ee   : > { %9320 = vmatpush3.bf16.msra.mxu1 %v12424_v42  ;;  %9231 = vmatprep.subr.bf16.mxu0 %v9940_v3 }
 0x1ef   : > { %9321 = vmatprep.subr.bf16.mxu1 %v9940_v3 }
 0x1f1   : > { %9233 = vmatpush3.bf16.msra.mxu0 %v10674_v60 }
 0x1f2   : > { %9323 = vmatpush3.bf16.msra.mxu1 %v10678_v1  ;;  %9234 = vmatprep.subr.bf16.mxu0 %v9940_v3 }
 0x1f3   : > { %9324 = vmatprep.subr.bf16.mxu1 %v9940_v3 }
 0x1f5   : > { %9236 = vmatpush3.bf16.msra.mxu0 %v10694_v21 }
 0x1f6   : > { %9326 = vmatpush3.bf16.msra.mxu1 %v10698_v47  ;;  %9327 = vmatprep.subr.bf16.mxu0 %v9940_v3  ;;  %v3390_v47 = vld [vmem:[%s12375_s3] sm:$0xff] }
 0x1f7   : > { %9402 = vmatprep.subr.bf16.mxu1 %v9940_v3  ;;  %v11347_v7 = vpack.c.bf16 %v3391_v39, %v3390_v47  ;;  %v5838_v47 = vld [vmem:[%s12375_s3 + $0x180] sm:$0xff]  ;;  %v5903_v39 = vld [vmem:[%s12375_s3 + $0x1d8] sm:$0xff] }
 0x1f8   : > { %7797 = vmatmul.mubr.msk.f32.vlgmr.msra.gmra.mrb[6].mxu0 %vm412_vm1, %v5812_v50 }
 0x1f9   : > { %7932 = vmatmul.mubr.msk.f32.vlgmr.msra.gmra.mrb[6].mxu1 %vm412_vm1, %v5812_v50  ;;  %9329 = vmatpush3.bf16.msra.mxu0 %v11219_v55  ;;  %v11395_v50 = vpack.c.bf16 %v3395_v43, %v3394_v37  ;;  %v11546_v37 = vpack.c.bf16 %v5906_v18, %v5905_v13  ;;  %v5842_v43 = vld [vmem:[%s12375_s3 + $0x1a0] sm:$0xff] }
 0x1fa   : > { %9404 = vmatpush3.bf16.msra.mxu1 %v11223_v56  ;;  %9330 = vmatprep.subr.bf16.mxu0 %v9940_v3  ;;  %v11564_v5 = vpack.c.bf16 %v5843_v44, %v5842_v43  ;;  %v5853_v18 = vld [vmem:[%s12375_s3 + $0x240] sm:$0xff]  ;;  %v5854_v43 = vld [vmem:[%s12375_s3 + $0x248] sm:$0xff]  ;;  %v5918_v44 = vld [vmem:[%s12375_s3 + $0x298] sm:$0xff] }
 0x1fb   : > { %9405 = vmatprep.subr.bf16.mxu1 %v9940_v3  ;;  %7956 = vmatprep.mubr.msk.f32.mxu0 %vm9941_vm0, %v12419_v38  ;;  %v11671_v62 = vpack.c.bf16 %v5854_v43, %v5853_v18  ;;  %v11721_v18 = vld [vmem:[%s12375_s3 + $0x2b8] sm:$0xf] }
 0x1fc   : > { %8081 = vmatprep.mubr.msk.f32.mxu1 %vm9941_vm0, %v12419_v38 }
 0x1fd   : > { %9332 = vmatpush3.bf16.msra.mxu0 %v11241_v15 }
 0x1fe   : > { %9407 = vmatpush3.bf16.msra.mxu1 %v11245_v16  ;;  %9333 = vmatprep.subr.bf16.mxu0 %v9940_v3 }
 0x1ff   : > { %9408 = vmatprep.subr.bf16.mxu1 %v9940_v3 }
 0x201   : > { %9335 = vmatpush3.bf16.msra.mxu0 %v11265_v45 }
 0x202   : > { %9410 = vmatpush3.bf16.msra.mxu1 %v11269_v46  ;;  %9336 = vmatprep.subr.bf16.mxu0 %v9940_v3 }
 0x203   : > { %9411 = vmatprep.subr.bf16.mxu1 %v9940_v3 }
 0x205   : > { %9338 = vmatpush3.bf16.msra.mxu0 %v11285_v10 }
 0x206   : > { %9413 = vmatpush3.bf16.msra.mxu1 %v11289_v14  ;;  %9339 = vmatprep.subr.bf16.mxu0 %v9940_v3 }
 0x207   : > { %9414 = vmatprep.subr.bf16.mxu1 %v9940_v3 }
 0x209   : > { %9341 = vmatpush3.bf16.msra.mxu0 %v11305_v41 }
 0x20a   : > { %9416 = vmatpush3.bf16.msra.mxu1 %v11310_v9  ;;  %7954 = vmatprep.subr.mxu0 %v12419_v38 }
 0x20b   : > { %8079 = vmatprep.subr.mxu1 %v12419_v38 }
 0x20d   : > { %7955 = vmatpush3.msk.msra.mxu0 %vm3417_vm2, %v11319_v32 }
 0x20e   : > { %8080 = vmatpush3.msk.msra.mxu1 %vm3417_vm2, %v11324_v33  ;;  %9342 = vmatprep.subr.bf16.mxu0 %v9940_v3 }
 0x20f   : > { %9417 = vmatprep.subr.bf16.mxu1 %v9940_v3 }
 0x253   : > { %v2317_v51 = vpop.f32.mrb[4].mxu0 }
 0x254   : > { %v2670_v52 = vpop.f32.mrb[4].mxu1  ;;  %v7528_v17 = vpop.f32.mrb[5].mxu0 }
 0x255   : > { %v2675_v20 = vmax.f32 %v2317_v51, %v2670_v52  ;;  %v7663_v48 = vpop.f32.mrb[5].mxu1  ;;  %v5899_v51 = vld [vmem:[%s12375_s3 + $0x1b8] sm:$0xff]  ;;  %v11470_v52 = vmax.f32 %v1963_v29, 0.0  ;;  %v11472_v17 = vpack.c.bf16 %v5835_v58, %v5834_v40  ;;  %v11594_v29 = vld [vmem:[%s12375_s3 + $0x208] sm:$0xf]  ;;  %v11599_v58 = vpack.c.bf16 %v5848_v35, %v5847_v26  ;;  %v5855_v35 = vld [vmem:[%s12375_s3 + $0x250] sm:$0xff] }
 0x256   : > { %v5836_v48 = vld [vmem:[%s12375_s3 + $0x170] sm:$0xff]  ;;  %v11673_v26 = vpack.c.bf16 %v5919_v49, %v5918_v44 }
 0x257   : > { %v11597_v40 = vrot.slane %v11470_v52, 1 }
 0x2cb   : > { %v3028_v2 = vpop.f32.mrb[6].mxu0 }
 0x2cc   : > { %v3033_v22 = vmax.f32 %v2675_v20, %v3028_v2  ;;  %v3382_v60 = vpop.f32.mrb[6].mxu1  ;;  %v7798_v1 = vpop.f32.mrb[7].mxu0  ;;  %v11474_v20 = vpack.c.bf16 %v5900_v24, %v5899_v51  ;;  %v5837_v2 = vld [vmem:[%s12375_s3 + $0x178] sm:$0xff]  ;;  %v11601_v51 = vpack.c.bf16 %v5913_v54, %v5912_v53  ;;  %v5849_v24 = vld [vmem:[%s12375_s3 + $0x220] sm:$0xff]  ;;  %v5920_v54 = vld [vmem:[%s12375_s3 + $0x2a8] sm:$0xff] }
 0x2cd   : > { %v7933_v21 = vpop.f32.mrb[7].mxu1  ;;  %v11500_v1 = vpack.c.bf16 %v5837_v2, %v5836_v48  ;;  %v5850_v48 = vld [vmem:[%s12375_s3 + $0x228] sm:$0xff]  ;;  %v5914_v2 = vld [vmem:[%s12375_s3 + $0x278] sm:$0xff] }
 0x2ce   : > { %v3387_v42 = vmax.f32 %v3033_v22, %v3382_v60  ;;  %v5901_v22 = vld [vmem:[%s12375_s3 + $0x1c8] sm:$0xff]  ;;  %v5902_v60 = vld [vmem:[%s12375_s3 + $0x1d0] sm:$0xff]  ;;  %v5856_v53 = vld [vmem:[%s12375_s3 + $0x258] sm:$0xff] }
 0x2cf   : > { %v11502_v21 = vpack.c.bf16 %v5902_v60, %v5901_v22  ;;  %v5915_v22 = vld [vmem:[%s12375_s3 + $0x280] sm:$0xff]  ;;  %v11627_v60 = vpack.c.bf16 %v5850_v48, %v5849_v24  ;;  %v5921_v24 = vld [vmem:[%s12375_s3 + $0x2b0] sm:$0xff]  ;;  %v11691_v48 = vpack.c.bf16 %v5856_v53, %v5855_v35  ;;  %v5863_v53 = vld [vmem:[%s12375_s3 + $0x2d8] sm:$0xff] }
 0x2d0   : > { %v3388_v57 = vadd.f32 %v5796_v23, %v3387_v42  ;;  %v5839_v42 = vld [vmem:[%s12375_s3 + $0x188] sm:$0xff]  ;;  %v11526_v23 = vpack.c.bf16 %v5904_v11, %v5903_v39  ;;  %v5852_v39 = vld [vmem:[%s12375_s3 + $0x238] sm:$0xff]  ;;  %v5862_v35 = vld [vmem:[%s12375_s3 + $0x2d0] sm:$0xff] }
 0x2d1   : > { %v11524_v59 = vpack.c.bf16 %v5839_v42, %v5838_v47  ;;  %v11629_v47 = vpack.c.bf16 %v5915_v22, %v5914_v2  ;;  %v5851_v42 = vld [vmem:[%s12375_s3 + $0x230] sm:$0xff]  ;;  %v5916_v11 = vld [vmem:[%s12375_s3 + $0x288] sm:$0xff]  ;;  %v11693_v2 = vpack.c.bf16 %v5921_v24, %v5920_v54  ;;  %v5860_v22 = vld [vmem:[%s12375_s3 + $0x2c0] sm:$0xff] }
 0x2d2   : > { %v11354_v12 = vmax.f32 %v3388_v57, 0.0  ;;  %v5840_v57 = vld [vmem:[%s12375_s3 + $0x190] sm:$0xff]  ;;  %v5927_v54 = vld [vmem:[%s12375_s3 + $0x328] sm:$0xff] }
 0x2d3   : > { %v11544_v19 = vpack.c.bf16 %v5841_v8, %v5840_v57  ;;  %v5917_v57 = vld [vmem:[%s12375_s3 + $0x290] sm:$0xff]  ;;  %v11651_v8 = vpack.c.bf16 %v5852_v39, %v5851_v42  ;;  %v5861_v42 = vld [vmem:[%s12375_s3 + $0x2c8] sm:$0xff]  ;;  %v5925_v39 = vld [vmem:[%s12375_s3 + $0x318] sm:$0xff] }
 0x2d4   : > { %7957 = vmatmul.mubr.msk.f32.vlgmr.msra.gmra.mrb[8].mxu0 %vm3413_vm3, %v11354_v12  ;;  %8082 = vmatmul.mubr.msk.f32.vlgmr.msra.gmra.mrb[8].mxu1 %vm3413_vm3, %v11354_v12  ;;  %v11653_v13 = vpack.c.bf16 %v5917_v57, %v5916_v11  ;;  %v5926_v11 = vld [vmem:[%s12375_s3 + $0x320] sm:$0xff]  ;;  %v11724_v43 = vrot.slane %v11354_v12, 1  ;;  %v11726_v44 = vpack.c.bf16 %v5861_v42, %v5860_v22  ;;  %v5928_v24 = vld [vmem:[%s12375_s3 + $0x330] sm:$0xff]  ;;  %v11754_v22 = vpack.c.bf16 %v5863_v53, %v5862_v35 }
 0x2d5   : > { %9344 = vmatpush3.bf16.msra.mxu0 %v11347_v7  ;;  %9419 = vmatpush3.bf16.msra.mxu1 %v11349_v4  ;;  %v11716_v57 = vld [vmem:[%s12375_s3 + $0x260] sm:$0xf]  ;;  %v11728_v49 = vpack.c.bf16 %v5926_v11, %v5925_v39  ;;  %v11756_v42 = vpack.c.bf16 %v5928_v24, %v5927_v54  ;;  %v5865_v11 = vld [vmem:[%s12375_s3 + $0x2e8] sm:$0xff]  ;;  %v5866_v24 = vld [vmem:[%s12375_s3 + $0x2f0] sm:$0xff] }
 0x2d6   : > { %9345 = vmatprep.subr.bf16.mxu0 %v9940_v3  ;;  %9420 = vmatprep.subr.bf16.mxu1 %v9940_v3  ;;  %12432 = vst [vmem:[#allocation12_spill] sm:$0xff] %v11726_v44  ;;  %12434 = vst [vmem:[#allocation15_spill] sm:$0xff] %v11754_v22  ;;  %v5864_v39 = vld [vmem:[%s12375_s3 + $0x2e0] sm:$0xff] }
 0x2d7   : > { %7981 = vmatprep.mubr.msk.f32.mxu0 %vm9941_vm0, %v12419_v38  ;;  %8106 = vmatprep.mubr.msk.f32.mxu1 %vm9941_vm0, %v12419_v38  ;;  %12433 = vst [vmem:[#allocation13_spill] sm:$0xff] %v11728_v49  ;;  %12435 = vst [vmem:[#allocation11_spill] sm:$0xff] %v11756_v42  ;;  %v5930_v35 = vld [vmem:[%s12375_s3 + $0x340] sm:$0xff]  ;;  %v11778_v53 = vpack.c.bf16 %v5865_v11, %v5864_v39 }
 0x2d9   : > { %9347 = vmatpush3.bf16.msra.mxu0 %v11371_v30  ;;  %9422 = vmatpush3.bf16.msra.mxu1 %v11373_v31 }
 0x2da   : > { %9348 = vmatprep.subr.bf16.mxu0 %v9940_v3  ;;  %9423 = vmatprep.subr.bf16.mxu1 %v9940_v3 }
 0x2dd   : > { %9350 = vmatpush3.bf16.msra.mxu0 %v11395_v50  ;;  %9425 = vmatpush3.bf16.msra.mxu1 %v11397_v61 }
 0x2de   : > { %9351 = vmatprep.subr.bf16.mxu0 %v9940_v3  ;;  %9426 = vmatprep.subr.bf16.mxu1 %v9940_v3 }
 0x2e1   : > { %9353 = vmatpush3.bf16.msra.mxu0 %v11415_v27  ;;  %9428 = vmatpush3.bf16.msra.mxu1 %v11417_v34 }
 0x2e2   : > { %9354 = vmatprep.subr.bf16.mxu0 %v9940_v3  ;;  %9429 = vmatprep.subr.bf16.mxu1 %v9940_v3 }
 0x2e5   : > { %9356 = vmatpush3.bf16.msra.mxu0 %v11435_v0  ;;  %9431 = vmatpush3.bf16.msra.mxu1 %v11437_v28 }
 0x2e6   : > { %7979 = vmatprep.subr.mxu0 %v12419_v38  ;;  %8104 = vmatprep.subr.mxu1 %v12419_v38 }
 0x2e9   : > { %7980 = vmatpush3.msk.msra.mxu0 %vm3417_vm2, %v11463_v25  ;;  %8105 = vmatpush3.msk.msra.mxu1 %vm3417_vm2, %v11468_v36 }
 0x2ea   : > { %7982 = vmatmul.mubr.msk.f32.vlgmr.msra.gmra.mrb[8].mxu0 %vm3413_vm3, %v11470_v52  ;;  %9357 = vmatprep.subr.bf16.mxu0 %v9940_v3 }
 0x2eb   : > { %8107 = vmatmul.mubr.msk.f32.vlgmr.msra.gmra.mrb[8].mxu1 %vm3413_vm3, %v11470_v52  ;;  %9432 = vmatprep.subr.bf16.mxu1 %v9940_v3 }
 0x2ec   : > { %9359 = vmatpush3.bf16.msra.mxu0 %v11472_v17  ;;  %9434 = vmatpush3.bf16.msra.mxu1 %v11474_v20 }
 0x2ed   : > { %9360 = vmatprep.subr.bf16.mxu0 %v9940_v3  ;;  %9435 = vmatprep.subr.bf16.mxu1 %v9940_v3 }
 0x2ee   : > { %8006 = vmatprep.mubr.msk.f32.mxu0 %vm9941_vm0, %v12419_v38  ;;  %8131 = vmatprep.mubr.msk.f32.mxu1 %vm9941_vm0, %v12419_v38 }
 0x2f0   : > { %9362 = vmatpush3.bf16.msra.mxu0 %v11500_v1  ;;  %9437 = vmatpush3.bf16.msra.mxu1 %v11502_v21 }
 0x2f1   : > { %9363 = vmatprep.subr.bf16.mxu0 %v9940_v3  ;;  %9438 = vmatprep.subr.bf16.mxu1 %v9940_v3 }
 0x2f4   : > { %9365 = vmatpush3.bf16.msra.mxu0 %v11524_v59  ;;  %9440 = vmatpush3.bf16.msra.mxu1 %v11526_v23 }
 0x2f5   : > { %9366 = vmatprep.subr.bf16.mxu0 %v9940_v3  ;;  %9441 = vmatprep.subr.bf16.mxu1 %v9940_v3 }
 0x2f8   : > { %9368 = vmatpush3.bf16.msra.mxu0 %v11544_v19  ;;  %9443 = vmatpush3.bf16.msra.mxu1 %v11546_v37 }
 0x2f9   : > { %9369 = vmatprep.subr.bf16.mxu0 %v9940_v3  ;;  %9444 = vmatprep.subr.bf16.mxu1 %v9940_v3 }
 0x2fc   : > { %9371 = vmatpush3.bf16.msra.mxu0 %v11564_v5  ;;  %9446 = vmatpush3.bf16.msra.mxu1 %v11566_v6 }
 0x2fd   : > { %8004 = vmatprep.subr.mxu0 %v12419_v38  ;;  %8129 = vmatprep.subr.mxu1 %v12419_v38 }
 0x300   : > { %8005 = vmatpush3.msk.msra.mxu0 %vm3417_vm2, %v11589_v63  ;;  %8130 = vmatpush3.msk.msra.mxu1 %vm3417_vm2, %v11594_v29 }
 0x301   : > { %8007 = vmatmul.mubr.msk.f32.vlgmr.msra.gmra.mrb[8].mxu0 %vm3413_vm3, %v11597_v40  ;;  %9372 = vmatprep.subr.bf16.mxu0 %v9940_v3 }
 0x302   : > { %8132 = vmatmul.mubr.msk.f32.vlgmr.msra.gmra.mrb[8].mxu1 %vm3413_vm3, %v11597_v40  ;;  %9447 = vmatprep.subr.bf16.mxu1 %v9940_v3 }
 0x303   : > { %9374 = vmatpush3.bf16.msra.mxu0 %v11599_v58  ;;  %9449 = vmatpush3.bf16.msra.mxu1 %v11601_v51 }
 0x304   : > { %9375 = vmatprep.subr.bf16.mxu0 %v9940_v3  ;;  %9450 = vmatprep.subr.bf16.mxu1 %v9940_v3 }
 0x305   : > { %8031 = vmatprep.mubr.msk.f32.mxu0 %vm9941_vm0, %v12419_v38  ;;  %8156 = vmatprep.mubr.msk.f32.mxu1 %vm9941_vm0, %v12419_v38 }
 0x307   : > { %9377 = vmatpush3.bf16.msra.mxu0 %v11627_v60  ;;  %9452 = vmatpush3.bf16.msra.mxu1 %v11629_v47 }
 0x308   : > { %9378 = vmatprep.subr.bf16.mxu0 %v9940_v3  ;;  %9453 = vmatprep.subr.bf16.mxu1 %v9940_v3 }
 0x30b   : > { %9380 = vmatpush3.bf16.msra.mxu0 %v11651_v8  ;;  %9455 = vmatpush3.bf16.msra.mxu1 %v11653_v13 }
 0x30c   : > { %9381 = vmatprep.subr.bf16.mxu0 %v9940_v3  ;;  %9456 = vmatprep.subr.bf16.mxu1 %v9940_v3 }
 0x30f   : > { %9383 = vmatpush3.bf16.msra.mxu0 %v11671_v62  ;;  %9458 = vmatpush3.bf16.msra.mxu1 %v11673_v26 }
 0x310   : > { %9384 = vmatprep.subr.bf16.mxu0 %v9940_v3  ;;  %9459 = vmatprep.subr.bf16.mxu1 %v9940_v3 }
 0x313   : > { %9386 = vmatpush3.bf16.msra.mxu0 %v11691_v48  ;;  %9461 = vmatpush3.bf16.msra.mxu1 %v11693_v2 }
 0x314   : > { %8029 = vmatprep.subr.mxu0 %v12419_v38  ;;  %8154 = vmatprep.subr.mxu1 %v12419_v38 }
 0x317   : > { %8030 = vmatpush3.msk.msra.mxu0 %vm3417_vm2, %v11716_v57  ;;  %8155 = vmatpush3.msk.msra.mxu1 %vm3417_vm2, %v11721_v18 }
 0x318   : > { %8032 = vmatmul.mubr.msk.f32.vlgmr.msra.gmra.mrb[8].mxu0 %vm3413_vm3, %v11724_v43  ;;  %9387 = vmatprep.subr.bf16.mxu0 %v9940_v3 }
 0x319   : > { %8157 = vmatmul.mubr.msk.f32.vlgmr.msra.gmra.mrb[8].mxu1 %vm3413_vm3, %v11724_v43  ;;  %9462 = vmatprep.subr.bf16.mxu1 %v9940_v3 }
 0x31a   : > { %9389 = vmatpush3.bf16.msra.mxu0 %v11726_v44  ;;  %9464 = vmatpush3.bf16.msra.mxu1 %v11728_v49  ;;  %v5929_v49 = vld [vmem:[%s12375_s3 + $0x338] sm:$0xff] }
 0x31b   : > { %9390 = vmatprep.subr.bf16.mxu0 %v9940_v3  ;;  %9465 = vmatprep.subr.bf16.mxu1 %v9940_v3  ;;  %v11780_v54 = vpack.c.bf16 %v5930_v35, %v5929_v49  ;;  %v5867_v44 = vld [vmem:[%s12375_s3 + $0x2f8] sm:$0xff]  ;;  %v5932_v49 = vld [vmem:[%s12375_s3 + $0x350] sm:$0xff]  ;;  %v5868_v35 = vld [vmem:[%s12375_s3 + $0x300] sm:$0xff] }
 0x31c   : > { %8056 = vmatprep.mubr.msk.f32.mxu0 %vm9941_vm0, %v12419_v38  ;;  %8181 = vmatprep.mubr.msk.f32.mxu1 %vm9941_vm0, %v12419_v38  ;;  %v11798_v39 = vpack.c.bf16 %v5867_v44, %v5866_v24  ;;  %v5934_v44 = vld [vmem:[%s12375_s3 + $0x360] sm:$0xff] }
 0x31d   : > { %12436 = vst [vmem:[#allocation14_spill] sm:$0xff] %v11780_v54 }
 0x31e   : > { %9392 = vmatpush3.bf16.msra.mxu0 %v11754_v22  ;;  %9467 = vmatpush3.bf16.msra.mxu1 %v11756_v42  ;;  %v5931_v42 = vld [vmem:[%s12375_s3 + $0x348] sm:$0xff] }
 0x31f   : > { %9393 = vmatprep.subr.bf16.mxu0 %v9940_v3  ;;  %9468 = vmatprep.subr.bf16.mxu1 %v9940_v3  ;;  %v11800_v11 = vpack.c.bf16 %v5932_v49, %v5931_v42  ;;  %v5869_v22 = vld [vmem:[%s12375_s3 + $0x308] sm:$0xff]  ;;  %v11831_v49 = vld [vmem:[%s12375_s3 + $0x310] sm:$0xf] }
 0x320   : > { %v11818_v42 = vpack.c.bf16 %v5869_v22, %v5868_v35  ;;  %v11836_v22 = vld [vmem:[%s12375_s3 + $0x368] sm:$0xf]  ;;  %v5984_v35 = vld [vmem:[%s12377_s5 + $0x100] sm:$0xff] }
 0x322   : > { %9395 = vmatpush3.bf16.msra.mxu0 %v11778_v53  ;;  %9470 = vmatpush3.bf16.msra.mxu1 %v11780_v54  ;;  %v5933_v54 = vld [vmem:[%s12375_s3 + $0x358] sm:$0xff] }
 0x323   : > { %9396 = vmatprep.subr.bf16.mxu0 %v9940_v3  ;;  %9471 = vmatprep.subr.bf16.mxu1 %v9940_v3  ;;  %v11820_v24 = vpack.c.bf16 %v5934_v44, %v5933_v54  ;;  %v11839_v54 = vrot.slane %v11470_v52, 2  ;;  %v4990_v52 = vld [vmem:[%s12377_s5 + $0x38] sm:$0xff]  ;;  %v5985_v44 = vld [vmem:[%s12377_s5 + $0x108] sm:$0xff] }
 0x326   : > { %9398 = vmatpush3.bf16.msra.mxu0 %v11798_v39  ;;  %9473 = vmatpush3.bf16.msra.mxu1 %v11800_v11 }
 0x327   : > { %9399 = vmatprep.subr.bf16.mxu0 %v9940_v3  ;;  %9474 = vmatprep.subr.bf16.mxu1 %v9940_v3 }
 0x32a   : > { %9401 = vmatpush3.bf16.msra.mxu0 %v11818_v42  ;;  %9476 = vmatpush3.bf16.msra.mxu1 %v11820_v24 }
 0x32b   : > { %8054 = vmatprep.subr.mxu0 %v12419_v38  ;;  %8179 = vmatprep.subr.mxu1 %v12419_v38 }
 0x32e   : > { %8055 = vmatpush3.msk.msra.mxu0 %vm3417_vm2, %v11831_v49  ;;  %8180 = vmatpush3.msk.msra.mxu1 %vm3417_vm2, %v11836_v22 }
 0x32f   : > { %8057 = vmatmul.mubr.msk.f32.vlgmr.msra.gmra.mrb[8].mxu0 %vm3413_vm3, %v11839_v54  ;;  %8182 = vmatmul.mubr.msk.f32.vlgmr.msra.gmra.mrb[8].mxu1 %vm3413_vm3, %v11839_v54 }
 0x330   : > { %9477 = vmatprep.subr.bf16.mxu0 %v9940_v3  ;;  %9552 = vmatprep.subr.bf16.mxu1 %v9940_v3 }
 0x331   : > { %9479 = vmatpush3.bf16.msra.mxu0 %v11219_v55  ;;  %9554 = vmatpush3.bf16.msra.mxu1 %v11223_v56  ;;  %v12437_v55 = vld [vmem:[#allocation12_spill] sm:$0xff]  ;;  %v12438_v56 = vld [vmem:[#allocation13_spill] sm:$0xff] }
 0x332   : > { %9480 = vmatprep.subr.bf16.mxu0 %v9940_v3  ;;  %9555 = vmatprep.subr.bf16.mxu1 %v9940_v3 }
 0x333   : > { %8206 = vmatprep.mubr.msk.f32.mxu0 %vm9941_vm0, %v12419_v38  ;;  %8331 = vmatprep.mubr.msk.f32.mxu1 %vm9941_vm0, %v12419_v38 }
 0x335   : > { %9482 = vmatpush3.bf16.msra.mxu0 %v11241_v15  ;;  %9557 = vmatpush3.bf16.msra.mxu1 %v11245_v16  ;;  %v12439_v15 = vld [vmem:[#allocation15_spill] sm:$0xff] }
 0x336   : > { %9483 = vmatprep.subr.bf16.mxu0 %v9940_v3  ;;  %9558 = vmatprep.subr.bf16.mxu1 %v9940_v3  ;;  %v12440_v16 = vld [vmem:[#allocation11_spill] sm:$0xff] }
 0x339   : > { %9485 = vmatpush3.bf16.msra.mxu0 %v11265_v45  ;;  %9560 = vmatpush3.bf16.msra.mxu1 %v11269_v46  ;;  %v12441_v45 = vld [vmem:[#allocation14_spill] sm:$0xff] }
 0x33a   : > { %9486 = vmatprep.subr.bf16.mxu0 %v9940_v3  ;;  %9561 = vmatprep.subr.bf16.mxu1 %v9940_v3  ;;  %v4983_v46 = vld [vmem:[%s12377_s5] sm:$0xff] }
 0x33d   : > { %9488 = vmatpush3.bf16.msra.mxu0 %v11285_v10  ;;  %9563 = vmatpush3.bf16.msra.mxu1 %v11289_v14  ;;  %v4984_v10 = vld [vmem:[%s12377_s5 + $0x8] sm:$0xff]  ;;  %v5959_v14 = vld [vmem:[%s12377_s5 + $0x50] sm:$0xff] }
 0x33e   : > { %9489 = vmatprep.subr.bf16.mxu0 %v9940_v3  ;;  %9564 = vmatprep.subr.bf16.mxu1 %v9940_v3 }
 0x341   : > { %9491 = vmatpush3.bf16.msra.mxu0 %v11305_v41  ;;  %9566 = vmatpush3.bf16.msra.mxu1 %v11310_v9  ;;  %v5960_v41 = vld [vmem:[%s12377_s5 + $0x58] sm:$0xff]  ;;  %v4545_v9 = vrot.slane %v11354_v12, 2 }
 0x342   : > { %8204 = vmatprep.subr.mxu0 %v12419_v38  ;;  %8329 = vmatprep.subr.mxu1 %v12419_v38 }
 0x345   : > { %8205 = vmatpush3.msk.msra.mxu0 %vm3417_vm2, %v11319_v32  ;;  %8330 = vmatpush3.msk.msra.mxu1 %vm3417_vm2, %v11324_v33  ;;  %v9643_v32 = vpack.c.bf16 %v4984_v10, %v4983_v46  ;;  %v9628_v33 = vpack.c.bf16 %v5960_v41, %v5959_v14  ;;  %v5988_v10 = vld [vmem:[%s12377_s5 + $0x120] sm:$0xff]  ;;  %v5989_v14 = vld [vmem:[%s12377_s5 + $0x128] sm:$0xff] }
 0x346   : > { %8207 = vmatmul.mubr.msk.f32.vlgmr.msra.gmra.mrb[10].mxu0 %vm3413_vm3, %v11597_v40  ;;  %9492 = vmatprep.subr.bf16.mxu0 %v9940_v3 }
 0x347   : > { %8332 = vmatmul.mubr.msk.f32.vlgmr.msra.gmra.mrb[10].mxu1 %vm3413_vm3, %v11597_v40  ;;  %9567 = vmatprep.subr.bf16.mxu1 %v9940_v3 }
 0x348   : > { %9494 = vmatpush3.bf16.msra.mxu0 %v11347_v7  ;;  %9569 = vmatpush3.bf16.msra.mxu1 %v11349_v4  ;;  %v4985_v7 = vld [vmem:[%s12377_s5 + $0x10] sm:$0xff]  ;;  %v4986_v4 = vld [vmem:[%s12377_s5 + $0x18] sm:$0xff] }
 0x349   : > { %9495 = vmatprep.subr.bf16.mxu0 %v9940_v3  ;;  %9570 = vmatprep.subr.bf16.mxu1 %v9940_v3 }
 0x34a   : > { %8231 = vmatprep.mubr.msk.f32.mxu0 %vm9941_vm0, %v12419_v38  ;;  %8356 = vmatprep.mubr.msk.f32.mxu1 %vm9941_vm0, %v12419_v38 }
 0x34c   : > { %9497 = vmatpush3.bf16.msra.mxu0 %v11371_v30  ;;  %9572 = vmatpush3.bf16.msra.mxu1 %v11373_v31  ;;  %v5962_v30 = vld [vmem:[%s12377_s5 + $0x68] sm:$0xff]  ;;  %v9646_v31 = vpack.c.bf16 %v4986_v4, %v4985_v7  ;;  %v5990_v7 = vld [vmem:[%s12377_s5 + $0x130] sm:$0xff]  ;;  %v5991_v4 = vld [vmem:[%s12377_s5 + $0x138] sm:$0xff] }
 0x34d   : > { %9498 = vmatprep.subr.bf16.mxu0 %v9940_v3  ;;  %9573 = vmatprep.subr.bf16.mxu1 %v9940_v3 }
 0x350   : > { %9500 = vmatpush3.bf16.msra.mxu0 %v11395_v50  ;;  %9575 = vmatpush3.bf16.msra.mxu1 %v11397_v61  ;;  %v4987_v61 = vld [vmem:[%s12377_s5 + $0x20] sm:$0xff] }
 0x351   : > { %9501 = vmatprep.subr.bf16.mxu0 %v9940_v3  ;;  %9576 = vmatprep.subr.bf16.mxu1 %v9940_v3 }
 0x354   : > { %9503 = vmatpush3.bf16.msra.mxu0 %v11415_v27  ;;  %9578 = vmatpush3.bf16.msra.mxu1 %v11417_v34  ;;  %v4988_v27 = vld [vmem:[%s12377_s5 + $0x28] sm:$0xff]  ;;  %v5963_v34 = vld [vmem:[%s12377_s5 + $0x70] sm:$0xff] }
 0x355   : > { %9504 = vmatprep.subr.bf16.mxu0 %v9940_v3  ;;  %9579 = vmatprep.subr.bf16.mxu1 %v9940_v3 }
 0x358   : > { %9506 = vmatpush3.bf16.msra.mxu0 %v11435_v0  ;;  %9581 = vmatpush3.bf16.msra.mxu1 %v11437_v28  ;;  %v5964_v0 = vld [vmem:[%s12377_s5 + $0x78] sm:$0xff]  ;;  %v9649_v28 = vpack.c.bf16 %v4988_v27, %v4987_v61  ;;  %v5993_v27 = vld [vmem:[%s12377_s5 + $0x140] sm:$0xff] }
 0x359   : > { %8229 = vmatprep.subr.mxu0 %v12419_v38  ;;  %8354 = vmatprep.subr.mxu1 %v12419_v38 }
 0x35c   : > { %8230 = vmatpush3.msk.msra.mxu0 %vm3417_vm2, %v11463_v25  ;;  %8355 = vmatpush3.msk.msra.mxu1 %vm3417_vm2, %v11468_v36  ;;  %v9634_v25 = vpack.c.bf16 %v5964_v0, %v5963_v34  ;;  %v4989_v36 = vld [vmem:[%s12377_s5 + $0x30] sm:$0xff]  ;;  %v5994_v34 = vld [vmem:[%s12377_s5 + $0x148] sm:$0xff] }
 0x35d   : > { %8232 = vmatmul.mubr.msk.f32.vlgmr.msra.gmra.mrb[10].mxu0 %vm3413_vm3, %v11354_v12  ;;  %9507 = vmatprep.subr.bf16.mxu0 %v9940_v3 }
 0x35e   : > { %8357 = vmatmul.mubr.msk.f32.vlgmr.msra.gmra.mrb[10].mxu1 %vm3413_vm3, %v11354_v12  ;;  %9582 = vmatprep.subr.bf16.mxu1 %v9940_v3  ;;  %v5961_v12 = vld [vmem:[%s12377_s5 + $0x60] sm:$0xff] }
 0x35f   : > { %9509 = vmatpush3.bf16.msra.mxu0 %v11472_v17  ;;  %9584 = vmatpush3.bf16.msra.mxu1 %v11474_v20  ;;  %v9631_v50 = vpack.c.bf16 %v5962_v30, %v5961_v12  ;;  %v9652_v17 = vpack.c.bf16 %v4990_v52, %v4989_v36  ;;  %v5965_v20 = vld [vmem:[%s12377_s5 + $0x80] sm:$0xff]  ;;  %v5995_v36 = vld [vmem:[%s12377_s5 + $0x150] sm:$0xff]  ;;  %v5996_v52 = vld [vmem:[%s12377_s5 + $0x158] sm:$0xff] }
 0x360   : > { %9510 = vmatprep.subr.bf16.mxu0 %v9940_v3  ;;  %9585 = vmatprep.subr.bf16.mxu1 %v9940_v3  ;;  %v5979_v30 = vld [vmem:[%s12377_s5 + $0xe0] sm:$0xff] }
 0x361   : > { %8256 = vmatprep.mubr.msk.f32.mxu0 %vm9941_vm0, %v12419_v38  ;;  %8381 = vmatprep.mubr.msk.f32.mxu1 %vm9941_vm0, %v12419_v38 }
 0x363   : > { %9512 = vmatpush3.bf16.msra.mxu0 %v11500_v1  ;;  %9587 = vmatpush3.bf16.msra.mxu1 %v11502_v21  ;;  %v5966_v1 = vld [vmem:[%s12377_s5 + $0x88] sm:$0xff] }
 0x364   : > { %9513 = vmatprep.subr.bf16.mxu0 %v9940_v3  ;;  %9588 = vmatprep.subr.bf16.mxu1 %v9940_v3  ;;  %v9637_v21 = vpack.c.bf16 %v5966_v1, %v5965_v20  ;;  %v5997_v20 = vld [vmem:[%s12377_s5 + $0x160] sm:$0xff]  ;;  %v5998_v1 = vld [vmem:[%s12377_s5 + $0x168] sm:$0xff] }
 0x367   : > { %9515 = vmatpush3.bf16.msra.mxu0 %v11524_v59  ;;  %9590 = vmatpush3.bf16.msra.mxu1 %v11526_v23  ;;  %v4991_v59 = vld [vmem:[%s12377_s5 + $0x40] sm:$0xff]  ;;  %v4992_v23 = vld [vmem:[%s12377_s5 + $0x48] sm:$0xff] }
 0x368   : > { %9516 = vmatprep.subr.bf16.mxu0 %v9940_v3  ;;  %9591 = vmatprep.subr.bf16.mxu1 %v9940_v3 }
 0x36b   : > { %9518 = vmatpush3.bf16.msra.mxu0 %v11544_v19  ;;  %9593 = vmatpush3.bf16.msra.mxu1 %v11546_v37  ;;  %v9655_v19 = vpack.c.bf16 %v4992_v23, %v4991_v59  ;;  %v5967_v37 = vld [vmem:[%s12377_s5 + $0x90] sm:$0xff]  ;;  %v6000_v23 = vld [vmem:[%s12377_s5 + $0x178] sm:$0xff] }
 0x36c   : > { %9519 = vmatprep.subr.bf16.mxu0 %v9940_v3  ;;  %9594 = vmatprep.subr.bf16.mxu1 %v9940_v3  ;;  %v5999_v59 = vld [vmem:[%s12377_s5 + $0x170] sm:$0xff] }
 0x36f   : > { %9521 = vmatpush3.bf16.msra.mxu0 %v11564_v5  ;;  %9596 = vmatpush3.bf16.msra.mxu1 %v11566_v6  ;;  %v5968_v5 = vld [vmem:[%s12377_s5 + $0x98] sm:$0xff] }
 0x370   : > { %8254 = vmatprep.subr.mxu0 %v12419_v38  ;;  %8379 = vmatprep.subr.mxu1 %v12419_v38  ;;  %v9640_v6 = vpack.c.bf16 %v5968_v5, %v5967_v37  ;;  %v6001_v37 = vld [vmem:[%s12377_s5 + $0x180] sm:$0xff]  ;;  %v6002_v5 = vld [vmem:[%s12377_s5 + $0x188] sm:$0xff] }
 0x373   : > { %8255 = vmatpush3.msk.msra.mxu0 %vm3417_vm2, %v11589_v63  ;;  %8380 = vmatpush3.msk.msra.mxu1 %vm3417_vm2, %v11594_v29 }
 0x374   : > { %8257 = vmatmul.mubr.msk.f32.vlgmr.msra.gmra.mrb[10].mxu0 %vm3413_vm3, %v11724_v43  ;;  %9522 = vmatprep.subr.bf16.mxu0 %v9940_v3 }
 0x375   : > { %8382 = vmatmul.mubr.msk.f32.vlgmr.msra.gmra.mrb[10].mxu1 %vm3413_vm3, %v11724_v43  ;;  %9597 = vmatprep.subr.bf16.mxu1 %v9940_v3  ;;  %v5971_v43 = vld [vmem:[%s12377_s5 + $0xa0] sm:$0xff] }
 0x376   : > { %9524 = vmatpush3.bf16.msra.mxu0 %v11599_v58  ;;  %9599 = vmatpush3.bf16.msra.mxu1 %v11601_v51 }
 0x377   : > { %9525 = vmatprep.subr.bf16.mxu0 %v9940_v3  ;;  %9600 = vmatprep.subr.bf16.mxu1 %v9940_v3 }
 0x378   : > { %8281 = vmatprep.mubr.msk.f32.mxu0 %vm9941_vm0, %v12419_v38  ;;  %8406 = vmatprep.mubr.msk.f32.mxu1 %vm9941_vm0, %v12419_v38 }
 0x37a   : > { %9527 = vmatpush3.bf16.msra.mxu0 %v11627_v60  ;;  %9602 = vmatpush3.bf16.msra.mxu1 %v11629_v47 }
 0x37b   : > { %9528 = vmatprep.subr.bf16.mxu0 %v9940_v3  ;;  %9603 = vmatprep.subr.bf16.mxu1 %v9940_v3 }
 0x37e   : > { %9530 = vmatpush3.bf16.msra.mxu0 %v11651_v8  ;;  %9605 = vmatpush3.bf16.msra.mxu1 %v11653_v13 }
 0x37f   : > { %9531 = vmatprep.subr.bf16.mxu0 %v9940_v3  ;;  %9606 = vmatprep.subr.bf16.mxu1 %v9940_v3 }
 0x382   : > { %9533 = vmatpush3.bf16.msra.mxu0 %v11671_v62  ;;  %9608 = vmatpush3.bf16.msra.mxu1 %v11673_v26  ;;  %v5958_v26 = vld [vmem:[%s12376_s4] ss:$0 sm:$0xff] }
 0x383   : > { %9534 = vmatprep.subr.bf16.mxu0 %v9940_v3  ;;  %9609 = vmatprep.subr.bf16.mxu1 %v9940_v3 }
 0x386   : > { %9536 = vmatpush3.bf16.msra.mxu0 %v11691_v48  ;;  %9611 = vmatpush3.bf16.msra.mxu1 %v11693_v2  ;;  %v5982_v2 = vld [vmem:[%s12377_s5 + $0xf0] sm:$0xff] }
 0x387   : > { %8279 = vmatprep.subr.mxu0 %v12419_v38  ;;  %8404 = vmatprep.subr.mxu1 %v12419_v38 }
 0x38a   : > { %8280 = vmatpush3.msk.msra.mxu0 %vm3417_vm2, %v11716_v57  ;;  %8405 = vmatpush3.msk.msra.mxu1 %vm3417_vm2, %v11721_v18  ;;  %v5983_v57 = vld [vmem:[%s12377_s5 + $0xf8] sm:$0xff] }
 0x38b   : > { %8282 = vmatmul.mubr.msk.f32.vlgmr.msra.gmra.mrb[10].mxu0 %vm3413_vm3, %v11839_v54  ;;  %9537 = vmatprep.subr.bf16.mxu0 %v9940_v3 }
 0x38c   : > { %8407 = vmatmul.mubr.msk.f32.vlgmr.msra.gmra.mrb[10].mxu1 %vm3413_vm3, %v11839_v54  ;;  %9612 = vmatprep.subr.bf16.mxu1 %v9940_v3  ;;  %v9676_v54 = vpack.c.bf16 %v5985_v44, %v5984_v35  ;;  %v5421_v35 = vld [vmem:[%s12379_s7 + $0x60] sm:$0xff]  ;;  %v5422_v44 = vld [vmem:[%s12379_s7 + $0x68] sm:$0xff] }
 0x38d   : > { %9539 = vmatpush3.bf16.msra.mxu0 %v12437_v55  ;;  %9614 = vmatpush3.bf16.msra.mxu1 %v12438_v56  ;;  %v5986_v55 = vld [vmem:[%s12377_s5 + $0x110] sm:$0xff]  ;;  %v5987_v56 = vld [vmem:[%s12377_s5 + $0x118] sm:$0xff] }
 0x38e   : > { %9540 = vmatprep.subr.bf16.mxu0 %v9940_v3  ;;  %9615 = vmatprep.subr.bf16.mxu1 %v9940_v3  ;;  %v9679_v46 = vpack.c.bf16 %v5987_v56, %v5986_v55  ;;  %v5503_v56 = vld [vmem:[%s12381_s9 + $0x18] sm:$0xff] }
 0x38f   : > { %8306 = vmatprep.mubr.msk.f32.mxu0 %vm9941_vm0, %v12419_v38  ;;  %8431 = vmatprep.mubr.msk.f32.mxu1 %vm9941_vm0, %v12419_v38 }
 0x391   : > { %9542 = vmatpush3.bf16.msra.mxu0 %v12439_v15  ;;  %9617 = vmatpush3.bf16.msra.mxu1 %v12440_v16  ;;  %v5975_v16 = vld [vmem:[%s12377_s5 + $0xc0] sm:$0xff] }
 0x392   : > { %9543 = vmatprep.subr.bf16.mxu0 %v9940_v3  ;;  %9618 = vmatprep.subr.bf16.mxu1 %v9940_v3 }
 0x395   : > { %9545 = vmatpush3.bf16.msra.mxu0 %v11778_v53  ;;  %9620 = vmatpush3.bf16.msra.mxu1 %v12441_v45  ;;  %v5972_v53 = vld [vmem:[%s12377_s5 + $0xa8] sm:$0xff] }
 0x396   : > { %9546 = vmatprep.subr.bf16.mxu0 %v9940_v3  ;;  %9621 = vmatprep.subr.bf16.mxu1 %v9940_v3  ;;  %v5976_v45 = vld [vmem:[%s12377_s5 + $0xc8] sm:$0xff] }
 0x397   : > { %v9664_v41 = vpack.c.bf16 %v5976_v45, %v5975_v16  ;;  %v5504_v16 = vld [vmem:[%s12381_s9 + $0x20] sm:$0xff]  ;;  %v5505_v45 = vld [vmem:[%s12381_s9 + $0x28] sm:$0xff] }
 0x399   : > { %9548 = vmatpush3.bf16.msra.mxu0 %v11798_v39  ;;  %9623 = vmatpush3.bf16.msra.mxu1 %v11800_v11  ;;  %v9673_v39 = vpack.c.bf16 %v5983_v57, %v5982_v2  ;;  %v5417_v57 = vld [vmem:[%s12379_s7 + $0x40] sm:$0xff] }
 0x39a   : > { %9549 = vmatprep.subr.bf16.mxu0 %v9940_v3  ;;  %9624 = vmatprep.subr.bf16.mxu1 %v9940_v3 }
 0x39d   : > { %9551 = vmatpush3.bf16.msra.mxu0 %v11818_v42  ;;  %9626 = vmatpush3.bf16.msra.mxu1 %v11820_v24  ;;  %v9658_v42 = vpack.c.bf16 %v5972_v53, %v5971_v43  ;;  %v5419_v53 = vld [vmem:[%s12379_s7 + $0x50] sm:$0xff] }
 0x39e   : > { %8304 = vmatprep.subr.mxu0 %v12419_v38  ;;  %8429 = vmatprep.subr.mxu1 %v12419_v38 }
 0x3a1   : > { %8305 = vmatpush3.msk.msra.mxu0 %vm3417_vm2, %v11831_v49  ;;  %8430 = vmatpush3.msk.msra.mxu1 %vm3417_vm2, %v11836_v22  ;;  %v5973_v49 = vld [vmem:[%s12377_s5 + $0xb0] sm:$0xff]  ;;  %v5974_v22 = vld [vmem:[%s12377_s5 + $0xb8] sm:$0xff] }
 0x3a2   : > { %8307 = vmatmul.mubr.msk.f32.vlgmr.msra.gmra.mrb[10].mxu0 %vm3413_vm3, %v4545_v9  ;;  %8432 = vmatmul.mubr.msk.f32.vlgmr.msra.gmra.mrb[10].mxu1 %vm3413_vm3, %v4545_v9  ;;  %v9661_v15 = vpack.c.bf16 %v5974_v22, %v5973_v49  ;;  %v5977_v9 = vld [vmem:[%s12377_s5 + $0xd0] sm:$0xff]  ;;  %v5500_v49 = vld [vmem:[%s12381_s9] sm:$0xff]  ;;  %v5501_v22 = vld [vmem:[%s12381_s9 + $0x8] sm:$0xff] }
 0x3a3   : > { %9642 = vmatprep.subr.bf16.mxu1 %v9940_v3  ;;  %9627 = vmatprep.subr.bf16.mxu0 %v9940_v3  ;;  %v9724_v55 = vpack.c.bf16 %v5501_v22, %v5500_v49 }
 0x3a4   : > { %9644 = vmatpush3.bf16.msra.mxu1 %v9643_v32  ;;  %9629 = vmatpush3.bf16.msra.mxu0 %v9628_v33  ;;  %v5978_v32 = vld [vmem:[%s12377_s5 + $0xd8] sm:$0xff]  ;;  %v9682_v33 = vpack.c.bf16 %v5989_v14, %v5988_v10  ;;  %v5506_v10 = vld [vmem:[%s12381_s9 + $0x30] sm:$0xff] }
 0x3a5   : > { %9645 = vmatprep.subr.bf16.mxu1 %v9940_v3  ;;  %9630 = vmatprep.subr.bf16.mxu0 %v9940_v3  ;;  %v9667_v12 = vpack.c.bf16 %v5978_v32, %v5977_v9  ;;  %v5507_v14 = vld [vmem:[%s12381_s9 + $0x38] sm:$0xff] }
 0x3a6   : > { %8477 = vmatprep.mubr.msk.f32.mxu1 %vm9941_vm0, %v12419_v38  ;;  %8454 = vmatprep.mubr.msk.f32.mxu0 %vm9941_vm0, %v12419_v38 }
 0x3a8   : > { %9647 = vmatpush3.bf16.msra.mxu1 %v9646_v31  ;;  %9632 = vmatpush3.bf16.msra.mxu0 %v9631_v50  ;;  %v5980_v31 = vld [vmem:[%s12377_s5 + $0xe8] sm:$0xff]  ;;  %v9685_v50 = vpack.c.bf16 %v5991_v4, %v5990_v7 }
 0x3a9   : > { %9648 = vmatprep.subr.bf16.mxu1 %v9940_v3  ;;  %9633 = vmatprep.subr.bf16.mxu0 %v9940_v3  ;;  %v9670_v61 = vpack.c.bf16 %v5980_v31, %v5979_v30 }
 0x3ac   : > { %9650 = vmatpush3.bf16.msra.mxu1 %v9649_v28  ;;  %9635 = vmatpush3.bf16.msra.mxu0 %v9634_v25  ;;  %v9688_v28 = vpack.c.bf16 %v5994_v34, %v5993_v27 }
 0x3ad   : > { %9651 = vmatprep.subr.bf16.mxu1 %v9940_v3  ;;  %9636 = vmatprep.subr.bf16.mxu0 %v9940_v3 }
 0x3b0   : > { %9653 = vmatpush3.bf16.msra.mxu1 %v9652_v17  ;;  %9638 = vmatpush3.bf16.msra.mxu0 %v9637_v21  ;;  %v9691_v17 = vpack.c.bf16 %v5996_v52, %v5995_v36  ;;  %v9694_v21 = vpack.c.bf16 %v5998_v1, %v5997_v20  ;;  %v5508_v52 = vld [vmem:[%s12381_s9 + $0x40] sm:$0xff]  ;;  %v5510_v1 = vld [vmem:[%s12381_s9 + $0x50] sm:$0xf] }
 0x3b1   : > { %9654 = vmatprep.subr.bf16.mxu1 %v9940_v3  ;;  %9639 = vmatprep.subr.bf16.mxu0 %v9940_v3 }
 0x3b4   : > { %9656 = vmatpush3.bf16.msra.mxu1 %v9655_v19  ;;  %9641 = vmatpush3.bf16.msra.mxu0 %v9640_v6  ;;  %v9697_v19 = vpack.c.bf16 %v6000_v23, %v5999_v59  ;;  %v9700_v6 = vpack.c.bf16 %v6002_v5, %v6001_v37 }
 0x3b5   : > { %9672 = vmatprep.subr.bf16.mxu1 %v9940_v3  ;;  %9657 = vmatprep.subr.bf16.mxu0 %v9940_v3 }
 0x402   : > { %v3829_v63 = vpop.f32.mrb[8].mxu0  ;;  %v4257_v29 = vpop.f32.mrb[8].mxu1 }
 0x403   : > { %v4262_v40 = vmax.f32 %v3829_v63, %v4257_v29  ;;  %v8058_v58 = vpop.f32.mrb[9].mxu0  ;;  %v8183_v51 = vpop.f32.mrb[9].mxu1  ;;  %v5409_v29 = vld [vmem:[%s12379_s7] sm:$0xff] }
 0x404   : > { %v5411_v51 = vld [vmem:[%s12379_s7 + $0x10] sm:$0xff] }
 0x475   : > { %v4614_v60 = vpop.f32.mrb[10].mxu0  ;;  %v4968_v47 = vpop.f32.mrb[10].mxu1 }
 0x476   : > { %v4619_v8 = vmax.f32 %v4262_v40, %v4614_v60  ;;  %v8308_v13 = vpop.f32.mrb[11].mxu0  ;;  %v8433_v62 = vpop.f32.mrb[11].mxu1  ;;  %v5410_v40 = vld [vmem:[%s12379_s7 + $0x8] sm:$0xff]  ;;  %v5412_v60 = vld [vmem:[%s12379_s7 + $0x18] sm:$0xff] }
 0x477   : > { %v9703_v58 = vpack.c.bf16 %v5410_v40, %v5409_v29  ;;  %v5414_v13 = vld [vmem:[%s12379_s7 + $0x28] sm:$0xff] }
 0x478   : > { %v4973_v48 = vmax.f32 %v4619_v8, %v4968_v47  ;;  %v9706_v47 = vpack.c.bf16 %v5412_v60, %v5411_v51  ;;  %v5413_v8 = vld [vmem:[%s12379_s7 + $0x20] sm:$0xff] }
 0x479   : > { %v9709_v62 = vpack.c.bf16 %v5414_v13, %v5413_v8 }
 0x47a   : > { %v4981_v18 = vadd.f32 %v5958_v26, %v4973_v48  ;;  %v5415_v26 = vld [vmem:[%s12379_s7 + $0x30] sm:$0xff]  ;;  %v5416_v48 = vld [vmem:[%s12379_s7 + $0x38] sm:$0xff] }
 0x47b   : > { %v9712_v2 = vpack.c.bf16 %v5416_v48, %v5415_v26 }
 0x47c   : > { %v12109_v11 = vmax.f32 %v4981_v18, 0.0  ;;  %v5418_v18 = vld [vmem:[%s12379_s7 + $0x48] sm:$0xff] }
 0x47d   : > { %v9715_v43 = vpack.c.bf16 %v5418_v18, %v5417_v57 }
 0x47e   : > { %8478 = vmatmul.mubr.msk.f32.vlgmr.msra.gmra.mrb[12].mxu1 %vm5006_vm4, %v12109_v11  ;;  %v5005_v24 = vrot.slane %v12109_v11, 1  ;;  %v5247_v0 = vrot.slane %v12109_v11, 3  ;;  %v5162_v25 = vrot.slane %v12109_v11, 2  ;;  %v5332_v63 = vrot.slane %v12109_v11, 4 }
 0x47f   : > { %9674 = vmatpush3.bf16.msra.mxu1 %v9673_v39  ;;  %8523 = vmatprep.mubr.msk.f32.mxu1 %vm9941_vm0, %v12419_v38  ;;  %v5420_v39 = vld [vmem:[%s12379_s7 + $0x58] sm:$0xff] }
 0x480   : > { %8455 = vmatmul.mubr.msk.f32.vlgmr.msra.gmra.mrb[12].mxu0 %vm5006_vm4, %v5005_v24  ;;  %9675 = vmatprep.subr.bf16.mxu1 %v9940_v3  ;;  %v9718_v11 = vpack.c.bf16 %v5420_v39, %v5419_v53  ;;  %v5423_v24 = vld [vmem:[%s12379_s7 + $0x70] sm:$0xff] }
 0x481   : > { %9659 = vmatpush3.bf16.msra.mxu0 %v9658_v42  ;;  %8500 = vmatprep.mubr.msk.f32.mxu0 %vm9941_vm0, %v12419_v38  ;;  %v9721_v42 = vpack.c.bf16 %v5422_v44, %v5421_v35 }
 0x482   : > { %9660 = vmatprep.subr.bf16.mxu0 %v9940_v3 }
 0x483   : > { %9677 = vmatpush3.bf16.msra.mxu1 %v9676_v54  ;;  %v5502_v54 = vld [vmem:[%s12381_s9 + $0x10] sm:$0xff] }
 0x484   : > { %9678 = vmatprep.subr.bf16.mxu1 %v9940_v3 }
 0x485   : > { %9662 = vmatpush3.bf16.msra.mxu0 %v9661_v15  ;;  %v9727_v15 = vpack.c.bf16 %v5503_v56, %v5502_v54 }
 0x486   : > { %9663 = vmatprep.subr.bf16.mxu0 %v9940_v3 }
 0x487   : > { %9680 = vmatpush3.bf16.msra.mxu1 %v9679_v46  ;;  %v9730_v46 = vpack.c.bf16 %v5505_v45, %v5504_v16 }
 0x488   : > { %9681 = vmatprep.subr.bf16.mxu1 %v9940_v3 }
 0x489   : > { %9665 = vmatpush3.bf16.msra.mxu0 %v9664_v41  ;;  %v9733_v41 = vpack.c.bf16 %v5507_v14, %v5506_v10 }
 0x48a   : > { %9666 = vmatprep.subr.bf16.mxu0 %v9940_v3 }
 0x48b   : > { %9683 = vmatpush3.bf16.msra.mxu1 %v9682_v33 }
 0x48c   : > { %9684 = vmatprep.subr.bf16.mxu1 %v9940_v3 }
 0x48d   : > { %9668 = vmatpush3.bf16.msra.mxu0 %v9667_v12 }
 0x48e   : > { %9669 = vmatprep.subr.bf16.mxu0 %v9940_v3 }
 0x48f   : > { %9686 = vmatpush3.bf16.msra.mxu1 %v9685_v50 }
 0x490   : > { %9702 = vmatprep.subr.bf16.mxu1 %v9940_v3 }
 0x491   : > { %9671 = vmatpush3.bf16.msra.mxu0 %v9670_v61 }
 0x492   : > { %8524 = vmatmul.mubr.msk.f32.vlgmr.msra.gmra.mrb[14].mxu1 %vm5006_vm4, %v5247_v0  ;;  %9687 = vmatprep.subr.bf16.mxu0 %v9940_v3  ;;  %v5406_v0 = vld [vmem:[%s12378_s6] sm:$0x1] }
 0x493   : > { %8579 = vmatprep.mubr.msk.f32.mxu1 %vm9941_vm0, %v12419_v38  ;;  %9704 = vmatpush3.bf16.msra.mxu1 %v9703_v58 }
 0x494   : > { %8501 = vmatmul.mubr.msk.f32.vlgmr.msra.gmra.mrb[14].mxu0 %vm5006_vm4, %v5162_v25  ;;  %9705 = vmatprep.subr.bf16.mxu1 %v9940_v3 }
 0x495   : > { %9689 = vmatpush3.bf16.msra.mxu0 %v9688_v28  ;;  %8546 = vmatprep.mubr.msk.f32.mxu0 %vm9941_vm0, %v12419_v38 }
 0x496   : > { %9690 = vmatprep.subr.bf16.mxu0 %v9940_v3 }
 0x497   : > { %9707 = vmatpush3.bf16.msra.mxu1 %v9706_v47 }
 0x498   : > { %9708 = vmatprep.subr.bf16.mxu1 %v9940_v3 }
 0x499   : > { %9692 = vmatpush3.bf16.msra.mxu0 %v9691_v17  ;;  %v5509_v17 = vld [vmem:[%s12381_s9 + $0x48] sm:$0xff] }
 0x49a   : > { %9693 = vmatprep.subr.bf16.mxu0 %v9940_v3  ;;  %v9736_v20 = vpack.c.bf16 %v5509_v17, %v5508_v52 }
 0x49b   : > { %9710 = vmatpush3.bf16.msra.mxu1 %v9709_v62 }
 0x49c   : > { %9711 = vmatprep.subr.bf16.mxu1 %v9940_v3 }
 0x49d   : > { %9695 = vmatpush3.bf16.msra.mxu0 %v9694_v21  ;;  %v5424_v21 = vld [vmem:[%s12380_s8] sm:$0x1] }
 0x49e   : > { %9696 = vmatprep.subr.bf16.mxu0 %v9940_v3 }
 0x49f   : > { %9713 = vmatpush3.bf16.msra.mxu1 %v9712_v2 }
 0x4a0   : > { %9714 = vmatprep.subr.bf16.mxu1 %v9940_v3 }
 0x4a1   : > { %9698 = vmatpush3.bf16.msra.mxu0 %v9697_v19 }
 0x4a2   : > { %9699 = vmatprep.subr.bf16.mxu0 %v9940_v3 }
 0x4a3   : > { %9716 = vmatpush3.bf16.msra.mxu1 %v9715_v43 }
 0x4a4   : > { %9717 = vmatprep.subr.bf16.mxu1 %v9940_v3 }
 0x4a5   : > { %9701 = vmatpush3.bf16.msra.mxu0 %v9700_v6 }
 0x4a6   : > { %9723 = vmatprep.subr.bf16.mxu0 %v9940_v3 }
 0x4a7   : > { %9719 = vmatpush3.bf16.msra.mxu1 %v9718_v11 }
 0x4a8   : > { %8547 = vmatmul.mubr.msk.f32.vlgmr.msra.gmra.mrb[16].mxu0 %vm5006_vm4, %v5332_v63  ;;  %9720 = vmatprep.subr.bf16.mxu1 %v9940_v3 }
 0x4a9   : > { %8604 = vmatprep.mubr.msk.f32.mxu0 %vm9941_vm0, %v12419_v38  ;;  %9725 = vmatpush3.bf16.msra.mxu0 %v9724_v55 }
 0x4aa   : > { %9726 = vmatprep.subr.bf16.mxu0 %v9940_v3 }
 0x4ab   : > { %9722 = vmatpush3.bf16.msra.mxu1 %v9721_v42 }
 0x4ac   : > { %8577 = vmatprep.subr.mxu1 %v12419_v38 }
 0x4ad   : > { %9728 = vmatpush3.bf16.msra.mxu0 %v9727_v15 }
 0x4ae   : > { %9729 = vmatprep.subr.bf16.mxu0 %v9940_v3 }
 0x4af   : > { %8578 = vmatpush3.msra.mxu1 %v5423_v24 }
 0x4b1   : > { %9731 = vmatpush3.bf16.msra.mxu0 %v9730_v46 }
 0x4b2   : > { %9732 = vmatprep.subr.bf16.mxu0 %v9940_v3 }
 0x4b5   : > { %9734 = vmatpush3.bf16.msra.mxu0 %v9733_v41 }
 0x4b6   : > { %9735 = vmatprep.subr.bf16.mxu0 %v9940_v3 }
 0x4b9   : > { %9737 = vmatpush3.bf16.msra.mxu0 %v9736_v20 }
 0x4ba   : > { %8602 = vmatprep.subr.mxu0 %v12419_v38  ;;  %v5511_v38 = vld [vmem:[%s12382_s10] sm:$0x1] }
 0x4bd   : > { %8603 = vmatpush3.msk.msra.mxu0 %vm3417_vm2, %v5510_v1 }
 0x551   : > { %v5147_v9 = vpop.f32.mrb[12].mxu1 }
 0x552   : > { %v8479_v32 = vpop.f32.mrb[13].mxu1 }
 0x553   : > { %v5075_v33 = vpop.f32.mrb[12].mxu0 }
 0x554   : > { %v5148_v7 = vadd.f32 %v5147_v9, %v5075_v33  ;;  %v8456_v4 = vpop.f32.mrb[13].mxu0 }
 0x565   : > { %v5316_v12 = vpop.f32.mrb[14].mxu1 }
 0x566   : > { %v8525_v30 = vpop.f32.mrb[15].mxu1 }
 0x567   : > { %v5231_v31 = vpop.f32.mrb[14].mxu0 }
 0x568   : > { %v5235_v50 = vadd.f32 %v5231_v31, %v5148_v7  ;;  %v8502_v61 = vpop.f32.mrb[15].mxu0 }
 0x56a   : > { %v5320_v27 = vadd.f32 %v5316_v12, %v5235_v50 }
 0x57b   : > { %v5401_v34 = vpop.f32.mrb[16].mxu0 }
 0x57c   : > { %v5405_v28 = vadd.f32 %v5401_v34, %v5320_v27  ;;  %v8548_v25 = vpop.f32.mrb[17].mxu0 }
 0x57e   : > { %v5407_v36 = vadd.f32 %v5406_v0, %v5405_v28 }
 0x580   : > { %v5408_v3 = vmax.f32 %v5407_v36, 0.0 }
 0x582   : > { %8580 = vmatmul.mubr.msk.f32.vlgmr.msra.gmra.mrb[16].mxu1 %vm5425_vm5, %v5408_v3 }
 0x655   : > { %v5495_v59 = vpop.f32.mrb[16].mxu1 }
 0x656   : > { %v5496_v23 = vadd.f32 %v5495_v59, %v5424_v21  ;;  %v8581_v19 = vpop.f32.mrb[17].mxu1 }
 0x658   : > { %v5499_v37 = vmax.f32 %v5496_v23, 0.0 }
 0x65a   : > { %8605 = vmatmul.mubr.msk.f32.vlgmr.msra.gmra.mrb[18].mxu0 %vm3413_vm3, %v5499_v37 }
 0x72d   : > { %v5584_v5 = vpop.f32.mrb[18].mxu0 }
 0x72e   : > { %v5585_v6 = vadd.f32 %v5584_v5, %v5511_v38  ;;  %v8606_v63 = vpop.f32.mrb[19].mxu0 }
 0x730   : > { %5589 = vst.msk [vmem:[%s378_s22] sm:$0x1] %vm5588_vm6, %v5585_v6 }
 0x731   : > { %9889 = shalt.err (!%p9886_p3)
}
 0x732   : > { %s9890_s14 = scalar_lea.hbm %s12330_s30, 16  ;;  %s9894_s22 = scalar_lea.hbm %s12383_s11, 32 }
 0x733   : > { %p9891_p4 = scmp.ne.s32.totalorder %s12330_s30, %s9890_s14  ;;  %p9895_p9 = scmp.lt.u32.totalorder %s12330_s30, %s12383_s11 }
 0x734   : > { %p9896_p10 = scmp.lt.u32.totalorder %s9894_s22, %s9890_s14  ;;  %p9898_p12 = scmp.lt.u32.totalorder %s9890_s14, %s12330_s30 }
 0x735   : > { %p9892_p7 = pnand %p9891_p4, %p10042_p5 }
 0x736   : > { %p9897_p11 = por %p9896_p10, %p9895_p9 }
 0x737   : > { %p9893_p8 = pneg %p9892_p7 }
 0x738   : > { %p9899_p13 = por %p9898_p12, %p9897_p11 }
 0x73a   : > { %p9900_p0 = pnand %p9899_p13, %p9893_p8 }
 0x73c   : > { %9903 = shalt.err (!%p9900_p0)
}
 0x73d   : > { %9834 = dma.vmem_to_hbm [thread:$0]  (%p10042_p5), %s12332_s13, 16, %s12330_s30, %s5591_s12  }
 0x73e PF: > { %p9840_p1 = scmp.ge.s32.totalorder %s9938_s20, 2  ;;  %s5615_s19 = sand.u32 1, %s9926_s17  }
 0x73f   : > { %s5616_s21 = scalar_lea.sflag [#allocation3], %s5615_s19 }
 0x740   : > { %p9837_p2 = pnand %p9840_p1, %p10046_p6 }
 0x742   : > { %9921 = dma.done.wait (!%p9837_p2), %s5616_s21, 16  }
 0x743   : > { %9923 = vsyncadd (!%p9837_p2), %s5616_s21, 4294967280  ;;  %s12442_s26 = sld [smem:[#allocation5_spill]]  ;;  %s12443_s19 = sld [smem:[#allocation6_spill]] }
 0x744   : > { %p21_p3 = scmp.ge.s32.totalorder %s10029_s23, 4   ;;  %s12444_s17 = smov %s9930_s18 }
 0x745   : > { %s12446_s20 = smov %s10029_s23 }
 0x746   :  { %23 = sbr.rel (!%p21_p3) target bundleno = 3 (0x3), region = 124 }
 0x749   : > { %s12445_s18 = smov %s12442_s26 }
 0x74d   :  { %5620 = vsyncpa [#allocation3], 1 }
 0x74e   :  { %5622 = vsyncpa [#allocation3 + $0x1], 1 }

</bundles_post_ra>
